<compile_context>
chip_gen: v7x
topology: tpu7x:2x2x1
jax: 0.10.0
libtpu: 0.0.40
codegen_flags: <defaults>
</compile_context>

<pallas_src>
import jax
import jax.numpy as jnp
from jax.experimental import pallas as pl
from jax.experimental.pallas import tpu as pltpu

BN_EPS = 1e-5
LRELU_SLOPE = 0.2
LANE = 128        # K padded to multiples of this (lane-dense patch loads)
MIN_M = 16        # M-tile granularity (bf16 sublane packing)

_ITEMSIZE = {jnp.bfloat16: 2, jnp.float32: 4}

_DEFAULTS = None


def _tpu_defaults():
    """(max_tile_m, vmem_limit_bytes), generation-gated by physical VMEM size."""
    global _DEFAULTS
    if _DEFAULTS is None:
        vmem = 64 * 1024 * 1024
        try:
            info = pltpu.get_tpu_info()
            vmem = int(getattr(info, "vmem_capacity_bytes", vmem))
        except Exception:
            pass
        if vmem >= 100 * 1024 * 1024:        # v5e / v6e: 128 MiB physical VMEM
            _DEFAULTS = (2048, 96 * 1024 * 1024)
        else:                                # v7x: 64 MiB physical VMEM
            _DEFAULTS = (1024, 48 * 1024 * 1024)
    return _DEFAULTS


def _compiler_params():
    _, vmem_limit = _tpu_defaults()
    return pltpu.CompilerParams(
        dimension_semantics=("parallel",),   # M tiles independent (megacore)
        vmem_limit_bytes=vmem_limit)


def _round_up(x, m):
    return (x + m - 1) // m * m


def _pick_m_tiling(m):
    """Tile size (multiple of 16), padded M, number of tiles.
    Always >= 2 tiles and an even count so v7x's two TensorCores are both busy."""
    max_tile, _ = _tpu_defaults()
    n_tiles = max(2, -(-m // max_tile))
    if n_tiles % 2:
        n_tiles += 1
    tile = _round_up(-(-m // n_tiles), MIN_M)
    return tile, tile * n_tiles, n_tiles


# ----------------------------------------------------------------------------
# Pallas kernels
# ----------------------------------------------------------------------------
def _leaky(y):
    return jnp.maximum(y, LRELU_SLOPE * y)


def conv_bias_lrelu_kernel(x_ref, w_ref, b_ref, o_ref):
    """o = leaky_relu(x @ w + b).  x:(TM,Kp) bf16, w:(Kp,C) bf16, b:(1,C) f32."""
    y = jnp.dot(x_ref[...], w_ref[...], preferred_element_type=jnp.float32)
    y = y + b_ref[...]
    o_ref[...] = _leaky(y).astype(o_ref.dtype)


def _conv_stats_epilogue(x_gemm, w_ref, y_ref, stats_ref, m_real, tile_m):
    """GEMM + masked per-tile centered BatchNorm partial stats (rows 0/1 only)."""
    i = pl.program_id(0)
    y = jnp.dot(x_gemm, w_ref[...], preferred_element_type=jnp.float32)  # (TM, C)
    row = jax.lax.broadcasted_iota(jnp.int32, (tile_m, 1), 0) + i * tile_m
    valid = row < m_real
    y = jnp.where(valid, y, 0.0)                 # padded rows contribute nothing
    y_ref[...] = y.astype(y_ref.dtype)
    cnt = jnp.maximum(jnp.minimum(m_real - i * tile_m, tile_m), 1).astype(jnp.float32)
    s = jnp.sum(y, axis=0, keepdims=True)        # (1, C)   per-tile sum
    mu = s * (1.0 / cnt)
    d = jnp.where(valid, y - mu, 0.0)
    m2 = jnp.sum(d * d, axis=0, keepdims=True)   # (1, C)   centered sum of squares
    stats_ref[0:1, :] = s
    stats_ref[1:2, :] = m2                       # rows 2..7 never written nor read


def _make_conv_stats_kernel(m_real, tile_m, in_affine):
    """Conv GEMM + partial stats.  When in_affine, the previous layer's folded
    BatchNorm (per-channel scale/shift, replicated over the taps) + LeakyReLU is
    applied to the loaded patches in-kernel, killing a full HBM round trip."""
    if in_affine:
        def kernel(x_ref, w_ref, iscale_ref, ishift_ref, y_ref, stats_ref):
            x = x_ref[...].astype(jnp.float32)
            x = x * iscale_ref[...] + ishift_ref[...]
            x = _leaky(x)
            _conv_stats_epilogue(x.astype(jnp.bfloat16), w_ref, y_ref, stats_ref,
                                 m_real, tile_m)
    else:
        def kernel(x_ref, w_ref, y_ref, stats_ref):
            _conv_stats_epilogue(x_ref[...], w_ref, y_ref, stats_ref, m_real, tile_m)
    return kernel


def bn_lrelu_kernel(y_ref, scale_ref, shift_ref, o_ref):
    """o = leaky_relu(y * scale + shift)  (folded BatchNorm affine, final layer)."""
    y = y_ref[...] * scale_ref[...] + shift_ref[...]
    o_ref[...] = _leaky(y).astype(o_ref.dtype)


# ----------------------------------------------------------------------------
# JAX glue: single-write padded im2col, weight layout, stats combine
# ----------------------------------------------------------------------------
def _im2col(x, kh, kw, stride, pad, m_pad, k_pad, dtype):
    """x:(N,H,W,C) -> padded patches (m_pad, k_pad) in `dtype`, K order (kh,kw,C).
    Cast + K/M padding are folded into the producer: written to HBM once."""
    x = x.astype(dtype)
    n, h, w, c = x.shape
    if pad:
        x = jnp.pad(x, ((0, 0), (pad, pad), (pad, pad), (0, 0)))
    ho = (h + 2 * pad - kh) // stride + 1
    wo = (w + 2 * pad - kw) // stride + 1
    taps = [x[:, i:i + stride * ho:stride, j:j + stride * wo:stride, :]
            for i in range(kh) for j in range(kw)]
    p = jnp.stack(taps, axis=3).reshape(n * ho * wo, kh * kw * c)
    return jnp.pad(p, ((0, m_pad - n * ho * wo), (0, k_pad - kh * kw * c)))


def _gemm_weight(w_oihw, k_pad):
    """(C_out, C_in, KH, KW) -> bf16 (K_pad, C_out), matching im2col K order."""
    co, ci, kh, kw = w_oihw.shape
    w = w_oihw.transpose(2, 3, 1, 0).reshape(kh * kw * ci, co)
    return jnp.pad(w, ((0, k_pad - kh * kw * ci), (0, 0))).astype(jnp.bfloat16)


def _combine_stats(part, m, tile_m, n_tiles):
    """Merge per-tile (sum, centered M2) into global mean / biased variance
    via Chan's parallel-variance combination (no E[y^2]-E[y]^2 cancellation)."""
    part = part.reshape(n_tiles, 8, -1)
    s_i, m2_i = part[:, 0, :], part[:, 1, :]
    cnt = jnp.clip(m - jnp.arange(n_tiles) * tile_m, 0, tile_m).astype(jnp.float32)
    mu_i = s_i / jnp.maximum(cnt, 1.0)[:, None]
    mean = jnp.sum(s_i, axis=0) / m
    m2 = jnp.sum(m2_i, axis=0) + jnp.sum(cnt[:, None] * (mu_i - mean[None, :]) ** 2, axis=0)
    return mean, m2 / m


def _fold_bn(gamma, beta, mean, var):
    scale = gamma * jax.lax.rsqrt(var + BN_EPS)
    return scale, beta - scale * mean


# ----------------------------------------------------------------------------
# pallas_call wrappers
# ----------------------------------------------------------------------------
def conv_bias_lrelu(x_nhwc, w_oihw, b, *, stride, pad):
    """Block 1: conv + bias + LeakyReLU.  Output NHWC, real C, bf16."""
    n, h, w, cin = x_nhwc.shape
    cout, _, kh, kw = w_oihw.shape
    ho = (h + 2 * pad - kh) // stride + 1
    wo = (w + 2 * pad - kw) // stride + 1
    m, k = n * ho * wo, kh * kw * cin
    kp = _round_up(k, LANE)
    tile_m, m_pad, n_tiles = _pick_m_tiling(m)

    patches = _im2col(x_nhwc, kh, kw, stride, pad, m_pad, kp, jnp.bfloat16)
    wg = _gemm_weight(w_oihw, kp)
    bg = b.reshape(1, cout).astype(jnp.float32)

    cost = pl.CostEstimate(
        flops=2 * m_pad * kp * cout + 3 * m_pad * cout,
        transcendentals=0,
        bytes_accessed=2 * m_pad * kp + 2 * kp * cout + 2 * m_pad * cout)

    y = pl.pallas_call(
        conv_bias_lrelu_kernel,
        out_shape=jax.ShapeDtypeStruct((m_pad, cout), jnp.bfloat16),
        grid_spec=pltpu.PrefetchScalarGridSpec(
            num_scalar_prefetch=0,
            grid=(n_tiles,),
            in_specs=[
                pl.BlockSpec((tile_m, kp), lambda i: (i, 0)),
                pl.BlockSpec((kp, cout), lambda i: (0, 0)),
                pl.BlockSpec((1, cout), lambda i: (0, 0)),
            ],
            out_specs=pl.BlockSpec((tile_m, cout), lambda i: (i, 0)),
        ),
        compiler_params=_compiler_params(),
        cost_estimate=cost,
    )(patches, wg, bg)
    return y[:m].reshape(n, ho, wo, cout)


def conv_stats(x_nhwc, w_oihw, *, stride, pad, in_scale=None, in_shift=None):
    """Conv (im2col GEMM) + per-tile partial BatchNorm statistics.
    If in_scale/in_shift are given, the previous layer's BN + LeakyReLU is applied
    to the loaded patches inside the kernel (per-K affine).  Returns
    (y_flat_padded f32 (m_pad, C), mean, var, meta)."""
    n, h, w, cin = x_nhwc.shape
    cout, _, kh, kw = w_oihw.shape
    ho = (h + 2 * pad - kh) // stride + 1
    wo = (w + 2 * pad - kw) // stride + 1
    m, k = n * ho * wo, kh * kw * cin
    kp = _round_up(k, LANE)
    tile_m, m_pad, n_tiles = _pick_m_tiling(m)

    in_affine = in_scale is not None
    # f32 patches when the BN affine is applied in-kernel, so the quantization
    # point (bf16 cast of leaky(scale*y+shift)) matches the reference exactly.
    patch_dtype = jnp.float32 if in_affine else jnp.bfloat16
    patches = _im2col(x_nhwc, kh, kw, stride, pad, m_pad, kp, patch_dtype)
    wg = _gemm_weight(w_oihw, kp)

    args = [patches, wg]
    in_specs = [pl.BlockSpec((tile_m, kp), lambda i: (i, 0)),
                pl.BlockSpec((kp, cout), lambda i: (0, 0))]
    if in_affine:
        scale_k = jnp.pad(jnp.tile(in_scale.astype(jnp.float32), kh * kw), (0, kp - k))
        shift_k = jnp.pad(jnp.tile(in_shift.astype(jnp.float32), kh * kw), (0, kp - k))
        args += [scale_k.reshape(1, kp), shift_k.reshape(1, kp)]
        in_specs += [pl.BlockSpec((1, kp), lambda i: (0, 0)),
                     pl.BlockSpec((1, kp), lambda i: (0, 0))]

    cost = pl.CostEstimate(
        flops=2 * m_pad * kp * cout
              + (4 * m_pad * kp if in_affine else 0) + 6 * m_pad * cout,
        transcendentals=0,
        bytes_accessed=_ITEMSIZE[patch_dtype] * m_pad * kp + 2 * kp * cout
                       + 4 * m_pad * cout + 4 * n_tiles * 8 * cout)

    y, part = pl.pallas_call(
        _make_conv_stats_kernel(m, tile_m, in_affine),
        out_shape=(jax.ShapeDtypeStruct((m_pad, cout), jnp.float32),
                   jax.ShapeDtypeStruct((n_tiles * 8, cout), jnp.float32)),
        grid_spec=pltpu.PrefetchScalarGridSpec(
            num_scalar_prefetch=0,
            grid=(n_tiles,),
            in_specs=in_specs,
            out_specs=[pl.BlockSpec((tile_m, cout), lambda i: (i, 0)),
                       pl.BlockSpec((8, cout), lambda i: (i, 0))],
        ),
        compiler_params=_compiler_params(),
        cost_estimate=cost,
    )(*args)

    mean, var = _combine_stats(part, m, tile_m, n_tiles)
    meta = dict(n=n, ho=ho, wo=wo, cout=cout, m=m, m_pad=m_pad,
                tile_m=tile_m, n_tiles=n_tiles)
    return y, mean, var, meta


def bn_lrelu_apply(y_flat, scale, shift, meta):
    """Final-layer folded BN affine + LeakyReLU (lane-dense, C = 16*cnum = 128)."""
    tile_m, n_tiles = meta["tile_m"], meta["n_tiles"]
    m_pad, cout = meta["m_pad"], meta["cout"]
    cost = pl.CostEstimate(flops=4 * m_pad * cout, transcendentals=0,
                           bytes_accessed=8 * m_pad * cout + 8 * cout)
    out = pl.pallas_call(
        bn_lrelu_kernel,
        out_shape=jax.ShapeDtypeStruct((m_pad, cout), jnp.float32),
        grid_spec=pltpu.PrefetchScalarGridSpec(
            num_scalar_prefetch=0,
            grid=(n_tiles,),
            in_specs=[pl.BlockSpec((tile_m, cout), lambda i: (i, 0)),
                      pl.BlockSpec((1, cout), lambda i: (0, 0)),
                      pl.BlockSpec((1, cout), lambda i: (0, 0))],
            out_specs=pl.BlockSpec((tile_m, cout), lambda i: (i, 0)),
        ),
        compiler_params=_compiler_params(),
        cost_estimate=cost,
    )(y_flat, scale.reshape(1, cout).astype(jnp.float32),
      shift.reshape(1, cout).astype(jnp.float32))
    return out[:meta["m"]].reshape(meta["n"], meta["ho"], meta["wo"], cout)


# ----------------------------------------------------------------------------
# Parameters and forward pass
# ----------------------------------------------------------------------------
def init_params(key, in_channels, cnum):
    """Deterministic synthetic parameters with DisConLayers' shapes."""
    ks = jax.random.split(key, 4)
    p = {}
    p["w1"] = 0.1 * jax.random.normal(ks[0], (cnum, in_channels, 4, 4), jnp.float32)
    p["b1"] = 0.1 * jax.random.normal(ks[1], (cnum,), jnp.float32)
    p["w2"] = 0.1 * jax.random.normal(ks[2], (cnum * 2, cnum, 4, 4), jnp.float32)
    p["g2"] = jnp.ones((cnum * 2,), jnp.float32)      # BN weight (fresh init = 1)
    p["be2"] = jnp.zeros((cnum * 2,), jnp.float32)    # BN bias   (fresh init = 0)
    p["w3"] = 0.05 * jax.random.normal(ks[3], (cnum * 16, cnum * 2, 7, 7), jnp.float32)
    p["g3"] = jnp.ones((cnum * 16,), jnp.float32)
    p["be3"] = jnp.zeros((cnum * 16,), jnp.float32)
    return p


@jax.jit
def dis_con_layers_forward(x_nchw, params):
    x = x_nchw.transpose(0, 2, 3, 1)                  # NHWC once at entry

    # block 1: Conv(4,2,1) + bias + LeakyReLU  (real-C bf16 output)
    y1 = conv_bias_lrelu(x, params["w1"], params["b1"], stride=2, pad=1)

    # block 2: Conv(4,2,1) + partial BN stats.  BN+LeakyReLU folded into block 3.
    y2, mean2, var2, meta2 = conv_stats(y1, params["w2"], stride=2, pad=1)
    scale2, shift2 = _fold_bn(params["g2"], params["be2"], mean2, var2)
    y2_nhwc = y2[:meta2["m"]].reshape(meta2["n"], meta2["ho"], meta2["wo"], meta2["cout"])

    # block 3: (BN2 + LeakyReLU applied in-kernel to the loaded patches)
    #          + Conv(7,1,0) + partial BN stats.
    y3, mean3, var3, meta3 = conv_stats(y2_nhwc, params["w3"], stride=1, pad=0,
                                        in_scale=scale2, in_shift=shift2)
    scale3, shift3 = _fold_bn(params["g3"], params["be3"], mean3, var3)
    out = bn_lrelu_apply(y3, scale3, shift3, meta3)

    return out.transpose(0, 3, 1, 2)                  # back to NCHW once at exit


# ----------------------------------------------------------------------------
# Reference with the same operand precision as the kernels (bf16 GEMM inputs,
# f32 accumulation) so the comparison isolates kernel correctness.
# ----------------------------------------------------------------------------
def _conv_ref(x, w, stride, pad):
    return jax.lax.conv_general_dilated(
        x.astype(jnp.bfloat16), w.astype(jnp.bfloat16),
        window_strides=(stride, stride),
        padding=[(pad, pad), (pad, pad)],
        dimension_numbers=("NCHW", "OIHW", "NCHW"),
        preferred_element_type=jnp.float32)


def _bn_lrelu_ref(y, gamma, beta):
    mean = jnp.mean(y, axis=(0, 2, 3), keepdims=True)
    var = jnp.mean((y - mean) ** 2, axis=(0, 2, 3), keepdims=True)
    yn = (y - mean) / jnp.sqrt(var + BN_EPS)
    yn = yn * gamma.reshape(1, -1, 1, 1) + beta.reshape(1, -1, 1, 1)
    return jnp.where(yn > 0, yn, LRELU_SLOPE * yn)


def reference_forward(x, p):
    y = _conv_ref(x, p["w1"], 2, 1) + p["b1"].reshape(1, -1, 1, 1)
    y = jnp.where(y > 0, y, LRELU_SLOPE * y)
    y = _bn_lrelu_ref(_conv_ref(y, p["w2"], 2, 1), p["g2"], p["be2"])
    y = _bn_lrelu_ref(_conv_ref(y, p["w3"], 1, 0), p["g3"], p["be3"])
    return y


if __name__ == "__main__":
    # 68 -> 34 -> 17 -> 11 spatial; every layer gets 2 balanced M tiles, which
    # exercises the tiled-BN partial-statistics path and the megacore split.
    N, C_IN, H, W, CNUM = 2, 4, 68, 68, 8

    key = jax.random.PRNGKey(0)
    kx, kp = jax.random.split(key)
    x = jax.random.normal(kx, (N, C_IN, H, W), jnp.float32)
    params = init_params(kp, C_IN, CNUM)

    out = jax.block_until_ready(dis_con_layers_forward(x, params))
    assert out.shape == (N, CNUM * 16, 11, 11), out.shape

    ref = jax.block_until_ready(jax.jit(reference_forward)(x, params))
    max_err = float(jnp.max(jnp.abs(out - ref)))
    assert jnp.allclose(out, ref, rtol=2e-2, atol=2e-2), \
        f"mismatch vs reference, max|diff|={max_err}"

    print("KERNEL_OK")
</pallas_src>

<mosaic_0001>
module attributes {stable_mosaic.version = 11 : i64} {
  func.func @conv_bias_lrelu_kernel(%arg0: i32, %arg1: memref<592x128xbf16, #tpu.memory_space<vmem>>, %arg2: memref<128x8xbf16, #tpu.memory_space<vmem>>, %arg3: memref<1x8xf32, #tpu.memory_space<vmem>>, %arg4: memref<592x8xbf16, #tpu.memory_space<vmem>>) attributes {dimension_semantics = [#tpu.dimension_semantics<parallel>], iteration_bounds = array<i64: 4>, scalar_prefetch = 0 : i64, scratch_operands = 0 : i64, tpu.core_type = #tpu.core_type<tc>, window_params = [{transform_indices = @transform_0, window_bounds = array<i64: 592, 128>}, {pipeline_mode = #tpu.pipeline_mode<synchronous>, transform_indices = @transform_1, window_bounds = array<i64: 128, 8>}, {pipeline_mode = #tpu.pipeline_mode<synchronous>, transform_indices = @transform_2, window_bounds = array<i64: 1, 8>}, {transform_indices = @transform_3, window_bounds = array<i64: 592, 8>}]} {
    %c0 = arith.constant 0 : index
    %c0_0 = arith.constant 0 : index
    %0 = vector.load %arg1[%c0, %c0_0] : memref<592x128xbf16, #tpu.memory_space<vmem>>, vector<592x128xbf16>
    %c0_1 = arith.constant 0 : index
    %c0_2 = arith.constant 0 : index
    %1 = vector.load %arg2[%c0_1, %c0_2] : memref<128x8xbf16, #tpu.memory_space<vmem>>, vector<128x8xbf16>
    %cst = arith.constant dense<0.000000e+00> : vector<592x8xf32>
    %2 = tpu.matmul %0, %1, %cst {dimension_numbers = #tpu.dot_dimension_numbers<[1], [0], [0], [1], [0, 0, 1, 1], [], []>} : vector<592x128xbf16>, vector<128x8xbf16>, vector<592x8xf32> -> vector<592x8xf32>
    %c0_3 = arith.constant 0 : index
    %c0_4 = arith.constant 0 : index
    %3 = vector.load %arg3[%c0_3, %c0_4] : memref<1x8xf32, #tpu.memory_space<vmem>>, vector<1x8xf32>
    %4 = vector.broadcast %3 : vector<1x8xf32> to vector<592x8xf32>
    %5 = arith.addf %2, %4 : vector<592x8xf32>
    %cst_5 = arith.constant 2.000000e-01 : f32
    %6 = vector.broadcast %cst_5 : f32 to vector<592x8xf32>
    %7 = arith.mulf %6, %5 : vector<592x8xf32>
    %8 = arith.maximumf %5, %7 : vector<592x8xf32>
    %9 = arith.truncf %8 : vector<592x8xf32> to vector<592x8xbf16>
    %c0_6 = arith.constant 0 : index
    %c0_7 = arith.constant 0 : index
    %10 = vector.load %arg4[%c0_6, %c0_7] : memref<592x8xbf16, #tpu.memory_space<vmem>>, vector<592x8xbf16>
    tpu.vector_store %arg4[%c0_6, %c0_7], %9 {strides = array<i32>} : memref<592x8xbf16, #tpu.memory_space<vmem>>, vector<592x8xbf16>,
    return
  }
  func.func @transform_0(%arg0: i32) -> (i32, i32) {
    %c0_i32 = arith.constant 0 : i32
    %c0_i32_0 = arith.constant 0 : i32
    return %arg0, %c0_i32 : i32, i32
  }
  func.func @transform_1(%arg0: i32) -> (i32, i32) {
    %c0_i32 = arith.constant 0 : i32
    %c0_i32_0 = arith.constant 0 : i32
    %c0_i32_1 = arith.constant 0 : i32
    return %c0_i32, %c0_i32_0 : i32, i32
  }
  func.func @transform_2(%arg0: i32) -> (i32, i32) {
    %c0_i32 = arith.constant 0 : i32
    %c0_i32_0 = arith.constant 0 : i32
    %c0_i32_1 = arith.constant 0 : i32
    return %c0_i32, %c0_i32_0 : i32, i32
  }
  func.func @transform_3(%arg0: i32) -> (i32, i32) {
    %c0_i32 = arith.constant 0 : i32
    %c0_i32_0 = arith.constant 0 : i32
    return %arg0, %c0_i32 : i32, i32
  }
}

module attributes {stable_mosaic.version = 11 : i64} {
  func.func @kernel(%arg0: i32, %arg1: memref<304x128xbf16, #tpu.memory_space<vmem>>, %arg2: memref<128x16xbf16, #tpu.memory_space<vmem>>, %arg3: memref<304x16xf32, #tpu.memory_space<vmem>>, %arg4: memref<8x16xf32, #tpu.memory_space<vmem>>) attributes {dimension_semantics = [#tpu.dimension_semantics<parallel>], iteration_bounds = array<i64: 2>, scalar_prefetch = 0 : i64, scratch_operands = 0 : i64, tpu.core_type = #tpu.core_type<tc>, window_params = [{transform_indices = @transform_0, window_bounds = array<i64: 304, 128>}, {pipeline_mode = #tpu.pipeline_mode<synchronous>, transform_indices = @transform_1, window_bounds = array<i64: 128, 16>}, {transform_indices = @transform_2, window_bounds = array<i64: 304, 16>}, {transform_indices = @transform_3, window_bounds = array<i64: 8, 16>}]} {
    %c0 = arith.constant 0 : index
    %c0_0 = arith.constant 0 : index
    %0 = vector.load %arg1[%c0, %c0_0] : memref<304x128xbf16, #tpu.memory_space<vmem>>, vector<304x128xbf16>
    %c0_1 = arith.constant 0 : index
    %c0_2 = arith.constant 0 : index
    %1 = vector.load %arg2[%c0_1, %c0_2] : memref<128x16xbf16, #tpu.memory_space<vmem>>, vector<128x16xbf16>
    %cst = arith.constant dense<0.000000e+00> : vector<304x16xf32>
    %2 = tpu.matmul %0, %1, %cst {dimension_numbers = #tpu.dot_dimension_numbers<[1], [0], [0], [1], [0, 0, 1, 1], [], []>} : vector<304x128xbf16>, vector<128x16xbf16>, vector<304x16xf32> -> vector<304x16xf32>
    %3 = tpu.iota {dimensions = array<i32: 0>} : vector<304x1xi32>
    %c304_i32 = arith.constant 304 : i32
    %4 = arith.muli %arg0, %c304_i32 : i32
    %5 = vector.broadcast %4 : i32 to vector<304x1xi32>
    %6 = arith.addi %3, %5 : vector<304x1xi32>
    %c578_i32 = arith.constant 578 : i32
    %7 = vector.broadcast %c578_i32 : i32 to vector<304x1xi32>
    %8 = arith.cmpi slt, %6, %7 : vector<304x1xi32>
    %cst_3 = arith.constant 0.000000e+00 : f32
    %9 = vector.shape_cast %8 : vector<304x1xi1> to vector<304x1xi1>
    %10 = vector.broadcast %9 : vector<304x1xi1> to vector<304x16xi1>
    %11 = vector.broadcast %cst_3 : f32 to vector<304x16xf32>
    %12 = arith.select %10, %2, %11 : vector<304x16xi1>, vector<304x16xf32>
    %c0_4 = arith.constant 0 : index
    %c0_5 = arith.constant 0 : index
    %13 = vector.load %arg3[%c0_4, %c0_5] : memref<304x16xf32, #tpu.memory_space<vmem>>, vector<304x16xf32>
    tpu.vector_store %arg3[%c0_4, %c0_5], %12 {strides = array<i32>} : memref<304x16xf32, #tpu.memory_space<vmem>>, vector<304x16xf32>,
    %c304_i32_6 = arith.constant 304 : i32
    %14 = arith.muli %arg0, %c304_i32_6 : i32
    %c578_i32_7 = arith.constant 578 : i32
    %15 = arith.subi %c578_i32_7, %14 : i32
    %c304_i32_8 = arith.constant 304 : i32
    %16 = arith.minsi %15, %c304_i32_8 : i32
    %c1_i32 = arith.constant 1 : i32
    %17 = arith.maxsi %16, %c1_i32 : i32
    %18 = arith.sitofp %17 : i32 to f32
    %cst_9 = arith.constant dense<0.000000e+00> : vector<16xf32>
    %19 = vector.multi_reduction <add>, %12, %cst_9 [0] : vector<304x16xf32> to vector<16xf32>
    %20 = vector.shape_cast %19 : vector<16xf32> to vector<1x16xf32>
    %cst_10 = arith.constant 1.000000e+00 : f32
    %21 = arith.divf %cst_10, %18 : f32
    %22 = vector.broadcast %21 : f32 to vector<1x16xf32>
    %23 = arith.mulf %20, %22 : vector<1x16xf32>
    %24 = vector.broadcast %23 : vector<1x16xf32> to vector<304x16xf32>
    %25 = arith.subf %12, %24 : vector<304x16xf32>
    %cst_11 = arith.constant 0.000000e+00 : f32
    %26 = vector.shape_cast %8 : vector<304x1xi1> to vector<304x1xi1>
    %27 = vector.broadcast %26 : vector<304x1xi1> to vector<304x16xi1>
    %28 = vector.broadcast %cst_11 : f32 to vector<304x16xf32>
    %29 = arith.select %27, %25, %28 : vector<304x16xi1>, vector<304x16xf32>
    %30 = arith.mulf %29, %29 : vector<304x16xf32>
    %cst_12 = arith.constant dense<0.000000e+00> : vector<16xf32>
    %31 = vector.multi_reduction <add>, %30, %cst_12 [0] : vector<304x16xf32> to vector<16xf32>
    %32 = vector.shape_cast %31 : vector<16xf32> to vector<1x16xf32>
    %c0_13 = arith.constant 0 : index
    %c0_14 = arith.constant 0 : index
    %33 = vector.load %arg4[%c0_13, %c0_14] : memref<8x16xf32, #tpu.memory_space<vmem>>, vector<1x16xf32>
    tpu.vector_store %arg4[%c0_13, %c0_14], %20 {strides = array<i32>} : memref<8x16xf32, #tpu.memory_space<vmem>>, vector<1x16xf32>,
    %c1 = arith.constant 1 : index
    %c0_15 = arith.constant 0 : index
    %34 = vector.load %arg4[%c1, %c0_15] : memref<8x16xf32, #tpu.memory_space<vmem>>, vector<1x16xf32>
    tpu.vector_store %arg4[%c1, %c0_15], %32 {strides = array<i32>} : memref<8x16xf32, #tpu.memory_space<vmem>>, vector<1x16xf32>,
    return
  }
  func.func @transform_0(%arg0: i32) -> (i32, i32) {
    %c0_i32 = arith.constant 0 : i32
    %c0_i32_0 = arith.constant 0 : i32
    return %arg0, %c0_i32 : i32, i32
  }
  func.func @transform_1(%arg0: i32) -> (i32, i32) {
    %c0_i32 = arith.constant 0 : i32
    %c0_i32_0 = arith.constant 0 : i32
    %c0_i32_1 = arith.constant 0 : i32
    return %c0_i32, %c0_i32_0 : i32, i32
  }
  func.func @transform_2(%arg0: i32) -> (i32, i32) {
    %c0_i32 = arith.constant 0 : i32
    %c0_i32_0 = arith.constant 0 : i32
    return %arg0, %c0_i32 : i32, i32
  }
  func.func @transform_3(%arg0: i32) -> (i32, i32) {
    %c0_i32 = arith.constant 0 : i32
    %c0_i32_0 = arith.constant 0 : i32
    return %arg0, %c0_i32 : i32, i32
  }
}

module attributes {stable_mosaic.version = 11 : i64} {
  func.func @kernel(%arg0: i32, %arg1: memref<128x896xf32, #tpu.memory_space<vmem>>, %arg2: memref<896x128xbf16, #tpu.memory_space<vmem>>, %arg3: memref<1x896xf32, #tpu.memory_space<vmem>>, %arg4: memref<1x896xf32, #tpu.memory_space<vmem>>, %arg5: memref<128x128xf32, #tpu.memory_space<vmem>>, %arg6: memref<8x128xf32, #tpu.memory_space<vmem>>) attributes {dimension_semantics = [#tpu.dimension_semantics<parallel>], iteration_bounds = array<i64: 2>, scalar_prefetch = 0 : i64, scratch_operands = 0 : i64, tpu.core_type = #tpu.core_type<tc>, window_params = [{transform_indices = @transform_0, window_bounds = array<i64: 128, 896>}, {pipeline_mode = #tpu.pipeline_mode<synchronous>, transform_indices = @transform_1, window_bounds = array<i64: 896, 128>}, {pipeline_mode = #tpu.pipeline_mode<synchronous>, transform_indices = @transform_2, window_bounds = array<i64: 1, 896>}, {pipeline_mode = #tpu.pipeline_mode<synchronous>, transform_indices = @transform_3, window_bounds = array<i64: 1, 896>}, {transform_indices = @transform_4, window_bounds = array<i64: 128, 128>}, {transform_indices = @transform_5, window_bounds = array<i64: 8, 128>}]} {
    %c0 = arith.constant 0 : index
    %c0_0 = arith.constant 0 : index
    %0 = vector.load %arg1[%c0, %c0_0] : memref<128x896xf32, #tpu.memory_space<vmem>>, vector<128x896xf32>
    %c0_1 = arith.constant 0 : index
    %c0_2 = arith.constant 0 : index
    %1 = vector.load %arg3[%c0_1, %c0_2] : memref<1x896xf32, #tpu.memory_space<vmem>>, vector<1x896xf32>
    %2 = vector.broadcast %1 : vector<1x896xf32> to vector<128x896xf32>
    %3 = arith.mulf %0, %2 : vector<128x896xf32>
    %c0_3 = arith.constant 0 : index
    %c0_4 = arith.constant 0 : index
    %4 = vector.load %arg4[%c0_3, %c0_4] : memref<1x896xf32, #tpu.memory_space<vmem>>, vector<1x896xf32>
    %5 = vector.broadcast %4 : vector<1x896xf32> to vector<128x896xf32>
    %6 = arith.addf %3, %5 : vector<128x896xf32>
    %cst = arith.constant 2.000000e-01 : f32
    %7 = vector.broadcast %cst : f32 to vector<128x896xf32>
    %8 = arith.mulf %7, %6 : vector<128x896xf32>
    %9 = arith.maximumf %6, %8 : vector<128x896xf32>
    %10 = arith.truncf %9 : vector<128x896xf32> to vector<128x896xbf16>
    %c0_5 = arith.constant 0 : index
    %c0_6 = arith.constant 0 : index
    %11 = vector.load %arg2[%c0_5, %c0_6] : memref<896x128xbf16, #tpu.memory_space<vmem>>, vector<896x128xbf16>
    %cst_7 = arith.constant dense<0.000000e+00> : vector<128x128xf32>
    %12 = tpu.matmul %10, %11, %cst_7 {dimension_numbers = #tpu.dot_dimension_numbers<[1], [0], [0], [1], [0, 0, 1, 1], [], []>} : vector<128x896xbf16>, vector<896x128xbf16>, vector<128x128xf32> -> vector<128x128xf32>
    %13 = tpu.iota {dimensions = array<i32: 0>} : vector<128x1xi32>
    %c128_i32 = arith.constant 128 : i32
    %14 = arith.muli %arg0, %c128_i32 : i32
    %15 = vector.broadcast %14 : i32 to vector<128x1xi32>
    %16 = arith.addi %13, %15 : vector<128x1xi32>
    %c242_i32 = arith.constant 242 : i32
    %17 = vector.broadcast %c242_i32 : i32 to vector<128x1xi32>
    %18 = arith.cmpi slt, %16, %17 : vector<128x1xi32>
    %cst_8 = arith.constant 0.000000e+00 : f32
    %19 = vector.shape_cast %18 : vector<128x1xi1> to vector<128x1xi1>
    %20 = vector.broadcast %19 : vector<128x1xi1> to vector<128x128xi1>
    %21 = vector.broadcast %cst_8 : f32 to vector<128x128xf32>
    %22 = arith.select %20, %12, %21 : vector<128x128xi1>, vector<128x128xf32>
    %c0_9 = arith.constant 0 : index
    %c0_10 = arith.constant 0 : index
    %23 = vector.load %arg5[%c0_9, %c0_10] : memref<128x128xf32, #tpu.memory_space<vmem>>, vector<128x128xf32>
    tpu.vector_store %arg5[%c0_9, %c0_10], %22 {strides = array<i32>} : memref<128x128xf32, #tpu.memory_space<vmem>>, vector<128x128xf32>,
    %c128_i32_11 = arith.constant 128 : i32
    %24 = arith.muli %arg0, %c128_i32_11 : i32
    %c242_i32_12 = arith.constant 242 : i32
    %25 = arith.subi %c242_i32_12, %24 : i32
    %c128_i32_13 = arith.constant 128 : i32
    %26 = arith.minsi %25, %c128_i32_13 : i32
    %c1_i32 = arith.constant 1 : i32
    %27 = arith.maxsi %26, %c1_i32 : i32
    %28 = arith.sitofp %27 : i32 to f32
    %cst_14 = arith.constant dense<0.000000e+00> : vector<128xf32>
    %29 = vector.multi_reduction <add>, %22, %cst_14 [0] : vector<128x128xf32> to vector<128xf32>
    %30 = vector.shape_cast %29 : vector<128xf32> to vector<1x128xf32>
    %cst_15 = arith.constant 1.000000e+00 : f32
    %31 = arith.divf %cst_15, %28 : f32
    %32 = vector.broadcast %31 : f32 to vector<1x128xf32>
    %33 = arith.mulf %30, %32 : vector<1x128xf32>
    %34 = vector.broadcast %33 : vector<1x128xf32> to vector<128x128xf32>
    %35 = arith.subf %22, %34 : vector<128x128xf32>
    %cst_16 = arith.constant 0.000000e+00 : f32
    %36 = vector.shape_cast %18 : vector<128x1xi1> to vector<128x1xi1>
    %37 = vector.broadcast %36 : vector<128x1xi1> to vector<128x128xi1>
    %38 = vector.broadcast %cst_16 : f32 to vector<128x128xf32>
    %39 = arith.select %37, %35, %38 : vector<128x128xi1>, vector<128x128xf32>
    %40 = arith.mulf %39, %39 : vector<128x128xf32>
    %cst_17 = arith.constant dense<0.000000e+00> : vector<128xf32>
    %41 = vector.multi_reduction <add>, %40, %cst_17 [0] : vector<128x128xf32> to vector<128xf32>
    %42 = vector.shape_cast %41 : vector<128xf32> to vector<1x128xf32>
    %c0_18 = arith.constant 0 : index
    %c0_19 = arith.constant 0 : index
    %43 = vector.load %arg6[%c0_18, %c0_19] : memref<8x128xf32, #tpu.memory_space<vmem>>, vector<1x128xf32>
    tpu.vector_store %arg6[%c0_18, %c0_19], %30 {strides = array<i32>} : memref<8x128xf32, #tpu.memory_space<vmem>>, vector<1x128xf32>,
    %c1 = arith.constant 1 : index
    %c0_20 = arith.constant 0 : index
    %44 = vector.load %arg6[%c1, %c0_20] : memref<8x128xf32, #tpu.memory_space<vmem>>, vector<1x128xf32>
    tpu.vector_store %arg6[%c1, %c0_20], %42 {strides = array<i32>} : memref<8x128xf32, #tpu.memory_space<vmem>>, vector<1x128xf32>,
    return
  }
  func.func @transform_0(%arg0: i32) -> (i32, i32) {
    %c0_i32 = arith.constant 0 : i32
    %c0_i32_0 = arith.constant 0 : i32
    return %arg0, %c0_i32 : i32, i32
  }
  func.func @transform_1(%arg0: i32) -> (i32, i32) {
    %c0_i32 = arith.constant 0 : i32
    %c0_i32_0 = arith.constant 0 : i32
    %c0_i32_1 = arith.constant 0 : i32
    return %c0_i32, %c0_i32_0 : i32, i32
  }
  func.func @transform_2(%arg0: i32) -> (i32, i32) {
    %c0_i32 = arith.constant 0 : i32
    %c0_i32_0 = arith.constant 0 : i32
    %c0_i32_1 = arith.constant 0 : i32
    return %c0_i32, %c0_i32_0 : i32, i32
  }
  func.func @transform_3(%arg0: i32) -> (i32, i32) {
    %c0_i32 = arith.constant 0 : i32
    %c0_i32_0 = arith.constant 0 : i32
    %c0_i32_1 = arith.constant 0 : i32
    return %c0_i32, %c0_i32_0 : i32, i32
  }
  func.func @transform_4(%arg0: i32) -> (i32, i32) {
    %c0_i32 = arith.constant 0 : i32
    %c0_i32_0 = arith.constant 0 : i32
    return %arg0, %c0_i32 : i32, i32
  }
  func.func @transform_5(%arg0: i32) -> (i32, i32) {
    %c0_i32 = arith.constant 0 : i32
    %c0_i32_0 = arith.constant 0 : i32
    return %arg0, %c0_i32 : i32, i32
  }
}

module attributes {stable_mosaic.version = 11 : i64} {
  func.func @bn_lrelu_kernel(%arg0: i32, %arg1: memref<128x128xf32, #tpu.memory_space<vmem>>, %arg2: memref<1x128xf32, #tpu.memory_space<vmem>>, %arg3: memref<1x128xf32, #tpu.memory_space<vmem>>, %arg4: memref<128x128xf32, #tpu.memory_space<vmem>>) attributes {dimension_semantics = [#tpu.dimension_semantics<parallel>], iteration_bounds = array<i64: 2>, scalar_prefetch = 0 : i64, scratch_operands = 0 : i64, tpu.core_type = #tpu.core_type<tc>, window_params = [{transform_indices = @transform_0, window_bounds = array<i64: 128, 128>}, {pipeline_mode = #tpu.pipeline_mode<synchronous>, transform_indices = @transform_1, window_bounds = array<i64: 1, 128>}, {pipeline_mode = #tpu.pipeline_mode<synchronous>, transform_indices = @transform_2, window_bounds = array<i64: 1, 128>}, {transform_indices = @transform_3, window_bounds = array<i64: 128, 128>}]} {
    %c0 = arith.constant 0 : index
    %c0_0 = arith.constant 0 : index
    %0 = vector.load %arg1[%c0, %c0_0] : memref<128x128xf32, #tpu.memory_space<vmem>>, vector<128x128xf32>
    %c0_1 = arith.constant 0 : index
    %c0_2 = arith.constant 0 : index
    %1 = vector.load %arg2[%c0_1, %c0_2] : memref<1x128xf32, #tpu.memory_space<vmem>>, vector<1x128xf32>
    %2 = vector.broadcast %1 : vector<1x128xf32> to vector<128x128xf32>
    %3 = arith.mulf %0, %2 : vector<128x128xf32>
    %c0_3 = arith.constant 0 : index
    %c0_4 = arith.constant 0 : index
    %4 = vector.load %arg3[%c0_3, %c0_4] : memref<1x128xf32, #tpu.memory_space<vmem>>, vector<1x128xf32>
    %5 = vector.broadcast %4 : vector<1x128xf32> to vector<128x128xf32>
    %6 = arith.addf %3, %5 : vector<128x128xf32>
    %cst = arith.constant 2.000000e-01 : f32
    %7 = vector.broadcast %cst : f32 to vector<128x128xf32>
    %8 = arith.mulf %7, %6 : vector<128x128xf32>
    %9 = arith.maximumf %6, %8 : vector<128x128xf32>
    %c0_5 = arith.constant 0 : index
    %c0_6 = arith.constant 0 : index
    %10 = vector.load %arg4[%c0_5, %c0_6] : memref<128x128xf32, #tpu.memory_space<vmem>>, vector<128x128xf32>
    tpu.vector_store %arg4[%c0_5, %c0_6], %9 {strides = array<i32>} : memref<128x128xf32, #tpu.memory_space<vmem>>, vector<128x128xf32>,
    return
  }
  func.func @transform_0(%arg0: i32) -> (i32, i32) {
    %c0_i32 = arith.constant 0 : i32
    %c0_i32_0 = arith.constant 0 : i32
    return %arg0, %c0_i32 : i32, i32
  }
  func.func @transform_1(%arg0: i32) -> (i32, i32) {
    %c0_i32 = arith.constant 0 : i32
    %c0_i32_0 = arith.constant 0 : i32
    %c0_i32_1 = arith.constant 0 : i32
    return %c0_i32, %c0_i32_0 : i32, i32
  }
  func.func @transform_2(%arg0: i32) -> (i32, i32) {
    %c0_i32 = arith.constant 0 : i32
    %c0_i32_0 = arith.constant 0 : i32
    %c0_i32_1 = arith.constant 0 : i32
    return %c0_i32, %c0_i32_0 : i32, i32
  }
  func.func @transform_3(%arg0: i32) -> (i32, i32) {
    %c0_i32 = arith.constant 0 : i32
    %c0_i32_0 = arith.constant 0 : i32
    return %arg0, %c0_i32 : i32, i32
  }
}

</mosaic_0001>

<bundles_post_ra>
// kernel: dis_con_layers_forward.4
= control target key start
LH: loop header
LB: loop body
LE: loop exit
PB: predicated region body
PF: predicated region fallthrough
CT: control target
= control target key end

     0   :  { %8 = vsyncpa [#allocation3], 0  ;;  %s2031_s12 = smov 0   ;;  %s2475_s0 = inlined_call_operand.vmem [shape: bf16[2368,128], index: 0, kind: input, shape index: {}]   ;;  %s2476_s1 = inlined_call_operand.vmem [shape: bf16[128,8], index: 1, kind: input, shape index: {}]   ;;  %s2477_s2 = inlined_call_operand.hbm [shape: f32[1,8], index: 2, kind: input, shape index: {}]   ;;  %s2478_s3 = inlined_call_operand.vmem [shape: bf16[2368,8], index: 3, kind: output, shape index: {}]  }
   0x1 LB: > { %s1471_s13 = sadd.s32 4294967295, %s2006_s12   ;;  %p1473_p0 = scmp.ge.s32.totalorder %s2006_s12, 1  ;;  %s2006_s12 = sphi %s2031_s12, %s14_s12  }
   0x2   : > { %p113_p1 = scmp.lt.s32.totalorder %s2006_s12, 5  ;;  %p2045_p3 = scmp.eq.s32.totalorder %s1471_s13, 0 }
   0x3   : > { %s2008_s16 = smov [#allocation2]   ;;  %s1968_s21 = scalar_lea.hbm %s2477_s2, 16 }
   0x4   : > { %p2039_p2 = pnand %p1473_p0, %p113_p1  ;;  %s129_s17 = sshll.u32 %s2008_s16, 4  ;;  %s130_s17 = int_to_ptr.vmem [resolvable:$true] %s129_s17 }
   0x5   : > { %s2483_s15 = scalar_select %p2045_p3, 1, 0 }
   0x6   : > { %s2482_s14 = scalar_select %p2039_p2, 1, 0 }
   0x7   : > { %p1905_p4 = pneg %p2039_p2  ;;  %p1969_p6 = scmp.ne.s32.totalorder %s2477_s2, %s1968_s21 }
   0x8   : > { %p1975_p10 = scmp.lt.u32.totalorder %s1968_s21, %s2477_s2 }
   0x9   : > { %p2053_p5 = pnand %p2045_p3, %p1905_p4 }
   0xb   : > { %p1970_p7 = pneg %p2053_p5 }
   0xd   : > { %p1971_p8 = pnand %p1970_p7, %p1969_p6 }
   0xf   : > { %p1972_p9 = pneg %p1971_p8 }
  0x11   : > { %p1977_p11 = pnand %p1975_p10, %p1972_p9 }
  0x13   : > { %1980 = shalt.err (!%p1977_p11)
}
  0x14   : > { %s1981_s26 = scalar_lea.vmem %s130_s17, 16  ;;  %s1988_s27 = scalar_lea.vmem %s130_s17, 32 }
  0x15   : > { %p1982_p12 = scmp.ne.s32.totalorder %s130_s17, %s1981_s26  ;;  %p1989_p1 = scmp.lt.s32.totalorder %s130_s17, %s130_s17 }
  0x16   : > { %p1990_p4 = scmp.lt.s32.totalorder %s1988_s27, %s1981_s26 }
  0x17   : > { %p1984_p13 = pnand %p1982_p12, %p1970_p7 }
  0x18   : > { %p1991_p3 = por %p1990_p4, %p1989_p1 }
  0x19   : > { %p1985_p0 = pneg %p1984_p13 }
  0x1b   : > { %p1992_p2 = pnand %p1991_p3, %p1985_p0 }
  0x1d   : > { %1995 = shalt.err (!%p1992_p2)
}
  0x1e   : > { %1908 = dma.hbm_to_vmem [thread:$0]  (!%p2053_p5), %s2477_s2, 16, %s130_s17, [#allocation3]  }
  0x1f   : > { %p2485_p6 = scmp.ne.s32.totalorder %s2482_s14, 0 }
  0x20   : > { %p2486_p8 = scmp.ne.s32.totalorder (!%p2485_p6), %s2483_s15, 0 }
  0x21   : > { %151 = sbr.rel (%p2485_p6) target bundleno = 442 (0x1ba), region = 32 }
  0x28   : > { %2001 = dma.done.wait (%p2486_p8), [#allocation3], 16  }
  0x29   : > { %2003 = vsyncadd (%p2486_p8), [#allocation3], 4294967280  ;;  %s175_s30 = smul.u32 74, %s1471_s13  ;;  %v2009_v0 = vmov 0.0   ;;  %vm2010_vm0 = vmmov 0   ;;  %v1922_v1 = vld [vmem:[%s2476_s1] sm:$0xff]  }
  0x2a   : > { %1721 = vmatprep.subr.bf16.mxu0 %v2009_v0  ;;  %1885 = vmatprep.subr.bf16.mxu1 %v2009_v0  ;;  %v1923_v2 = vld [vmem:[%s2476_s1 + $0x8] sm:$0xff]   ;;  %v1924_v3 = vld [vmem:[%s2476_s1 + $0x10] sm:$0xff]   ;;  %v1925_v4 = vld [vmem:[%s2476_s1 + $0x18] sm:$0xff]   ;;  %vm1328_vm1 = vcmask 60416  }
  0x2b   : > { %1737 = vmatprep.mubr.msk.bf16.mxu0 %vm2010_vm0, %v2009_v0  ;;  %1813 = vmatprep.mubr.msk.bf16.mxu1 %vm2010_vm0, %v2009_v0  ;;  %p176_p2 = scmp.lt.s32.totalorder %s175_s30, 295  ;;  %v1926_v5 = vld [vmem:[%s2476_s1 + $0x20] sm:$0xff]   ;;  %v1927_v6 = vld [vmem:[%s2476_s1 + $0x28] sm:$0xff]   ;;  %v1928_v7 = vld [vmem:[%s2476_s1 + $0x30] sm:$0xff]  }
  0x2c   : > { %1722 = vmatpush3.bf16.msra.mxu0 %v1922_v1  ;;  %1893 = vmatpush3.bf16.msra.mxu1 %v1922_v1  ;;  %v1929_v8 = vld [vmem:[%s2476_s1 + $0x38] sm:$0xff]   ;;  %v2242_v46 = vld [vmem:[#allocation2] ss:$0 sm:$0xff] }
  0x2d   : > { %s2488_s30 = smov (!%p176_p2, %s175_s30), 295  ;;  %1723 = vmatprep.subr.bf16.mxu0 %v2009_v0  ;;  %1886 = vmatprep.subr.bf16.mxu1 %v2009_v0 }
  0x2e   : > { %s1478_s8 = sshll.u32 %s2488_s30, 2 }
  0x2f   : > { %s2108_s14 = scalar_lea.vmem %s2475_s0, %s1478_s8  ;;  %s2253_s27 = scalar_lea.vmem %s2478_s3, %s1478_s8 }
  0x30   : > { %1724 = vmatpush3.bf16.msra.mxu0 %v1923_v2  ;;  %1894 = vmatpush3.bf16.msra.mxu1 %v1923_v2  ;;  %v1930_v9 = vld [vmem:[%s2108_s14] sm:$0xff]   ;;  %v1931_v10 = vld [vmem:[%s2108_s14 + $0x98] sm:$0xff]   ;;  %v1932_v11 = vld [vmem:[%s2108_s14 + $0x8] sm:$0xff]  }
  0x31   : > { %1725 = vmatprep.subr.bf16.mxu0 %v2009_v0  ;;  %1887 = vmatprep.subr.bf16.mxu1 %v2009_v0  ;;  %v1933_v12 = vld [vmem:[%s2108_s14 + $0xa0] sm:$0xff]   ;;  %v1934_v13 = vld [vmem:[%s2108_s14 + $0x10] sm:$0xff]   ;;  %v1935_v14 = vld [vmem:[%s2108_s14 + $0xa8] sm:$0xff]  }
  0x32   : > { %v1936_v15 = vld [vmem:[%s2108_s14 + $0x18] sm:$0xff]   ;;  %v1937_v16 = vld [vmem:[%s2108_s14 + $0xb0] sm:$0xff]   ;;  %v1938_v17 = vld [vmem:[%s2108_s14 + $0x20] sm:$0xff]  }
  0x33   : > { %v1939_v18 = vld [vmem:[%s2108_s14 + $0xb8] sm:$0xff]   ;;  %v1940_v19 = vld [vmem:[%s2108_s14 + $0x28] sm:$0xff]   ;;  %v1941_v20 = vld [vmem:[%s2108_s14 + $0xc0] sm:$0xff]  }
  0x34   : > { %1726 = vmatpush3.bf16.msra.mxu0 %v1924_v3  ;;  %1895 = vmatpush3.bf16.msra.mxu1 %v1924_v3  ;;  %v1942_v21 = vld [vmem:[%s2108_s14 + $0x30] sm:$0xff]   ;;  %v1943_v22 = vld [vmem:[%s2108_s14 + $0xc8] sm:$0xff]   ;;  %v1944_v23 = vld [vmem:[%s2108_s14 + $0x38] sm:$0xff]  }
  0x35   : > { %1727 = vmatprep.subr.bf16.mxu0 %v2009_v0  ;;  %1888 = vmatprep.subr.bf16.mxu1 %v2009_v0  ;;  %v1945_v24 = vld [vmem:[%s2108_s14 + $0xd0] sm:$0xff]   ;;  %v1946_v25 = vld [vmem:[%s2108_s14 + $0x40] sm:$0xff]   ;;  %v1947_v26 = vld [vmem:[%s2108_s14 + $0xd8] sm:$0xff]  }
  0x36   : > { %v1948_v27 = vld [vmem:[%s2108_s14 + $0x48] sm:$0xff]   ;;  %v1949_v28 = vld [vmem:[%s2108_s14 + $0xe0] sm:$0xff]   ;;  %v1950_v29 = vld [vmem:[%s2108_s14 + $0x50] sm:$0xff]  }
  0x37   : > { %v1951_v30 = vld [vmem:[%s2108_s14 + $0xe8] sm:$0xff]   ;;  %v1952_v31 = vld [vmem:[%s2108_s14 + $0x58] sm:$0xff]   ;;  %v1953_v32 = vld [vmem:[%s2108_s14 + $0xf0] sm:$0xff]  }
  0x38   : > { %1728 = vmatpush3.bf16.msra.mxu0 %v1925_v4  ;;  %1896 = vmatpush3.bf16.msra.mxu1 %v1925_v4  ;;  %v1954_v33 = vld [vmem:[%s2108_s14 + $0x60] sm:$0xff]   ;;  %v1955_v34 = vld [vmem:[%s2108_s14 + $0xf8] sm:$0xff]   ;;  %v1956_v35 = vld [vmem:[%s2108_s14 + $0x68] sm:$0xff]  }
  0x39   : > { %1729 = vmatprep.subr.bf16.mxu0 %v2009_v0  ;;  %1889 = vmatprep.subr.bf16.mxu1 %v2009_v0  ;;  %v1957_v36 = vld [vmem:[%s2108_s14 + $0x100] sm:$0xff]   ;;  %v1958_v37 = vld [vmem:[%s2108_s14 + $0x70] sm:$0xff]   ;;  %v1959_v38 = vld [vmem:[%s2108_s14 + $0x108] sm:$0xff]  }
  0x3a   : > { %v1960_v39 = vld [vmem:[%s2108_s14 + $0x78] sm:$0xff]   ;;  %v1961_v40 = vld [vmem:[%s2108_s14 + $0x110] sm:$0xff]   ;;  %v1962_v41 = vld [vmem:[%s2108_s14 + $0x80] sm:$0xff]  }
  0x3b   : > { %v1963_v42 = vld [vmem:[%s2108_s14 + $0x118] sm:$0xff]   ;;  %v1964_v43 = vld [vmem:[%s2108_s14 + $0x88] sm:$0xff]   ;;  %v1965_v44 = vld [vmem:[%s2108_s14 + $0x120] sm:$0xff]  }
  0x3c   : > { %1730 = vmatpush3.bf16.msra.mxu0 %v1926_v5  ;;  %1897 = vmatpush3.bf16.msra.mxu1 %v1926_v5  ;;  %v1966_v45 = vld [vmem:[%s2108_s14 + $0x90] sm:$0xff]  }
  0x3d   : > { %1731 = vmatprep.subr.bf16.mxu0 %v2009_v0  ;;  %1890 = vmatprep.subr.bf16.mxu1 %v2009_v0 }
  0x40   : > { %1732 = vmatpush3.bf16.msra.mxu0 %v1927_v6  ;;  %1898 = vmatpush3.bf16.msra.mxu1 %v1927_v6 }
  0x41   : > { %1733 = vmatprep.subr.bf16.mxu0 %v2009_v0  ;;  %1891 = vmatprep.subr.bf16.mxu1 %v2009_v0 }
  0x44   : > { %1734 = vmatpush3.bf16.msra.mxu0 %v1928_v7  ;;  %1899 = vmatpush3.bf16.msra.mxu1 %v1928_v7 }
  0x45   : > { %1735 = vmatprep.subr.bf16.mxu0 %v2009_v0  ;;  %1892 = vmatprep.subr.bf16.mxu1 %v2009_v0 }
  0x48   : > { %1736 = vmatpush3.bf16.msra.mxu0 %v1929_v8  ;;  %1900 = vmatpush3.bf16.msra.mxu1 %v1929_v8 }
  0x4b   : > { %1738 = vmatmul.mubr.bf16.vlgmr.msra.gmra.mrb[0].mxu0 %v1930_v9  ;;  %1814 = vmatmul.mubr.bf16.vlgmr.msra.gmra.mrb[0].mxu1 %v1931_v10 }
  0x4c   : > { %1741 = vmatprep.mubr.msk.bf16.mxu0 %vm2010_vm0, %v2009_v0  ;;  %1817 = vmatprep.mubr.msk.bf16.mxu1 %vm2010_vm0, %v2009_v0 }
  0x53   : > { %1742 = vmatmul.mubr.bf16.gmra.mrb[4].mxu0 %v1932_v11  ;;  %1818 = vmatmul.mubr.bf16.gmra.mrb[4].mxu1 %v1933_v12 }
  0x54   : > { %1745 = vmatprep.mubr.msk.bf16.mxu0 %vm2010_vm0, %v2009_v0  ;;  %1821 = vmatprep.mubr.msk.bf16.mxu1 %vm2010_vm0, %v2009_v0 }
  0x5b   : > { %1746 = vmatmul.mubr.bf16.gmra.mrb[8].mxu0 %v1934_v13  ;;  %1822 = vmatmul.mubr.bf16.gmra.mrb[8].mxu1 %v1935_v14 }
  0x5c   : > { %1749 = vmatprep.mubr.msk.bf16.mxu0 %vm2010_vm0, %v2009_v0  ;;  %1825 = vmatprep.mubr.msk.bf16.mxu1 %vm2010_vm0, %v2009_v0 }
  0x63   : > { %1750 = vmatmul.mubr.bf16.gmra.mrb[12].mxu0 %v1936_v15  ;;  %1826 = vmatmul.mubr.bf16.gmra.mrb[12].mxu1 %v1937_v16 }
  0x64   : > { %1753 = vmatprep.mubr.msk.bf16.mxu0 %vm2010_vm0, %v2009_v0  ;;  %1829 = vmatprep.mubr.msk.bf16.mxu1 %vm2010_vm0, %v2009_v0 }
  0x6b   : > { %1754 = vmatmul.mubr.bf16.gmra.mrb[16].mxu0 %v1938_v17  ;;  %1830 = vmatmul.mubr.bf16.gmra.mrb[16].mxu1 %v1939_v18 }
  0x6c   : > { %1757 = vmatprep.mubr.msk.bf16.mxu0 %vm2010_vm0, %v2009_v0  ;;  %1833 = vmatprep.mubr.msk.bf16.mxu1 %vm2010_vm0, %v2009_v0 }
  0x73   : > { %1758 = vmatmul.mubr.bf16.gmra.mrb[20].mxu0 %v1940_v19  ;;  %1834 = vmatmul.mubr.bf16.gmra.mrb[20].mxu1 %v1941_v20 }
  0x74   : > { %1761 = vmatprep.mubr.msk.bf16.mxu0 %vm2010_vm0, %v2009_v0  ;;  %1837 = vmatprep.mubr.msk.bf16.mxu1 %vm2010_vm0, %v2009_v0 }
  0x7b   : > { %1762 = vmatmul.mubr.bf16.gmra.mrb[24].mxu0 %v1942_v21  ;;  %1838 = vmatmul.mubr.bf16.gmra.mrb[24].mxu1 %v1943_v22 }
  0x7c   : > { %1765 = vmatprep.mubr.msk.bf16.mxu0 %vm2010_vm0, %v2009_v0  ;;  %1841 = vmatprep.mubr.msk.bf16.mxu1 %vm2010_vm0, %v2009_v0 }
  0x83   : > { %1766 = vmatmul.mubr.bf16.gmra.mrb[28].mxu0 %v1944_v23  ;;  %1842 = vmatmul.mubr.bf16.gmra.mrb[28].mxu1 %v1945_v24 }
  0x84   : > { %1769 = vmatprep.mubr.msk.bf16.mxu0 %vm2010_vm0, %v2009_v0  ;;  %1845 = vmatprep.mubr.msk.bf16.mxu1 %vm2010_vm0, %v2009_v0 }
  0x8b   : > { %1770 = vmatmul.mubr.bf16.gmra.mrb[32].mxu0 %v1946_v25  ;;  %1846 = vmatmul.mubr.bf16.gmra.mrb[32].mxu1 %v1947_v26 }
  0x8c   : > { %1773 = vmatprep.mubr.msk.bf16.mxu0 %vm2010_vm0, %v2009_v0  ;;  %1849 = vmatprep.mubr.msk.bf16.mxu1 %vm2010_vm0, %v2009_v0 }
  0x93   : > { %1774 = vmatmul.mubr.bf16.gmra.mrb[36].mxu0 %v1948_v27  ;;  %1850 = vmatmul.mubr.bf16.gmra.mrb[36].mxu1 %v1949_v28 }
  0x94   : > { %1777 = vmatprep.mubr.msk.bf16.mxu0 %vm2010_vm0, %v2009_v0  ;;  %1853 = vmatprep.mubr.msk.bf16.mxu1 %vm2010_vm0, %v2009_v0 }
  0x9b   : > { %1778 = vmatmul.mubr.bf16.gmra.mrb[40].mxu0 %v1950_v29  ;;  %1854 = vmatmul.mubr.bf16.gmra.mrb[40].mxu1 %v1951_v30 }
  0x9c   : > { %1781 = vmatprep.mubr.msk.bf16.mxu0 %vm2010_vm0, %v2009_v0  ;;  %1857 = vmatprep.mubr.msk.bf16.mxu1 %vm2010_vm0, %v2009_v0 }
  0xa3   : > { %1782 = vmatmul.mubr.bf16.gmra.mrb[44].mxu0 %v1952_v31  ;;  %1858 = vmatmul.mubr.bf16.gmra.mrb[44].mxu1 %v1953_v32 }
  0xa4   : > { %1785 = vmatprep.mubr.msk.bf16.mxu0 %vm2010_vm0, %v2009_v0  ;;  %1861 = vmatprep.mubr.msk.bf16.mxu1 %vm2010_vm0, %v2009_v0 }
  0xab   : > { %1786 = vmatmul.mubr.bf16.gmra.mrb[48].mxu0 %v1954_v33  ;;  %1862 = vmatmul.mubr.bf16.gmra.mrb[48].mxu1 %v1955_v34 }
  0xac   : > { %1789 = vmatprep.mubr.msk.bf16.mxu0 %vm2010_vm0, %v2009_v0  ;;  %1865 = vmatprep.mubr.msk.bf16.mxu1 %vm2010_vm0, %v2009_v0 }
  0xb3   : > { %1790 = vmatmul.mubr.bf16.gmra.mrb[52].mxu0 %v1956_v35  ;;  %1866 = vmatmul.mubr.bf16.gmra.mrb[52].mxu1 %v1957_v36 }
  0xb4   : > { %1793 = vmatprep.mubr.msk.bf16.mxu0 %vm2010_vm0, %v2009_v0  ;;  %1869 = vmatprep.mubr.msk.bf16.mxu1 %vm2010_vm0, %v2009_v0 }
  0xbb   : > { %1794 = vmatmul.mubr.bf16.gmra.mrb[56].mxu0 %v1958_v37  ;;  %1870 = vmatmul.mubr.bf16.gmra.mrb[56].mxu1 %v1959_v38 }
  0xbc   : > { %1797 = vmatprep.mubr.msk.bf16.mxu0 %vm2010_vm0, %v2009_v0  ;;  %1873 = vmatprep.mubr.msk.bf16.mxu1 %vm2010_vm0, %v2009_v0 }
  0xc3   : > { %1798 = vmatmul.mubr.bf16.gmra.mrb[60].mxu0 %v1960_v39  ;;  %1874 = vmatmul.mubr.bf16.gmra.mrb[60].mxu1 %v1961_v40 }
  0xc4   : > { %1801 = vmatprep.mubr.msk.bf16.mxu0 %vm2010_vm0, %v2009_v0  ;;  %1877 = vmatprep.mubr.msk.bf16.mxu1 %vm2010_vm0, %v2009_v0 }
  0xcb   : > { %1802 = vmatmul.mubr.bf16.gmra.mrb[64].mxu0 %v1962_v41  ;;  %1878 = vmatmul.mubr.bf16.gmra.mrb[64].mxu1 %v1963_v42 }
  0xcc   : > { %1805 = vmatprep.mubr.msk.bf16.mxu0 %vm2010_vm0, %v2009_v0  ;;  %1881 = vmatprep.mubr.msk.bf16.mxu1 %vm2010_vm0, %v2009_v0 }
  0xd3   : > { %1806 = vmatmul.mubr.bf16.gmra.mrb[68].mxu0 %v1964_v43  ;;  %1882 = vmatmul.mubr.bf16.gmra.mrb[68].mxu1 %v1965_v44 }
  0xd4   : > { %1809 = vmatprep.mubr.msk.bf16.mxu0 %vm2010_vm0, %v2009_v0 }
  0xdb   : > { %1810 = vmatmul.mubr.bf16.gmra.mrb[72].mxu0 %v1966_v45 }
 0x11e   : > { %v589_v47 = vpop.f32.mrb[0].mxu0  ;;  %v741_v48 = vpop.f32.mrb[0].mxu1 }
 0x11f   : > { %v590_v49 = vadd.f32 %v2242_v46, %v589_v47  ;;  %v1739_v50 = vpop.f32.mrb[1].mxu0  ;;  %v742_v51 = vadd.f32 %v2242_v46, %v741_v48  ;;  %v1815_v52 = vpop.f32.mrb[1].mxu1 }
 0x120   : > { %v592_v53 = vpop.f32.mrb[2].mxu0  ;;  %v744_v54 = vpop.f32.mrb[2].mxu1 }
 0x121   : > { %v884_v55 = vmul.f32 0.2, %v590_v49  ;;  %v593_v56 = vadd.f32 %v2242_v46, %v592_v53  ;;  %v1740_v57 = vpop.f32.mrb[3].mxu0  ;;  %v922_v58 = vmul.f32 0.2, %v742_v51  ;;  %v745_v59 = vadd.f32 %v2242_v46, %v744_v54  ;;  %v1816_v60 = vpop.f32.mrb[3].mxu1 }
 0x123   : > { %v958_v61 = vmax.f32 %v590_v49, %v884_v55  ;;  %v885_v62 = vmul.f32 0.2, %v593_v56  ;;  %v996_v63 = vmax.f32 %v742_v51, %v922_v58  ;;  %v923_v0 = vmul.f32 0.2, %v745_v59 }
 0x125   : > { %v1602_v1 = vpack.c.bf16 %v958_v61, %v958_v61  ;;  %v959_v2 = vmax.f32 %v593_v56, %v885_v62  ;;  %v1640_v3 = vpack.c.bf16 %v996_v63, %v996_v63  ;;  %v997_v4 = vmax.f32 %v745_v59, %v923_v0 }
 0x126   : > { %v597_v5 = vpop.f32.mrb[4].mxu0  ;;  %v749_v6 = vpop.f32.mrb[4].mxu1 }
 0x127   : > { %1329 = vst.msk [vmem:[%s2253_s27] sm:$0xf] %vm1328_vm1, %v1602_v1  ;;  %v1603_v7 = vpack.c.bf16 %v959_v2, %v959_v2  ;;  %1367 = vst.msk [vmem:[%s2253_s27 + $0x98] sm:$0xf] %vm1328_vm1, %v1640_v3  ;;  %v1641_v8 = vpack.c.bf16 %v997_v4, %v997_v4  ;;  %v598_v9 = vadd.f32 %v2242_v46, %v597_v5  ;;  %v1743_v10 = vpop.f32.mrb[5].mxu0  ;;  %v1819_v12 = vpop.f32.mrb[5].mxu1 }
 0x128   : > { %v750_v11 = vadd.f32 %v2242_v46, %v749_v6  ;;  %v600_v13 = vpop.f32.mrb[6].mxu0  ;;  %v752_v14 = vpop.f32.mrb[6].mxu1 }
 0x129   : > { %1330 = vst.msk [vmem:[%s2253_s27 + $0x4] sm:$0xf] %vm1328_vm1, %v1603_v7  ;;  %1368 = vst.msk [vmem:[%s2253_s27 + $0x9c] sm:$0xf] %vm1328_vm1, %v1641_v8  ;;  %v886_v15 = vmul.f32 0.2, %v598_v9  ;;  %v601_v16 = vadd.f32 %v2242_v46, %v600_v13  ;;  %v753_v19 = vadd.f32 %v2242_v46, %v752_v14 }
 0x12a   : > { %v1744_v17 = vpop.f32.mrb[7].mxu0  ;;  %v924_v18 = vmul.f32 0.2, %v750_v11  ;;  %v1820_v20 = vpop.f32.mrb[7].mxu1 }
 0x12b   : > { %v960_v21 = vmax.f32 %v598_v9, %v886_v15  ;;  %v887_v22 = vmul.f32 0.2, %v601_v16  ;;  %v925_v24 = vmul.f32 0.2, %v753_v19 }
 0x12c   : > { %v998_v23 = vmax.f32 %v750_v11, %v924_v18 }
 0x12d   : > { %v1604_v25 = vpack.c.bf16 %v960_v21, %v960_v21  ;;  %v961_v26 = vmax.f32 %v601_v16, %v887_v22  ;;  %v999_v28 = vmax.f32 %v753_v19, %v925_v24 }
 0x12e   : > { %v1642_v27 = vpack.c.bf16 %v998_v23, %v998_v23  ;;  %v605_v29 = vpop.f32.mrb[8].mxu0  ;;  %v757_v30 = vpop.f32.mrb[8].mxu1 }
 0x12f   : > { %1331 = vst.msk [vmem:[%s2253_s27 + $0x8] sm:$0xf] %vm1328_vm1, %v1604_v25  ;;  %v1605_v31 = vpack.c.bf16 %v961_v26, %v961_v26  ;;  %v1643_v32 = vpack.c.bf16 %v999_v28, %v999_v28  ;;  %v606_v33 = vadd.f32 %v2242_v46, %v605_v29  ;;  %v1747_v34 = vpop.f32.mrb[9].mxu0  ;;  %v758_v35 = vadd.f32 %v2242_v46, %v757_v30  ;;  %v1823_v36 = vpop.f32.mrb[9].mxu1 }
 0x130   : > { %1369 = vst.msk [vmem:[%s2253_s27 + $0xa0] sm:$0xf] %vm1328_vm1, %v1642_v27  ;;  %v608_v37 = vpop.f32.mrb[10].mxu0  ;;  %v760_v38 = vpop.f32.mrb[10].mxu1 }
 0x131   : > { %1332 = vst.msk [vmem:[%s2253_s27 + $0xc] sm:$0xf] %vm1328_vm1, %v1605_v31  ;;  %1370 = vst.msk [vmem:[%s2253_s27 + $0xa4] sm:$0xf] %vm1328_vm1, %v1643_v32  ;;  %v888_v39 = vmul.f32 0.2, %v606_v33  ;;  %v609_v40 = vadd.f32 %v2242_v46, %v608_v37  ;;  %v761_v43 = vadd.f32 %v2242_v46, %v760_v38 }
 0x132   : > { %v1748_v41 = vpop.f32.mrb[11].mxu0  ;;  %v926_v42 = vmul.f32 0.2, %v758_v35  ;;  %v1824_v44 = vpop.f32.mrb[11].mxu1 }
 0x133   : > { %v962_v45 = vmax.f32 %v606_v33, %v888_v39  ;;  %v889_v47 = vmul.f32 0.2, %v609_v40  ;;  %v927_v49 = vmul.f32 0.2, %v761_v43 }
 0x134   : > { %v1000_v48 = vmax.f32 %v758_v35, %v926_v42 }
 0x135   : > { %v1606_v50 = vpack.c.bf16 %v962_v45, %v962_v45  ;;  %v963_v51 = vmax.f32 %v609_v40, %v889_v47  ;;  %v1001_v53 = vmax.f32 %v761_v43, %v927_v49 }
 0x136   : > { %v1644_v52 = vpack.c.bf16 %v1000_v48, %v1000_v48  ;;  %v613_v54 = vpop.f32.mrb[12].mxu0  ;;  %v765_v55 = vpop.f32.mrb[12].mxu1 }
 0x137   : > { %1333 = vst.msk [vmem:[%s2253_s27 + $0x10] sm:$0xf] %vm1328_vm1, %v1606_v50  ;;  %v1607_v56 = vpack.c.bf16 %v963_v51, %v963_v51  ;;  %v1645_v57 = vpack.c.bf16 %v1001_v53, %v1001_v53  ;;  %v614_v58 = vadd.f32 %v2242_v46, %v613_v54  ;;  %v1751_v59 = vpop.f32.mrb[13].mxu0  ;;  %v766_v60 = vadd.f32 %v2242_v46, %v765_v55  ;;  %v1827_v61 = vpop.f32.mrb[13].mxu1 }
 0x138   : > { %1371 = vst.msk [vmem:[%s2253_s27 + $0xa8] sm:$0xf] %vm1328_vm1, %v1644_v52  ;;  %v616_v62 = vpop.f32.mrb[14].mxu0  ;;  %v768_v63 = vpop.f32.mrb[14].mxu1 }
 0x139   : > { %1334 = vst.msk [vmem:[%s2253_s27 + $0x14] sm:$0xf] %vm1328_vm1, %v1607_v56  ;;  %1372 = vst.msk [vmem:[%s2253_s27 + $0xac] sm:$0xf] %vm1328_vm1, %v1645_v57  ;;  %v890_v0 = vmul.f32 0.2, %v614_v58  ;;  %v617_v1 = vadd.f32 %v2242_v46, %v616_v62  ;;  %v769_v4 = vadd.f32 %v2242_v46, %v768_v63 }
 0x13a   : > { %v1752_v2 = vpop.f32.mrb[15].mxu0  ;;  %v928_v3 = vmul.f32 0.2, %v766_v60  ;;  %v1828_v5 = vpop.f32.mrb[15].mxu1 }
 0x13b   : > { %v964_v6 = vmax.f32 %v614_v58, %v890_v0  ;;  %v891_v7 = vmul.f32 0.2, %v617_v1  ;;  %v929_v9 = vmul.f32 0.2, %v769_v4 }
 0x13c   : > { %v1002_v8 = vmax.f32 %v766_v60, %v928_v3 }
 0x13d   : > { %v1608_v10 = vpack.c.bf16 %v964_v6, %v964_v6  ;;  %v965_v11 = vmax.f32 %v617_v1, %v891_v7  ;;  %v1003_v13 = vmax.f32 %v769_v4, %v929_v9 }
 0x13e   : > { %v1646_v12 = vpack.c.bf16 %v1002_v8, %v1002_v8  ;;  %v621_v14 = vpop.f32.mrb[16].mxu0  ;;  %v773_v15 = vpop.f32.mrb[16].mxu1 }
 0x13f   : > { %1335 = vst.msk [vmem:[%s2253_s27 + $0x18] sm:$0xf] %vm1328_vm1, %v1608_v10  ;;  %v1609_v16 = vpack.c.bf16 %v965_v11, %v965_v11  ;;  %v1647_v17 = vpack.c.bf16 %v1003_v13, %v1003_v13  ;;  %v622_v18 = vadd.f32 %v2242_v46, %v621_v14  ;;  %v1755_v19 = vpop.f32.mrb[17].mxu0  ;;  %v774_v20 = vadd.f32 %v2242_v46, %v773_v15  ;;  %v1831_v21 = vpop.f32.mrb[17].mxu1 }
 0x140   : > { %1373 = vst.msk [vmem:[%s2253_s27 + $0xb0] sm:$0xf] %vm1328_vm1, %v1646_v12  ;;  %v624_v22 = vpop.f32.mrb[18].mxu0  ;;  %v776_v23 = vpop.f32.mrb[18].mxu1 }
 0x141   : > { %1336 = vst.msk [vmem:[%s2253_s27 + $0x1c] sm:$0xf] %vm1328_vm1, %v1609_v16  ;;  %1374 = vst.msk [vmem:[%s2253_s27 + $0xb4] sm:$0xf] %vm1328_vm1, %v1647_v17  ;;  %v892_v24 = vmul.f32 0.2, %v622_v18  ;;  %v625_v25 = vadd.f32 %v2242_v46, %v624_v22  ;;  %v777_v28 = vadd.f32 %v2242_v46, %v776_v23 }
 0x142   : > { %v1756_v26 = vpop.f32.mrb[19].mxu0  ;;  %v930_v27 = vmul.f32 0.2, %v774_v20  ;;  %v1832_v29 = vpop.f32.mrb[19].mxu1 }
 0x143   : > { %v966_v30 = vmax.f32 %v622_v18, %v892_v24  ;;  %v893_v31 = vmul.f32 0.2, %v625_v25  ;;  %v931_v33 = vmul.f32 0.2, %v777_v28 }
 0x144   : > { %v1004_v32 = vmax.f32 %v774_v20, %v930_v27 }
 0x145   : > { %v1610_v34 = vpack.c.bf16 %v966_v30, %v966_v30  ;;  %v967_v35 = vmax.f32 %v625_v25, %v893_v31  ;;  %v1005_v37 = vmax.f32 %v777_v28, %v931_v33 }
 0x146   : > { %v1648_v36 = vpack.c.bf16 %v1004_v32, %v1004_v32  ;;  %v629_v38 = vpop.f32.mrb[20].mxu0  ;;  %v781_v39 = vpop.f32.mrb[20].mxu1 }
 0x147   : > { %1337 = vst.msk [vmem:[%s2253_s27 + $0x20] sm:$0xf] %vm1328_vm1, %v1610_v34  ;;  %v1611_v40 = vpack.c.bf16 %v967_v35, %v967_v35  ;;  %v1649_v41 = vpack.c.bf16 %v1005_v37, %v1005_v37  ;;  %v630_v42 = vadd.f32 %v2242_v46, %v629_v38  ;;  %v1759_v43 = vpop.f32.mrb[21].mxu0  ;;  %v782_v44 = vadd.f32 %v2242_v46, %v781_v39  ;;  %v1835_v45 = vpop.f32.mrb[21].mxu1 }
 0x148   : > { %1375 = vst.msk [vmem:[%s2253_s27 + $0xb8] sm:$0xf] %vm1328_vm1, %v1648_v36  ;;  %v632_v47 = vpop.f32.mrb[22].mxu0  ;;  %v784_v48 = vpop.f32.mrb[22].mxu1 }
 0x149   : > { %1338 = vst.msk [vmem:[%s2253_s27 + $0x24] sm:$0xf] %vm1328_vm1, %v1611_v40  ;;  %1376 = vst.msk [vmem:[%s2253_s27 + $0xbc] sm:$0xf] %vm1328_vm1, %v1649_v41  ;;  %v894_v49 = vmul.f32 0.2, %v630_v42  ;;  %v633_v50 = vadd.f32 %v2242_v46, %v632_v47  ;;  %v785_v53 = vadd.f32 %v2242_v46, %v784_v48 }
 0x14a   : > { %v1760_v51 = vpop.f32.mrb[23].mxu0  ;;  %v932_v52 = vmul.f32 0.2, %v782_v44  ;;  %v1836_v54 = vpop.f32.mrb[23].mxu1 }
 0x14b   : > { %v968_v55 = vmax.f32 %v630_v42, %v894_v49  ;;  %v895_v56 = vmul.f32 0.2, %v633_v50  ;;  %v933_v58 = vmul.f32 0.2, %v785_v53 }
 0x14c   : > { %v1006_v57 = vmax.f32 %v782_v44, %v932_v52 }
 0x14d   : > { %v1612_v59 = vpack.c.bf16 %v968_v55, %v968_v55  ;;  %v969_v60 = vmax.f32 %v633_v50, %v895_v56  ;;  %v1007_v62 = vmax.f32 %v785_v53, %v933_v58 }
 0x14e   : > { %v1650_v61 = vpack.c.bf16 %v1006_v57, %v1006_v57  ;;  %v637_v63 = vpop.f32.mrb[24].mxu0  ;;  %v789_v0 = vpop.f32.mrb[24].mxu1 }
 0x14f   : > { %1339 = vst.msk [vmem:[%s2253_s27 + $0x28] sm:$0xf] %vm1328_vm1, %v1612_v59  ;;  %v1613_v1 = vpack.c.bf16 %v969_v60, %v969_v60  ;;  %v1651_v2 = vpack.c.bf16 %v1007_v62, %v1007_v62  ;;  %v638_v3 = vadd.f32 %v2242_v46, %v637_v63  ;;  %v1763_v4 = vpop.f32.mrb[25].mxu0  ;;  %v790_v5 = vadd.f32 %v2242_v46, %v789_v0  ;;  %v1839_v6 = vpop.f32.mrb[25].mxu1 }
 0x150   : > { %1377 = vst.msk [vmem:[%s2253_s27 + $0xc0] sm:$0xf] %vm1328_vm1, %v1650_v61  ;;  %v640_v7 = vpop.f32.mrb[26].mxu0  ;;  %v792_v8 = vpop.f32.mrb[26].mxu1 }
 0x151   : > { %1340 = vst.msk [vmem:[%s2253_s27 + $0x2c] sm:$0xf] %vm1328_vm1, %v1613_v1  ;;  %1378 = vst.msk [vmem:[%s2253_s27 + $0xc4] sm:$0xf] %vm1328_vm1, %v1651_v2  ;;  %v896_v9 = vmul.f32 0.2, %v638_v3  ;;  %v641_v10 = vadd.f32 %v2242_v46, %v640_v7  ;;  %v793_v13 = vadd.f32 %v2242_v46, %v792_v8 }
 0x152   : > { %v1764_v11 = vpop.f32.mrb[27].mxu0  ;;  %v934_v12 = vmul.f32 0.2, %v790_v5  ;;  %v1840_v14 = vpop.f32.mrb[27].mxu1 }
 0x153   : > { %v970_v15 = vmax.f32 %v638_v3, %v896_v9  ;;  %v897_v16 = vmul.f32 0.2, %v641_v10  ;;  %v935_v18 = vmul.f32 0.2, %v793_v13 }
 0x154   : > { %v1008_v17 = vmax.f32 %v790_v5, %v934_v12 }
 0x155   : > { %v1614_v19 = vpack.c.bf16 %v970_v15, %v970_v15  ;;  %v971_v20 = vmax.f32 %v641_v10, %v897_v16  ;;  %v1009_v22 = vmax.f32 %v793_v13, %v935_v18 }
 0x156   : > { %v1652_v21 = vpack.c.bf16 %v1008_v17, %v1008_v17  ;;  %v645_v23 = vpop.f32.mrb[28].mxu0  ;;  %v797_v24 = vpop.f32.mrb[28].mxu1 }
 0x157   : > { %1341 = vst.msk [vmem:[%s2253_s27 + $0x30] sm:$0xf] %vm1328_vm1, %v1614_v19  ;;  %v1615_v25 = vpack.c.bf16 %v971_v20, %v971_v20  ;;  %v1653_v26 = vpack.c.bf16 %v1009_v22, %v1009_v22  ;;  %v646_v27 = vadd.f32 %v2242_v46, %v645_v23  ;;  %v1767_v28 = vpop.f32.mrb[29].mxu0  ;;  %v798_v29 = vadd.f32 %v2242_v46, %v797_v24  ;;  %v1843_v30 = vpop.f32.mrb[29].mxu1 }
 0x158   : > { %1379 = vst.msk [vmem:[%s2253_s27 + $0xc8] sm:$0xf] %vm1328_vm1, %v1652_v21  ;;  %v648_v31 = vpop.f32.mrb[30].mxu0  ;;  %v800_v32 = vpop.f32.mrb[30].mxu1 }
 0x159   : > { %1342 = vst.msk [vmem:[%s2253_s27 + $0x34] sm:$0xf] %vm1328_vm1, %v1615_v25  ;;  %1380 = vst.msk [vmem:[%s2253_s27 + $0xcc] sm:$0xf] %vm1328_vm1, %v1653_v26  ;;  %v898_v33 = vmul.f32 0.2, %v646_v27  ;;  %v649_v34 = vadd.f32 %v2242_v46, %v648_v31  ;;  %v801_v37 = vadd.f32 %v2242_v46, %v800_v32 }
 0x15a   : > { %v1768_v35 = vpop.f32.mrb[31].mxu0  ;;  %v936_v36 = vmul.f32 0.2, %v798_v29  ;;  %v1844_v38 = vpop.f32.mrb[31].mxu1 }
 0x15b   : > { %v972_v39 = vmax.f32 %v646_v27, %v898_v33  ;;  %v899_v40 = vmul.f32 0.2, %v649_v34  ;;  %v937_v42 = vmul.f32 0.2, %v801_v37 }
 0x15c   : > { %v1010_v41 = vmax.f32 %v798_v29, %v936_v36 }
 0x15d   : > { %v1616_v43 = vpack.c.bf16 %v972_v39, %v972_v39  ;;  %v973_v44 = vmax.f32 %v649_v34, %v899_v40  ;;  %v1011_v47 = vmax.f32 %v801_v37, %v937_v42 }
 0x15e   : > { %v1654_v45 = vpack.c.bf16 %v1010_v41, %v1010_v41  ;;  %v653_v48 = vpop.f32.mrb[32].mxu0  ;;  %v805_v49 = vpop.f32.mrb[32].mxu1 }
 0x15f   : > { %1343 = vst.msk [vmem:[%s2253_s27 + $0x38] sm:$0xf] %vm1328_vm1, %v1616_v43  ;;  %v1617_v50 = vpack.c.bf16 %v973_v44, %v973_v44  ;;  %v1655_v51 = vpack.c.bf16 %v1011_v47, %v1011_v47  ;;  %v654_v52 = vadd.f32 %v2242_v46, %v653_v48  ;;  %v1771_v53 = vpop.f32.mrb[33].mxu0  ;;  %v806_v54 = vadd.f32 %v2242_v46, %v805_v49  ;;  %v1847_v55 = vpop.f32.mrb[33].mxu1 }
 0x160   : > { %1381 = vst.msk [vmem:[%s2253_s27 + $0xd0] sm:$0xf] %vm1328_vm1, %v1654_v45  ;;  %v656_v56 = vpop.f32.mrb[34].mxu0  ;;  %v808_v57 = vpop.f32.mrb[34].mxu1 }
 0x161   : > { %1344 = vst.msk [vmem:[%s2253_s27 + $0x3c] sm:$0xf] %vm1328_vm1, %v1617_v50  ;;  %1382 = vst.msk [vmem:[%s2253_s27 + $0xd4] sm:$0xf] %vm1328_vm1, %v1655_v51  ;;  %v900_v58 = vmul.f32 0.2, %v654_v52  ;;  %v657_v59 = vadd.f32 %v2242_v46, %v656_v56  ;;  %v809_v62 = vadd.f32 %v2242_v46, %v808_v57 }
 0x162   : > { %v1772_v60 = vpop.f32.mrb[35].mxu0  ;;  %v938_v61 = vmul.f32 0.2, %v806_v54  ;;  %v1848_v63 = vpop.f32.mrb[35].mxu1 }
 0x163   : > { %v974_v0 = vmax.f32 %v654_v52, %v900_v58  ;;  %v901_v1 = vmul.f32 0.2, %v657_v59  ;;  %v939_v3 = vmul.f32 0.2, %v809_v62 }
 0x164   : > { %v1012_v2 = vmax.f32 %v806_v54, %v938_v61 }
 0x165   : > { %v1618_v4 = vpack.c.bf16 %v974_v0, %v974_v0  ;;  %v975_v5 = vmax.f32 %v657_v59, %v901_v1  ;;  %v1013_v7 = vmax.f32 %v809_v62, %v939_v3 }
 0x166   : > { %v1656_v6 = vpack.c.bf16 %v1012_v2, %v1012_v2  ;;  %v661_v8 = vpop.f32.mrb[36].mxu0  ;;  %v813_v9 = vpop.f32.mrb[36].mxu1 }
 0x167   : > { %1345 = vst.msk [vmem:[%s2253_s27 + $0x40] sm:$0xf] %vm1328_vm1, %v1618_v4  ;;  %v1619_v10 = vpack.c.bf16 %v975_v5, %v975_v5  ;;  %v1657_v11 = vpack.c.bf16 %v1013_v7, %v1013_v7  ;;  %v662_v12 = vadd.f32 %v2242_v46, %v661_v8  ;;  %v1775_v13 = vpop.f32.mrb[37].mxu0  ;;  %v814_v14 = vadd.f32 %v2242_v46, %v813_v9  ;;  %v1851_v15 = vpop.f32.mrb[37].mxu1 }
 0x168   : > { %1383 = vst.msk [vmem:[%s2253_s27 + $0xd8] sm:$0xf] %vm1328_vm1, %v1656_v6  ;;  %v664_v16 = vpop.f32.mrb[38].mxu0  ;;  %v816_v17 = vpop.f32.mrb[38].mxu1 }
 0x169   : > { %1346 = vst.msk [vmem:[%s2253_s27 + $0x44] sm:$0xf] %vm1328_vm1, %v1619_v10  ;;  %1384 = vst.msk [vmem:[%s2253_s27 + $0xdc] sm:$0xf] %vm1328_vm1, %v1657_v11  ;;  %v902_v18 = vmul.f32 0.2, %v662_v12  ;;  %v665_v19 = vadd.f32 %v2242_v46, %v664_v16  ;;  %v817_v22 = vadd.f32 %v2242_v46, %v816_v17 }
 0x16a   : > { %v1776_v20 = vpop.f32.mrb[39].mxu0  ;;  %v940_v21 = vmul.f32 0.2, %v814_v14  ;;  %v1852_v23 = vpop.f32.mrb[39].mxu1 }
 0x16b   : > { %v976_v24 = vmax.f32 %v662_v12, %v902_v18  ;;  %v903_v25 = vmul.f32 0.2, %v665_v19  ;;  %v941_v27 = vmul.f32 0.2, %v817_v22 }
 0x16c   : > { %v1014_v26 = vmax.f32 %v814_v14, %v940_v21 }
 0x16d   : > { %v1620_v28 = vpack.c.bf16 %v976_v24, %v976_v24  ;;  %v977_v29 = vmax.f32 %v665_v19, %v903_v25  ;;  %v1015_v31 = vmax.f32 %v817_v22, %v941_v27 }
 0x16e   : > { %v1658_v30 = vpack.c.bf16 %v1014_v26, %v1014_v26  ;;  %v669_v32 = vpop.f32.mrb[40].mxu0  ;;  %v821_v33 = vpop.f32.mrb[40].mxu1 }
 0x16f   : > { %1347 = vst.msk [vmem:[%s2253_s27 + $0x48] sm:$0xf] %vm1328_vm1, %v1620_v28  ;;  %v1621_v34 = vpack.c.bf16 %v977_v29, %v977_v29  ;;  %v1659_v35 = vpack.c.bf16 %v1015_v31, %v1015_v31  ;;  %v670_v36 = vadd.f32 %v2242_v46, %v669_v32  ;;  %v1779_v37 = vpop.f32.mrb[41].mxu0  ;;  %v822_v38 = vadd.f32 %v2242_v46, %v821_v33  ;;  %v1855_v39 = vpop.f32.mrb[41].mxu1 }
 0x170   : > { %1385 = vst.msk [vmem:[%s2253_s27 + $0xe0] sm:$0xf] %vm1328_vm1, %v1658_v30  ;;  %v672_v40 = vpop.f32.mrb[42].mxu0  ;;  %v824_v41 = vpop.f32.mrb[42].mxu1 }
 0x171   : > { %1348 = vst.msk [vmem:[%s2253_s27 + $0x4c] sm:$0xf] %vm1328_vm1, %v1621_v34  ;;  %1386 = vst.msk [vmem:[%s2253_s27 + $0xe4] sm:$0xf] %vm1328_vm1, %v1659_v35  ;;  %v904_v42 = vmul.f32 0.2, %v670_v36  ;;  %v673_v43 = vadd.f32 %v2242_v46, %v672_v40  ;;  %v825_v47 = vadd.f32 %v2242_v46, %v824_v41 }
 0x172   : > { %v1780_v44 = vpop.f32.mrb[43].mxu0  ;;  %v942_v45 = vmul.f32 0.2, %v822_v38  ;;  %v1856_v48 = vpop.f32.mrb[43].mxu1 }
 0x173   : > { %v978_v49 = vmax.f32 %v670_v36, %v904_v42  ;;  %v905_v50 = vmul.f32 0.2, %v673_v43  ;;  %v943_v52 = vmul.f32 0.2, %v825_v47 }
 0x174   : > { %v1016_v51 = vmax.f32 %v822_v38, %v942_v45 }
 0x175   : > { %v1622_v53 = vpack.c.bf16 %v978_v49, %v978_v49  ;;  %v979_v54 = vmax.f32 %v673_v43, %v905_v50  ;;  %v1017_v56 = vmax.f32 %v825_v47, %v943_v52 }
 0x176   : > { %v1660_v55 = vpack.c.bf16 %v1016_v51, %v1016_v51  ;;  %v677_v57 = vpop.f32.mrb[44].mxu0  ;;  %v829_v58 = vpop.f32.mrb[44].mxu1 }
 0x177   : > { %1349 = vst.msk [vmem:[%s2253_s27 + $0x50] sm:$0xf] %vm1328_vm1, %v1622_v53  ;;  %v1623_v59 = vpack.c.bf16 %v979_v54, %v979_v54  ;;  %v1661_v60 = vpack.c.bf16 %v1017_v56, %v1017_v56  ;;  %v678_v61 = vadd.f32 %v2242_v46, %v677_v57  ;;  %v1783_v62 = vpop.f32.mrb[45].mxu0  ;;  %v830_v63 = vadd.f32 %v2242_v46, %v829_v58  ;;  %v1859_v0 = vpop.f32.mrb[45].mxu1 }
 0x178   : > { %1387 = vst.msk [vmem:[%s2253_s27 + $0xe8] sm:$0xf] %vm1328_vm1, %v1660_v55  ;;  %v680_v1 = vpop.f32.mrb[46].mxu0  ;;  %v832_v2 = vpop.f32.mrb[46].mxu1 }
 0x179   : > { %1350 = vst.msk [vmem:[%s2253_s27 + $0x54] sm:$0xf] %vm1328_vm1, %v1623_v59  ;;  %1388 = vst.msk [vmem:[%s2253_s27 + $0xec] sm:$0xf] %vm1328_vm1, %v1661_v60  ;;  %v906_v3 = vmul.f32 0.2, %v678_v61  ;;  %v681_v4 = vadd.f32 %v2242_v46, %v680_v1  ;;  %v833_v7 = vadd.f32 %v2242_v46, %v832_v2 }
 0x17a   : > { %v1784_v5 = vpop.f32.mrb[47].mxu0  ;;  %v944_v6 = vmul.f32 0.2, %v830_v63  ;;  %v1860_v8 = vpop.f32.mrb[47].mxu1 }
 0x17b   : > { %v980_v9 = vmax.f32 %v678_v61, %v906_v3  ;;  %v907_v10 = vmul.f32 0.2, %v681_v4  ;;  %v945_v12 = vmul.f32 0.2, %v833_v7 }
 0x17c   : > { %v1018_v11 = vmax.f32 %v830_v63, %v944_v6 }
 0x17d   : > { %v1624_v13 = vpack.c.bf16 %v980_v9, %v980_v9  ;;  %v981_v14 = vmax.f32 %v681_v4, %v907_v10  ;;  %v1019_v16 = vmax.f32 %v833_v7, %v945_v12 }
 0x17e   : > { %v1662_v15 = vpack.c.bf16 %v1018_v11, %v1018_v11  ;;  %v685_v17 = vpop.f32.mrb[48].mxu0  ;;  %v837_v18 = vpop.f32.mrb[48].mxu1 }
 0x17f   : > { %1351 = vst.msk [vmem:[%s2253_s27 + $0x58] sm:$0xf] %vm1328_vm1, %v1624_v13  ;;  %v1625_v19 = vpack.c.bf16 %v981_v14, %v981_v14  ;;  %v1663_v20 = vpack.c.bf16 %v1019_v16, %v1019_v16  ;;  %v686_v21 = vadd.f32 %v2242_v46, %v685_v17  ;;  %v1787_v22 = vpop.f32.mrb[49].mxu0  ;;  %v838_v23 = vadd.f32 %v2242_v46, %v837_v18  ;;  %v1863_v24 = vpop.f32.mrb[49].mxu1 }
 0x180   : > { %1389 = vst.msk [vmem:[%s2253_s27 + $0xf0] sm:$0xf] %vm1328_vm1, %v1662_v15  ;;  %v688_v25 = vpop.f32.mrb[50].mxu0  ;;  %v840_v26 = vpop.f32.mrb[50].mxu1 }
 0x181   : > { %1352 = vst.msk [vmem:[%s2253_s27 + $0x5c] sm:$0xf] %vm1328_vm1, %v1625_v19  ;;  %1390 = vst.msk [vmem:[%s2253_s27 + $0xf4] sm:$0xf] %vm1328_vm1, %v1663_v20  ;;  %v908_v27 = vmul.f32 0.2, %v686_v21  ;;  %v689_v28 = vadd.f32 %v2242_v46, %v688_v25  ;;  %v841_v31 = vadd.f32 %v2242_v46, %v840_v26 }
 0x182   : > { %v1788_v29 = vpop.f32.mrb[51].mxu0  ;;  %v946_v30 = vmul.f32 0.2, %v838_v23  ;;  %v1864_v32 = vpop.f32.mrb[51].mxu1 }
 0x183   : > { %v982_v33 = vmax.f32 %v686_v21, %v908_v27  ;;  %v909_v34 = vmul.f32 0.2, %v689_v28  ;;  %v947_v36 = vmul.f32 0.2, %v841_v31 }
 0x184   : > { %v1020_v35 = vmax.f32 %v838_v23, %v946_v30 }
 0x185   : > { %v1626_v37 = vpack.c.bf16 %v982_v33, %v982_v33  ;;  %v983_v38 = vmax.f32 %v689_v28, %v909_v34  ;;  %v1021_v40 = vmax.f32 %v841_v31, %v947_v36 }
 0x186   : > { %v1664_v39 = vpack.c.bf16 %v1020_v35, %v1020_v35  ;;  %v693_v41 = vpop.f32.mrb[52].mxu0  ;;  %v845_v42 = vpop.f32.mrb[52].mxu1 }
 0x187   : > { %1353 = vst.msk [vmem:[%s2253_s27 + $0x60] sm:$0xf] %vm1328_vm1, %v1626_v37  ;;  %v1627_v43 = vpack.c.bf16 %v983_v38, %v983_v38  ;;  %v1665_v44 = vpack.c.bf16 %v1021_v40, %v1021_v40  ;;  %v694_v45 = vadd.f32 %v2242_v46, %v693_v41  ;;  %v1791_v47 = vpop.f32.mrb[53].mxu0  ;;  %v846_v48 = vadd.f32 %v2242_v46, %v845_v42  ;;  %v1867_v49 = vpop.f32.mrb[53].mxu1 }
 0x188   : > { %1391 = vst.msk [vmem:[%s2253_s27 + $0xf8] sm:$0xf] %vm1328_vm1, %v1664_v39  ;;  %v696_v50 = vpop.f32.mrb[54].mxu0  ;;  %v848_v51 = vpop.f32.mrb[54].mxu1 }
 0x189   : > { %1354 = vst.msk [vmem:[%s2253_s27 + $0x64] sm:$0xf] %vm1328_vm1, %v1627_v43  ;;  %1392 = vst.msk [vmem:[%s2253_s27 + $0xfc] sm:$0xf] %vm1328_vm1, %v1665_v44  ;;  %v910_v52 = vmul.f32 0.2, %v694_v45  ;;  %v697_v53 = vadd.f32 %v2242_v46, %v696_v50  ;;  %v849_v56 = vadd.f32 %v2242_v46, %v848_v51 }
 0x18a   : > { %v1792_v54 = vpop.f32.mrb[55].mxu0  ;;  %v948_v55 = vmul.f32 0.2, %v846_v48  ;;  %v1868_v57 = vpop.f32.mrb[55].mxu1 }
 0x18b   : > { %v984_v58 = vmax.f32 %v694_v45, %v910_v52  ;;  %v911_v59 = vmul.f32 0.2, %v697_v53  ;;  %v949_v61 = vmul.f32 0.2, %v849_v56 }
 0x18c   : > { %v1022_v60 = vmax.f32 %v846_v48, %v948_v55 }
 0x18d   : > { %v1628_v62 = vpack.c.bf16 %v984_v58, %v984_v58  ;;  %v985_v63 = vmax.f32 %v697_v53, %v911_v59  ;;  %v1023_v1 = vmax.f32 %v849_v56, %v949_v61 }
 0x18e   : > { %v1666_v0 = vpack.c.bf16 %v1022_v60, %v1022_v60  ;;  %v701_v2 = vpop.f32.mrb[56].mxu0  ;;  %v853_v3 = vpop.f32.mrb[56].mxu1 }
 0x18f   : > { %1355 = vst.msk [vmem:[%s2253_s27 + $0x68] sm:$0xf] %vm1328_vm1, %v1628_v62  ;;  %v1629_v4 = vpack.c.bf16 %v985_v63, %v985_v63  ;;  %v1667_v5 = vpack.c.bf16 %v1023_v1, %v1023_v1  ;;  %v702_v6 = vadd.f32 %v2242_v46, %v701_v2  ;;  %v1795_v7 = vpop.f32.mrb[57].mxu0  ;;  %v854_v8 = vadd.f32 %v2242_v46, %v853_v3  ;;  %v1871_v9 = vpop.f32.mrb[57].mxu1 }
 0x190   : > { %1393 = vst.msk [vmem:[%s2253_s27 + $0x100] sm:$0xf] %vm1328_vm1, %v1666_v0  ;;  %v704_v10 = vpop.f32.mrb[58].mxu0  ;;  %v856_v11 = vpop.f32.mrb[58].mxu1 }
 0x191   : > { %1356 = vst.msk [vmem:[%s2253_s27 + $0x6c] sm:$0xf] %vm1328_vm1, %v1629_v4  ;;  %1394 = vst.msk [vmem:[%s2253_s27 + $0x104] sm:$0xf] %vm1328_vm1, %v1667_v5  ;;  %v912_v12 = vmul.f32 0.2, %v702_v6  ;;  %v705_v13 = vadd.f32 %v2242_v46, %v704_v10  ;;  %v857_v16 = vadd.f32 %v2242_v46, %v856_v11 }
 0x192   : > { %v1796_v14 = vpop.f32.mrb[59].mxu0  ;;  %v950_v15 = vmul.f32 0.2, %v854_v8  ;;  %v1872_v17 = vpop.f32.mrb[59].mxu1 }
 0x193   : > { %v986_v18 = vmax.f32 %v702_v6, %v912_v12  ;;  %v913_v19 = vmul.f32 0.2, %v705_v13  ;;  %v951_v21 = vmul.f32 0.2, %v857_v16 }
 0x194   : > { %v1024_v20 = vmax.f32 %v854_v8, %v950_v15 }
 0x195   : > { %v1630_v22 = vpack.c.bf16 %v986_v18, %v986_v18  ;;  %v987_v23 = vmax.f32 %v705_v13, %v913_v19  ;;  %v1025_v25 = vmax.f32 %v857_v16, %v951_v21 }
 0x196   : > { %v1668_v24 = vpack.c.bf16 %v1024_v20, %v1024_v20  ;;  %v709_v26 = vpop.f32.mrb[60].mxu0  ;;  %v861_v27 = vpop.f32.mrb[60].mxu1 }
 0x197   : > { %1357 = vst.msk [vmem:[%s2253_s27 + $0x70] sm:$0xf] %vm1328_vm1, %v1630_v22  ;;  %v1631_v28 = vpack.c.bf16 %v987_v23, %v987_v23  ;;  %v1669_v29 = vpack.c.bf16 %v1025_v25, %v1025_v25  ;;  %v710_v30 = vadd.f32 %v2242_v46, %v709_v26  ;;  %v1799_v31 = vpop.f32.mrb[61].mxu0  ;;  %v862_v32 = vadd.f32 %v2242_v46, %v861_v27  ;;  %v1875_v33 = vpop.f32.mrb[61].mxu1 }
 0x198   : > { %1395 = vst.msk [vmem:[%s2253_s27 + $0x108] sm:$0xf] %vm1328_vm1, %v1668_v24  ;;  %v712_v34 = vpop.f32.mrb[62].mxu0  ;;  %v864_v35 = vpop.f32.mrb[62].mxu1 }
 0x199   : > { %1358 = vst.msk [vmem:[%s2253_s27 + $0x74] sm:$0xf] %vm1328_vm1, %v1631_v28  ;;  %1396 = vst.msk [vmem:[%s2253_s27 + $0x10c] sm:$0xf] %vm1328_vm1, %v1669_v29  ;;  %v914_v36 = vmul.f32 0.2, %v710_v30  ;;  %v713_v37 = vadd.f32 %v2242_v46, %v712_v34  ;;  %v865_v40 = vadd.f32 %v2242_v46, %v864_v35 }
 0x19a   : > { %v1800_v38 = vpop.f32.mrb[63].mxu0  ;;  %v952_v39 = vmul.f32 0.2, %v862_v32  ;;  %v1876_v41 = vpop.f32.mrb[63].mxu1 }
 0x19b   : > { %v988_v42 = vmax.f32 %v710_v30, %v914_v36  ;;  %v915_v43 = vmul.f32 0.2, %v713_v37  ;;  %v953_v45 = vmul.f32 0.2, %v865_v40 }
 0x19c   : > { %v1026_v44 = vmax.f32 %v862_v32, %v952_v39 }
 0x19d   : > { %v1632_v47 = vpack.c.bf16 %v988_v42, %v988_v42  ;;  %v989_v48 = vmax.f32 %v713_v37, %v915_v43  ;;  %v1027_v50 = vmax.f32 %v865_v40, %v953_v45  ;;  %v1967_v42 = vld [vmem:[#allocation2] ss:$0 sm:$0xff] }
 0x19e   : > { %v1670_v49 = vpack.c.bf16 %v1026_v44, %v1026_v44  ;;  %v717_v51 = vpop.f32.mrb[64].mxu0  ;;  %v869_v52 = vpop.f32.mrb[64].mxu1 }
 0x19f   : > { %1359 = vst.msk [vmem:[%s2253_s27 + $0x78] sm:$0xf] %vm1328_vm1, %v1632_v47  ;;  %v1633_v53 = vpack.c.bf16 %v989_v48, %v989_v48  ;;  %v1671_v54 = vpack.c.bf16 %v1027_v50, %v1027_v50  ;;  %v718_v55 = vadd.f32 %v2242_v46, %v717_v51  ;;  %v1803_v56 = vpop.f32.mrb[65].mxu0  ;;  %v870_v57 = vadd.f32 %v2242_v46, %v869_v52  ;;  %v1879_v58 = vpop.f32.mrb[65].mxu1 }
 0x1a0   : > { %1397 = vst.msk [vmem:[%s2253_s27 + $0x110] sm:$0xf] %vm1328_vm1, %v1670_v49  ;;  %v720_v59 = vpop.f32.mrb[66].mxu0  ;;  %v872_v60 = vpop.f32.mrb[66].mxu1 }
 0x1a1   : > { %1360 = vst.msk [vmem:[%s2253_s27 + $0x7c] sm:$0xf] %vm1328_vm1, %v1633_v53  ;;  %1398 = vst.msk [vmem:[%s2253_s27 + $0x114] sm:$0xf] %vm1328_vm1, %v1671_v54  ;;  %v916_v61 = vmul.f32 0.2, %v718_v55  ;;  %v721_v62 = vadd.f32 %v2242_v46, %v720_v59  ;;  %v873_v1 = vadd.f32 %v2242_v46, %v872_v60 }
 0x1a2   : > { %v1804_v63 = vpop.f32.mrb[67].mxu0  ;;  %v954_v0 = vmul.f32 0.2, %v870_v57  ;;  %v1880_v2 = vpop.f32.mrb[67].mxu1 }
 0x1a3   : > { %v990_v3 = vmax.f32 %v718_v55, %v916_v61  ;;  %v917_v4 = vmul.f32 0.2, %v721_v62  ;;  %v955_v6 = vmul.f32 0.2, %v873_v1 }
 0x1a4   : > { %v1028_v5 = vmax.f32 %v870_v57, %v954_v0 }
 0x1a5   : > { %v1634_v7 = vpack.c.bf16 %v990_v3, %v990_v3  ;;  %v991_v8 = vmax.f32 %v721_v62, %v917_v4  ;;  %v1029_v10 = vmax.f32 %v873_v1, %v955_v6 }
 0x1a6   : > { %v1672_v9 = vpack.c.bf16 %v1028_v5, %v1028_v5  ;;  %v725_v11 = vpop.f32.mrb[68].mxu0  ;;  %v877_v12 = vpop.f32.mrb[68].mxu1 }
 0x1a7   : > { %1361 = vst.msk [vmem:[%s2253_s27 + $0x80] sm:$0xf] %vm1328_vm1, %v1634_v7  ;;  %v1635_v13 = vpack.c.bf16 %v991_v8, %v991_v8  ;;  %v1673_v14 = vpack.c.bf16 %v1029_v10, %v1029_v10  ;;  %v726_v15 = vadd.f32 %v2242_v46, %v725_v11  ;;  %v1807_v16 = vpop.f32.mrb[69].mxu0  ;;  %v878_v17 = vadd.f32 %v2242_v46, %v877_v12  ;;  %v1883_v18 = vpop.f32.mrb[69].mxu1 }
 0x1a8   : > { %1399 = vst.msk [vmem:[%s2253_s27 + $0x118] sm:$0xf] %vm1328_vm1, %v1672_v9  ;;  %v728_v19 = vpop.f32.mrb[70].mxu0  ;;  %v880_v20 = vpop.f32.mrb[70].mxu1 }
 0x1a9   : > { %1362 = vst.msk [vmem:[%s2253_s27 + $0x84] sm:$0xf] %vm1328_vm1, %v1635_v13  ;;  %1400 = vst.msk [vmem:[%s2253_s27 + $0x11c] sm:$0xf] %vm1328_vm1, %v1673_v14  ;;  %v918_v21 = vmul.f32 0.2, %v726_v15  ;;  %v729_v22 = vadd.f32 %v2242_v46, %v728_v19  ;;  %v881_v25 = vadd.f32 %v2242_v46, %v880_v20 }
 0x1aa   : > { %v1808_v23 = vpop.f32.mrb[71].mxu0  ;;  %v956_v24 = vmul.f32 0.2, %v878_v17  ;;  %v1884_v26 = vpop.f32.mrb[71].mxu1 }
 0x1ab   : > { %v992_v27 = vmax.f32 %v726_v15, %v918_v21  ;;  %v919_v28 = vmul.f32 0.2, %v729_v22  ;;  %v957_v30 = vmul.f32 0.2, %v881_v25 }
 0x1ac   : > { %v1030_v29 = vmax.f32 %v878_v17, %v956_v24 }
 0x1ad   : > { %v1636_v31 = vpack.c.bf16 %v992_v27, %v992_v27  ;;  %v993_v32 = vmax.f32 %v729_v22, %v919_v28  ;;  %v1031_v34 = vmax.f32 %v881_v25, %v957_v30 }
 0x1ae   : > { %v1674_v33 = vpack.c.bf16 %v1030_v29, %v1030_v29  ;;  %v733_v35 = vpop.f32.mrb[72].mxu0 }
 0x1af   : > { %1363 = vst.msk [vmem:[%s2253_s27 + $0x88] sm:$0xf] %vm1328_vm1, %v1636_v31  ;;  %v1637_v36 = vpack.c.bf16 %v993_v32, %v993_v32  ;;  %v1675_v37 = vpack.c.bf16 %v1031_v34, %v1031_v34  ;;  %v734_v38 = vadd.f32 %v2242_v46, %v733_v35  ;;  %v1811_v39 = vpop.f32.mrb[73].mxu0 }
 0x1b0   : > { %1401 = vst.msk [vmem:[%s2253_s27 + $0x120] sm:$0xf] %vm1328_vm1, %v1674_v33  ;;  %v736_v40 = vpop.f32.mrb[74].mxu0 }
 0x1b1   : > { %1364 = vst.msk [vmem:[%s2253_s27 + $0x8c] sm:$0xf] %vm1328_vm1, %v1637_v36  ;;  %1402 = vst.msk [vmem:[%s2253_s27 + $0x124] sm:$0xf] %vm1328_vm1, %v1675_v37  ;;  %v920_v41 = vmul.f32 0.2, %v734_v38  ;;  %v737_v43 = vadd.f32 %v1967_v42, %v736_v40 }
 0x1b2   : > { %v1812_v44 = vpop.f32.mrb[75].mxu0 }
 0x1b3   : > { %v994_v45 = vmax.f32 %v734_v38, %v920_v41  ;;  %v921_v47 = vmul.f32 0.2, %v737_v43 }
 0x1b5   : > { %v1638_v48 = vpack.c.bf16 %v994_v45, %v994_v45  ;;  %v995_v49 = vmax.f32 %v737_v43, %v921_v47 }
 0x1b7   : > { %1365 = vst.msk [vmem:[%s2253_s27 + $0x90] sm:$0xf] %vm1328_vm1, %v1638_v48  ;;  %v1639_v50 = vpack.c.bf16 %v995_v49, %v995_v49 }
 0x1b9   : > { %1366 = vst.msk [vmem:[%s2253_s27 + $0x94] sm:$0xf] %vm1328_vm1, %v1639_v50 }
 0x1ba PF: > { %s14_s12 = sadd.s32 1, %s2006_s12  }
 0x1bb   : > { %p11_p3 = scmp.ge.s32.totalorder %s14_s12, 6  }
 0x1bd   :  { %13 = sbr.rel (!%p11_p3) target bundleno = 1 (0x1), region = 67 }
 0x1c4   :  { %1425 = vsyncpa [#allocation3], 1 }
 0x1c5   :  { %1427 = vsyncpa [#allocation3 + $0x1], 1 }

// kernel: dis_con_layers_forward.5
= control target key start
LH: loop header
LB: loop body
LE: loop exit
PB: predicated region body
PF: predicated region fallthrough
CT: control target
= control target key end

     0   :  { %s1484_s12 = smov 0   ;;  %s2355_s0 = inlined_call_operand.vmem [shape: bf16[608,128], index: 0, kind: input, shape index: {}]   ;;  %s2356_s1 = inlined_call_operand.vmem [shape: bf16[128,16], index: 1, kind: input, shape index: {}]   ;;  %s2357_s2 = inlined_call_operand.vmem [shape: f32[608,16], index: 2, kind: output, shape index: {0}]   ;;  %s2358_s3 = inlined_call_operand.vmem [shape: f32[16,16], index: 3, kind: output, shape index: {1}]  }
   0x1 LB: > { %s1490_s13 = sadd.s32 4294967295, %s1460_s12   ;;  %p1238_p0 = scmp.ge.s32.totalorder %s1460_s12, 1  ;;  %s1460_s12 = sphi %s1484_s12, %s14_s12  }
   0x2   : > { %p141_p1 = scmp.lt.s32.totalorder %s1460_s12, 3 }
   0x4   : > { %p142_p2 = pnand %p1238_p0, %p141_p1 }
   0x6   : > { %145 = sbr.rel (%p142_p2) target bundleno = 479 (0x1df), region = 28 }
   0xd   : > { %v1425_v0 = vld [vmem:[%s2356_s1] sm:$0xff]   ;;  %v1462_v1 = vmov 0.0   ;;  %v1426_v2 = vld [vmem:[%s2356_s1 + $0x8] sm:$0xff]   ;;  %vm1463_vm0 = vmmov 0   ;;  %s169_s18 = smul.u32 38, %s1490_s13  ;;  %v1427_v3 = vld [vmem:[%s2356_s1 + $0x10] sm:$0xff]   ;;  %v587_v30 = vlaneseq }
   0xe   : > { %1305 = vmatprep.subr.bf16.mxu0 %v1462_v1  ;;  %1397 = vmatprep.subr.bf16.mxu1 %v1462_v1  ;;  %v1428_v4 = vld [vmem:[%s2356_s1 + $0x18] sm:$0xff]   ;;  %v1429_v5 = vld [vmem:[%s2356_s1 + $0x20] sm:$0xff]   ;;  %v1430_v6 = vld [vmem:[%s2356_s1 + $0x28] sm:$0xff]   ;;  %s626_s8 = smul.u32 304, %s1490_s13  ;;  %vm818_vm2 = vcmask 130048   ;;  %p181_p6 = scmp.lt.s32.totalorder %s1490_s13, 1 }
   0xf   : > { %1306 = vmatpush3.bf16.msra.mxu0 %v1425_v0  ;;  %1321 = vmatprep.mubr.msk.bf16.mxu0 %vm1463_vm0, %v1462_v1  ;;  %p170_p3 = scmp.lt.s32.totalorder %s169_s18, 75  ;;  %v1431_v7 = vld [vmem:[%s2356_s1 + $0x30] sm:$0xff]   ;;  %v1432_v8 = vld [vmem:[%s2356_s1 + $0x38] sm:$0xff]   ;;  %v1601_v31 = vshrl.u32 %v587_v30, 7 }
  0x10   : > { %1307 = vmatprep.subr.bf16.mxu0 %v1462_v1  ;;  %1405 = vmatpush3.bf16.msra.mxu1 %v1425_v0  ;;  %s857_s9 = ssub.s32 578, %s626_s8  ;;  %v1603_v32 = vstv %s626_s8  ;;  %s2487_s13 = smov (!%p181_p6, %s1490_s13), 1 }
  0x11   : > { %1398 = vmatprep.subr.bf16.mxu1 %v1462_v1  ;;  %1361 = vmatprep.mubr.msk.bf16.mxu1 %vm1463_vm0, %v1462_v1  ;;  %s2483_s18 = smov (!%p170_p3, %s169_s18), 75  ;;  %p858_p4 = scmp.lt.s32.totalorder %s857_s9, 304  ;;  %v608_v33 = vadd.s32 160, %v1601_v31  ;;  %v589_v34 = vadd.s32 8, %v1601_v31  ;;  %v609_v35 = vadd.s32 168, %v1601_v31  ;;  %v1610_v36 = vadd.s32 %v1603_v32, %v1601_v31 }
  0x12   : > { %s1239_s21 = sshll.u32 %s2483_s18, 2  ;;  %p1269_p5 = scmp.gt.s32.totalorder %s857_s9, 1  ;;  %v590_v40 = vadd.s32 16, %v1601_v31  ;;  %v610_v41 = vadd.s32 176, %v1601_v31  ;;  %v591_v43 = vadd.s32 24, %v1601_v31  ;;  %v611_v47 = vadd.s32 184, %v1601_v31 }
  0x13   : > { %1308 = vmatpush3.bf16.msra.mxu0 %v1426_v2  ;;  %s1520_s24 = scalar_lea.vmem %s2355_s0, %s1239_s21  ;;  %v1613_v37 = vadd.s32 %v1603_v32, %v608_v33  ;;  %s1240_s14 = sshll.u32 %s2483_s18, 3  ;;  %v1617_v38 = vadd.s32 %v1603_v32, %v589_v34  ;;  %v1620_v39 = vadd.s32 %v1603_v32, %v609_v35  ;;  %vm666_vm1 = vcmp.lt.s32.totalorder %v1610_v36, 578 }
  0x14   : > { %1309 = vmatprep.subr.bf16.mxu0 %v1462_v1  ;;  %1406 = vmatpush3.bf16.msra.mxu1 %v1426_v2  ;;  %v1433_v9 = vld [vmem:[%s1520_s24] sm:$0xff]   ;;  %v1439_v10 = vld [vmem:[%s1520_s24 + $0x50] sm:$0xff]   ;;  %v1434_v11 = vld [vmem:[%s1520_s24 + $0x8] sm:$0xff]   ;;  %s859_s10 = scalar_select %p858_p4, %s857_s9, 304  ;;  %v1643_v49 = vadd.s32 %v1603_v32, %v590_v40  ;;  %v1657_v55 = vadd.s32 %v1603_v32, %v610_v41  ;;  %v1663_v56 = vadd.s32 %v1603_v32, %v591_v43  ;;  %v592_v60 = vadd.s32 32, %v1601_v31 }
  0x15   : > { %1399 = vmatprep.subr.bf16.mxu1 %v1462_v1  ;;  %v1441_v12 = vld [vmem:[%s1520_s24 + $0x58] sm:$0xff]   ;;  %v1435_v13 = vld [vmem:[%s1520_s24 + $0x10] sm:$0xff]   ;;  %v1443_v14 = vld [vmem:[%s1520_s24 + $0x60] sm:$0xff]   ;;  %2408 = vst [vmem:[#allocation2_spill] sm:$0xff] %v1613_v37  ;;  %s1627_s17 = scalar_lea.vmem %s2357_s2, %s1240_s14  ;;  %vm2369_vm3 = vcmp.lt.s32.totalorder %v1613_v37, 578  ;;  %vm667_vm4 = vcmp.lt.s32.totalorder %v1617_v38, 578  ;;  %v1673_v59 = vadd.s32 %v1603_v32, %v611_v47 }
  0x16   : > { %v1436_v15 = vld [vmem:[%s1520_s24 + $0x18] sm:$0xff]   ;;  %v1445_v16 = vld [vmem:[%s1520_s24 + $0x68] sm:$0xff]   ;;  %v1437_v17 = vld [vmem:[%s1520_s24 + $0x20] sm:$0xff]   ;;  %s2485_s10 = smov (!%p1269_p5, %s859_s10), 1  ;;  %2409 = vst [vmem:[#allocation3_spill] sm:$0xff] %v1620_v39  ;;  %vm2367_vm5 = vcmp.lt.s32.totalorder %v1620_v39, 578 }
  0x17   : > { %1310 = vmatpush3.bf16.msra.mxu0 %v1427_v3  ;;  %v1447_v18 = vld [vmem:[%s1520_s24 + $0x70] sm:$0xff]   ;;  %v1438_v19 = vld [vmem:[%s1520_s24 + $0x28] sm:$0xff]   ;;  %v1448_v20 = vld [vmem:[%s1520_s24 + $0x78] sm:$0xff]   ;;  %s862_s11 = scvt.s32.f32 %s2485_s10  ;;  %2410 = vst [vmem:[#allocation4_spill] sm:$0xff] %v1657_v55  ;;  %vm668_vm6 = vcmp.lt.s32.totalorder %v1643_v49, 578  ;;  %vm2365_vm7 = vcmp.lt.s32.totalorder %v1657_v55, 578 }
  0x18   : > { %1311 = vmatprep.subr.bf16.mxu0 %v1462_v1  ;;  %1407 = vmatpush3.bf16.msra.mxu1 %v1427_v3  ;;  %v1440_v21 = vld [vmem:[%s1520_s24 + $0x30] sm:$0xff]   ;;  %v1449_v22 = vld [vmem:[%s1520_s24 + $0x80] sm:$0xff]   ;;  %v1442_v23 = vld [vmem:[%s1520_s24 + $0x38] sm:$0xff]   ;;  %2411 = vst [vmem:[#allocation5_spill] sm:$0xff] %v1673_v59  ;;  %v612_v61 = vadd.s32 192, %v1601_v31  ;;  %vm669_vm8 = vcmp.lt.s32.totalorder %v1663_v56, 578 }
  0x19   : > { %1400 = vmatprep.subr.bf16.mxu1 %v1462_v1  ;;  %v1450_v24 = vld [vmem:[%s1520_s24 + $0x88] sm:$0xff]   ;;  %v1444_v25 = vld [vmem:[%s1520_s24 + $0x40] sm:$0xff]   ;;  %v1451_v26 = vld [vmem:[%s1520_s24 + $0x90] sm:$0xff]   ;;  %v944_v28 = vstv %s862_s11  ;;  %v593_v63 = vadd.s32 40, %v1601_v31  ;;  %vm2363_vm9 = vcmp.lt.s32.totalorder %v1673_v59, 578  ;;  %v613_v3 = vadd.s32 200, %v1601_v31 }
  0x1a   : > { %v1446_v27 = vld [vmem:[%s1520_s24 + $0x48] sm:$0xff]   ;;  %1452 = vrcp.f32 %v944_v28  ;;  %v596_v43 = vadd.s32 64, %v1601_v31  ;;  %s1241_s18 = sshll.u32 %s2487_s13, 3 }
  0x1b   : > { %1312 = vmatpush3.bf16.msra.mxu0 %v1428_v4  ;;  %s2148_s22 = scalar_lea.vmem %s2358_s3, %s1241_s18 }
  0x1c   : > { %1313 = vmatprep.subr.bf16.mxu0 %v1462_v1  ;;  %1408 = vmatpush3.bf16.msra.mxu1 %v1428_v4 }
  0x1d   : > { %1401 = vmatprep.subr.bf16.mxu1 %v1462_v1 }
  0x1f   : > { %1314 = vmatpush3.bf16.msra.mxu0 %v1429_v5 }
  0x20   : > { %1315 = vmatprep.subr.bf16.mxu0 %v1462_v1  ;;  %1409 = vmatpush3.bf16.msra.mxu1 %v1429_v5  ;;  %v1691_v5 = vadd.s32 %v1603_v32, %v592_v60 }
  0x21   : > { %1402 = vmatprep.subr.bf16.mxu1 %v1462_v1 }
  0x22   : > { %vm670_vm10 = vcmp.lt.s32.totalorder %v1691_v5, 578 }
  0x23   : > { %1316 = vmatpush3.bf16.msra.mxu0 %v1430_v6 }
  0x24   : > { %1317 = vmatprep.subr.bf16.mxu0 %v1462_v1  ;;  %1410 = vmatpush3.bf16.msra.mxu1 %v1430_v6  ;;  %v1453_v29 = vpop.eup %1452 }
  0x25   : > { %1403 = vmatprep.subr.bf16.mxu1 %v1462_v1  ;;  %1413 = vpush %v1453_v29 }
  0x27   : > { %1318 = vmatpush3.bf16.msra.mxu0 %v1431_v7 }
  0x28   : > { %1319 = vmatprep.subr.bf16.mxu0 %v1462_v1  ;;  %1411 = vmatpush3.bf16.msra.mxu1 %v1431_v7 }
  0x29   : > { %1404 = vmatprep.subr.bf16.mxu1 %v1462_v1 }
  0x2b   : > { %1320 = vmatpush3.bf16.msra.mxu0 %v1432_v8 }
  0x2c   : > { %1412 = vmatpush3.bf16.msra.mxu1 %v1432_v8 }
  0x2e   : > { %1322 = vmatmul.mubr.bf16.vlgmr.msra.gmra.mrb[0].mxu0 %v1433_v9 }
  0x2f   : > { %1325 = vmatprep.mubr.msk.bf16.mxu0 %vm1463_vm0, %v1462_v1  ;;  %1362 = vmatmul.mubr.bf16.vlgmr.msra.gmra.mrb[0].mxu1 %v1439_v10 }
  0x30   : > { %1365 = vmatprep.mubr.msk.bf16.mxu1 %vm1463_vm0, %v1462_v1 }
  0x36   : > { %1326 = vmatmul.mubr.bf16.gmra.mrb[4].mxu0 %v1434_v11  ;;  %v1705_v11 = vadd.s32 %v1603_v32, %v612_v61  ;;  %v617_v61 = vadd.s32 232, %v1601_v31 }
  0x37   : > { %1329 = vmatprep.mubr.msk.bf16.mxu0 %vm1463_vm0, %v1462_v1  ;;  %1366 = vmatmul.mubr.bf16.gmra.mrb[4].mxu1 %v1441_v12  ;;  %v1711_v12 = vadd.s32 %v1603_v32, %v593_v63  ;;  %v1793_v63 = vadd.s32 %v1603_v32, %v596_v43 }
  0x38   : > { %1369 = vmatprep.mubr.msk.bf16.mxu1 %vm1463_vm0, %v1462_v1  ;;  %2412 = vst [vmem:[#allocation6_spill] sm:$0xff] %v1705_v11  ;;  %vm2361_vm11 = vcmp.lt.s32.totalorder %v1705_v11, 578 }
  0x39   : > { %vm671_vm12 = vcmp.lt.s32.totalorder %v1711_v12, 578 }
  0x3e   : > { %1330 = vmatmul.mubr.bf16.gmra.mrb[8].mxu0 %v1435_v13 }
  0x3f   : > { %1333 = vmatprep.mubr.msk.bf16.mxu0 %vm1463_vm0, %v1462_v1  ;;  %1370 = vmatmul.mubr.bf16.gmra.mrb[8].mxu1 %v1443_v14 }
  0x40   : > { %1373 = vmatprep.mubr.msk.bf16.mxu1 %vm1463_vm0, %v1462_v1 }
  0x46   : > { %1334 = vmatmul.mubr.bf16.gmra.mrb[12].mxu0 %v1436_v15  ;;  %v1721_v15 = vadd.s32 %v1603_v32, %v613_v3 }
  0x47   : > { %1337 = vmatprep.mubr.msk.bf16.mxu0 %vm1463_vm0, %v1462_v1  ;;  %1374 = vmatmul.mubr.bf16.gmra.mrb[12].mxu1 %v1445_v16  ;;  %v594_v16 = vadd.s32 48, %v1601_v31 }
  0x48   : > { %1377 = vmatprep.mubr.msk.bf16.mxu1 %vm1463_vm0, %v1462_v1  ;;  %2413 = vst [vmem:[#allocation7_spill] sm:$0xff] %v1721_v15  ;;  %vm2359_vm13 = vcmp.lt.s32.totalorder %v1721_v15, 578 }
  0x4e   : > { %1338 = vmatmul.mubr.bf16.gmra.mrb[16].mxu0 %v1437_v17  ;;  %v614_v17 = vadd.s32 208, %v1601_v31 }
  0x4f   : > { %1341 = vmatprep.mubr.msk.bf16.mxu0 %vm1463_vm0, %v1462_v1  ;;  %1378 = vmatmul.mubr.bf16.gmra.mrb[16].mxu1 %v1447_v18 }
  0x50   : > { %1381 = vmatprep.mubr.msk.bf16.mxu1 %vm1463_vm0, %v1462_v1  ;;  %v1753_v33 = vadd.s32 %v1603_v32, %v614_v17 }
  0x52   : > { %2414 = vst [vmem:[#allocation8_spill] sm:$0xff] %v1753_v33  ;;  %vm2360_vm15 = vcmp.lt.s32.totalorder %v1753_v33, 578 }
  0x56   : > { %1342 = vmatmul.mubr.bf16.gmra.mrb[20].mxu0 %v1438_v19  ;;  %v595_v19 = vadd.s32 56, %v1601_v31  ;;  %s1414_s19 = spop %1413 }
  0x57   : > { %1345 = vmatprep.mubr.msk.bf16.mxu0 %vm1463_vm0, %v1462_v1  ;;  %1382 = vmatmul.mubr.bf16.gmra.mrb[20].mxu1 %v1448_v20 }
  0x58   : > { %1385 = vmatprep.mubr.msk.bf16.mxu1 %vm1463_vm0, %v1462_v1  ;;  %v1759_v34 = vadd.s32 %v1603_v32, %v595_v19  ;;  %v1825_v19 = vadd.s32 %v1603_v32, %v617_v61 }
  0x5a   : > { %2417 = vst [vmem:[#allocation11_spill] sm:$0xff] %v1825_v19 }
  0x5e   : > { %1346 = vmatmul.mubr.bf16.gmra.mrb[24].mxu0 %v1440_v21 }
  0x5f   : > { %1349 = vmatprep.mubr.msk.bf16.mxu0 %vm1463_vm0, %v1462_v1  ;;  %1386 = vmatmul.mubr.bf16.gmra.mrb[24].mxu1 %v1449_v22 }
  0x60   : > { %1389 = vmatprep.mubr.msk.bf16.mxu1 %vm1463_vm0, %v1462_v1 }
  0x66   : > { %1350 = vmatmul.mubr.bf16.gmra.mrb[28].mxu0 %v1442_v23  ;;  %v615_v23 = vadd.s32 216, %v1601_v31 }
  0x67   : > { %1353 = vmatprep.mubr.msk.bf16.mxu0 %vm1463_vm0, %v1462_v1  ;;  %1390 = vmatmul.mubr.bf16.gmra.mrb[28].mxu1 %v1450_v24 }
  0x68   : > { %1393 = vmatprep.mubr.msk.bf16.mxu1 %vm1463_vm0, %v1462_v1  ;;  %v1769_v41 = vadd.s32 %v1603_v32, %v615_v23 }
  0x6a   : > { %2415 = vst [vmem:[#allocation9_spill] sm:$0xff] %v1769_v41 }
  0x6e   : > { %1354 = vmatmul.mubr.bf16.gmra.mrb[32].mxu0 %v1444_v25  ;;  %v1739_v25 = vadd.s32 %v1603_v32, %v594_v16 }
  0x6f   : > { %1357 = vmatprep.mubr.msk.bf16.mxu0 %vm1463_vm0, %v1462_v1  ;;  %1394 = vmatmul.mubr.bf16.gmra.mrb[32].mxu1 %v1451_v26  ;;  %vm673_vm0 = vcmp.lt.s32.totalorder %v1759_v34, 578 }
  0x70   : > { %vm672_vm14 = vcmp.lt.s32.totalorder %v1739_v25, 578 }
  0x76   : > { %1358 = vmatmul.mubr.bf16.gmra.mrb[36].mxu0 %v1446_v27 }
 0x101   : > { %v436_v42 = vpop.f32.mrb[0].mxu0 }
 0x102   : > { %v1635_v44 = vsel %vm666_vm1, %v436_v42, 0.0  ;;  %v1323_v45 = vpop.f32.mrb[1].mxu0  ;;  %v516_v46 = vpop.f32.mrb[0].mxu1 }
 0x103   : > { %819 = vst.msk [vmem:[%s1627_s17] sm:$0xff] %vm818_vm2, %v1635_v44  ;;  %v439_v48 = vpop.f32.mrb[2].mxu0  ;;  %v1647_v50 = vsel %vm2369_vm3, %v516_v46, 0.0  ;;  %v1363_v51 = vpop.f32.mrb[1].mxu1  ;;  %v616_v45 = vadd.s32 224, %v1601_v31  ;;  %v863_v46 = vsel %vm818_vm2, %v1635_v44, 0.0 }
 0x104   : > { %v1651_v52 = vsel %vm667_vm4, %v439_v48, 0.0  ;;  %v1324_v53 = vpop.f32.mrb[3].mxu0  ;;  %839 = vst.msk [vmem:[%s1627_s17 + $0xa0] sm:$0xff] %vm818_vm2, %v1647_v50  ;;  %v519_v54 = vpop.f32.mrb[2].mxu1  ;;  %v597_v51 = vadd.s32 72, %v1601_v31 }
 0x105   : > { %820 = vst.msk [vmem:[%s1627_s17 + $0x8] sm:$0xff] %vm818_vm2, %v1651_v52  ;;  %v1667_v57 = vsel %vm2367_vm5, %v519_v54, 0.0  ;;  %v1364_v58 = vpop.f32.mrb[3].mxu1  ;;  %v864_v42 = vsel %vm818_vm2, %v1651_v52, 0.0 }
 0x106   : > { %840 = vst.msk [vmem:[%s1627_s17 + $0xa8] sm:$0xff] %vm818_vm2, %v1667_v57  ;;  %v865_v53 = vadd.f32 %v864_v42, %v863_v46  ;;  %v1815_v16 = vadd.s32 %v1603_v32, %v597_v51 }
 0x109   : > { %v444_v62 = vpop.f32.mrb[4].mxu0 }
 0x10a   : > { %v1683_v0 = vsel %vm668_vm6, %v444_v62, 0.0  ;;  %v1327_v1 = vpop.f32.mrb[5].mxu0  ;;  %v524_v2 = vpop.f32.mrb[4].mxu1 }
 0x10b   : > { %821 = vst.msk [vmem:[%s1627_s17 + $0x10] sm:$0xff] %vm818_vm2, %v1683_v0  ;;  %v447_v4 = vpop.f32.mrb[6].mxu0  ;;  %v1695_v6 = vsel %vm2365_vm7, %v524_v2, 0.0  ;;  %v1367_v7 = vpop.f32.mrb[5].mxu1  ;;  %v866_v47 = vsel %vm818_vm2, %v1683_v0, 0.0 }
 0x10c   : > { %v1699_v8 = vsel %vm669_vm8, %v447_v4, 0.0  ;;  %v1328_v9 = vpop.f32.mrb[7].mxu0  ;;  %841 = vst.msk [vmem:[%s1627_s17 + $0xb0] sm:$0xff] %vm818_vm2, %v1695_v6  ;;  %v527_v10 = vpop.f32.mrb[6].mxu1  ;;  %v867_v3 = vadd.f32 %v866_v47, %v865_v53 }
 0x10d   : > { %822 = vst.msk [vmem:[%s1627_s17 + $0x18] sm:$0xff] %vm818_vm2, %v1699_v8  ;;  %v1715_v13 = vsel %vm2363_vm9, %v527_v10, 0.0  ;;  %v1368_v14 = vpop.f32.mrb[7].mxu1  ;;  %v1807_v10 = vadd.s32 %v1603_v32, %v616_v45  ;;  %vm2366_vm9 = vcmp.lt.s32.totalorder %v1825_v19, 578  ;;  %v619_v45 = vadd.s32 248, %v1601_v31 }
 0x10e   : > { %842 = vst.msk [vmem:[%s1627_s17 + $0xb8] sm:$0xff] %vm818_vm2, %v1715_v13  ;;  %v868_v14 = vsel %vm818_vm2, %v1699_v8, 0.0 }
 0x10f   : > { %2416 = vst [vmem:[#allocation10_spill] sm:$0xff] %v1807_v10  ;;  %v869_v23 = vadd.f32 %v868_v14, %v867_v3 }
 0x111   : > { %v452_v18 = vpop.f32.mrb[8].mxu0 }
 0x112   : > { %v1731_v20 = vsel %vm670_vm10, %v452_v18, 0.0  ;;  %v1331_v21 = vpop.f32.mrb[9].mxu0  ;;  %v532_v22 = vpop.f32.mrb[8].mxu1 }
 0x113   : > { %823 = vst.msk [vmem:[%s1627_s17 + $0x20] sm:$0xff] %vm818_vm2, %v1731_v20  ;;  %v455_v24 = vpop.f32.mrb[10].mxu0  ;;  %v1743_v26 = vsel %vm2361_vm11, %v532_v22, 0.0  ;;  %v1371_v27 = vpop.f32.mrb[9].mxu1  ;;  %v870_v21 = vsel %vm818_vm2, %v1731_v20, 0.0  ;;  %v598_v22 = vadd.s32 80, %v1601_v31 }
 0x114   : > { %v1747_v28 = vsel %vm671_vm12, %v455_v24, 0.0  ;;  %v1332_v29 = vpop.f32.mrb[11].mxu0  ;;  %843 = vst.msk [vmem:[%s1627_s17 + $0xc0] sm:$0xff] %vm818_vm2, %v1743_v26  ;;  %v535_v30 = vpop.f32.mrb[10].mxu1  ;;  %vm2364_vm11 = vcmp.lt.s32.totalorder %v1807_v10, 578  ;;  %v618_v24 = vadd.s32 240, %v1601_v31 }
 0x115   : > { %824 = vst.msk [vmem:[%s1627_s17 + $0x28] sm:$0xff] %vm818_vm2, %v1747_v28  ;;  %v1763_v35 = vsel %vm2359_vm13, %v535_v30, 0.0  ;;  %v1372_v40 = vpop.f32.mrb[11].mxu1  ;;  %vm2362_vm13 = vcmp.lt.s32.totalorder %v1769_v41, 578  ;;  %v599_v29 = vadd.s32 88, %v1601_v31  ;;  %v871_v30 = vadd.f32 %v870_v21, %v869_v23 }
 0x116   : > { %844 = vst.msk [vmem:[%s1627_s17 + $0xc8] sm:$0xff] %vm818_vm2, %v1763_v35  ;;  %v872_v46 = vsel %vm818_vm2, %v1747_v28, 0.0  ;;  %v600_v21 = vadd.s32 96, %v1601_v31  ;;  %v620_v23 = vadd.s32 256, %v1601_v31 }
 0x117   : > { %v1869_v3 = vadd.s32 %v1603_v32, %v599_v29  ;;  %v873_v14 = vadd.f32 %v872_v46, %v871_v30  ;;  %v601_v29 = vadd.s32 104, %v1601_v31 }
 0x119   : > { %v460_v48 = vpop.f32.mrb[12].mxu0 }
 0x11a   : > { %v1785_v54 = vsel %vm672_vm14, %v460_v48, 0.0  ;;  %v1335_v58 = vpop.f32.mrb[13].mxu0  ;;  %v540_v60 = vpop.f32.mrb[12].mxu1  ;;  %v1847_v48 = vadd.s32 %v1603_v32, %v598_v22 }
 0x11b   : > { %825 = vst.msk [vmem:[%s1627_s17 + $0x30] sm:$0xff] %vm818_vm2, %v1785_v54  ;;  %v463_v62 = vpop.f32.mrb[14].mxu0  ;;  %v1797_v1 = vsel %vm2360_vm15, %v540_v60, 0.0  ;;  %v1375_v2 = vpop.f32.mrb[13].mxu1  ;;  %vm674_vm15 = vcmp.lt.s32.totalorder %v1793_v63, 578 }
 0x11c   : > { %v1801_v4 = vsel %vm673_vm0, %v463_v62, 0.0  ;;  %v1336_v7 = vpop.f32.mrb[15].mxu0  ;;  %845 = vst.msk [vmem:[%s1627_s17 + $0xd0] sm:$0xff] %vm818_vm2, %v1797_v1  ;;  %v543_v9 = vpop.f32.mrb[14].mxu1  ;;  %v1861_v62 = vadd.s32 %v1603_v32, %v618_v24  ;;  %v874_v2 = vsel %vm818_vm2, %v1785_v54, 0.0 }
 0x11d   : > { %826 = vst.msk [vmem:[%s1627_s17 + $0x38] sm:$0xff] %vm818_vm2, %v1801_v4  ;;  %v1819_v17 = vsel %vm2362_vm13, %v543_v9, 0.0  ;;  %v1376_v18 = vpop.f32.mrb[15].mxu1  ;;  %vm675_vm13 = vcmp.lt.s32.totalorder %v1815_v16, 578  ;;  %v875_v22 = vadd.f32 %v874_v2, %v873_v14  ;;  %v876_v24 = vsel %vm818_vm2, %v1801_v4, 0.0 }
 0x11e   : > { %846 = vst.msk [vmem:[%s1627_s17 + $0xd8] sm:$0xff] %vm818_vm2, %v1819_v17  ;;  %2418 = vst [vmem:[#allocation12_spill] sm:$0xff] %v1861_v62  ;;  %v1879_v18 = vadd.s32 %v1603_v32, %v619_v45  ;;  %vm2368_vm7 = vcmp.lt.s32.totalorder %v1861_v62, 578  ;;  %v621_v45 = vadd.s32 264, %v1601_v31  ;;  %v623_v62 = vadd.s32 280, %v1601_v31 }
 0x11f   : > { %v877_v2 = vadd.f32 %v876_v24, %v875_v22 }
 0x120   : > { %2419 = vst [vmem:[#allocation13_spill] sm:$0xff] %v1879_v18  ;;  %vm2370_vm5 = vcmp.lt.s32.totalorder %v1879_v18, 578 }
 0x121   : > { %v468_v27 = vpop.f32.mrb[16].mxu0 }
 0x122   : > { %v1837_v40 = vsel %vm674_vm15, %v468_v27, 0.0  ;;  %v1339_v42 = vpop.f32.mrb[17].mxu0  ;;  %v548_v43 = vpop.f32.mrb[16].mxu1 }
 0x123   : > { %827 = vst.msk [vmem:[%s1627_s17 + $0x40] sm:$0xff] %vm818_vm2, %v1837_v40  ;;  %v471_v47 = vpop.f32.mrb[18].mxu0  ;;  %v1851_v51 = vsel %vm2364_vm11, %v548_v43, 0.0  ;;  %v1379_v53 = vpop.f32.mrb[17].mxu1  ;;  %vm676_vm11 = vcmp.lt.s32.totalorder %v1847_v48, 578  ;;  %v878_v46 = vsel %vm818_vm2, %v1837_v40, 0.0 }
 0x124   : > { %v1855_v58 = vsel %vm675_vm13, %v471_v47, 0.0  ;;  %v1340_v60 = vpop.f32.mrb[19].mxu0  ;;  %847 = vst.msk [vmem:[%s1627_s17 + $0xe0] sm:$0xff] %vm818_vm2, %v1851_v51  ;;  %v551_v61 = vpop.f32.mrb[18].mxu1  ;;  %v1901_v53 = vadd.s32 %v1603_v32, %v600_v21  ;;  %v1921_v21 = vadd.s32 %v1603_v32, %v601_v29  ;;  %v602_v29 = vadd.s32 112, %v1601_v31 }
 0x125   : > { %828 = vst.msk [vmem:[%s1627_s17 + $0x48] sm:$0xff] %vm818_vm2, %v1855_v58  ;;  %v1873_v7 = vsel %vm2366_vm9, %v551_v61, 0.0  ;;  %v1380_v9 = vpop.f32.mrb[19].mxu1  ;;  %vm2372_vm9 = vcmp.lt.s32.totalorder %v1869_v3, 578 }
 0x126   : > { %848 = vst.msk [vmem:[%s1627_s17 + $0xe8] sm:$0xff] %vm818_vm2, %v1873_v7  ;;  %v1953_v10 = vadd.s32 %v1603_v32, %v602_v29 }
 0x128   : > { %2422 = vst [vmem:[#allocation16_spill] sm:$0xff] %v1953_v10 }
 0x129   : > { %v476_v27 = vpop.f32.mrb[20].mxu0 }
 0x12a   : > { %v1891_v30 = vsel %vm676_vm11, %v476_v27, 0.0  ;;  %v1343_v42 = vpop.f32.mrb[21].mxu0  ;;  %v556_v43 = vpop.f32.mrb[20].mxu1 }
 0x12b   : > { %829 = vst.msk [vmem:[%s1627_s17 + $0x50] sm:$0xff] %vm818_vm2, %v1891_v30  ;;  %v479_v47 = vpop.f32.mrb[22].mxu0  ;;  %v1905_v60 = vsel %vm2368_vm7, %v556_v43, 0.0  ;;  %v1383_v61 = vpop.f32.mrb[21].mxu1  ;;  %v1915_v42 = vadd.s32 %v1603_v32, %v620_v23  ;;  %v879_v43 = vadd.f32 %v878_v46, %v877_v2  ;;  %v880_v23 = vsel %vm818_vm2, %v1855_v58, 0.0 }
 0x12c   : > { %v1909_v9 = vsel %vm2372_vm9, %v479_v47, 0.0  ;;  %v1344_v14 = vpop.f32.mrb[23].mxu0  ;;  %849 = vst.msk [vmem:[%s1627_s17 + $0xf0] sm:$0xff] %vm818_vm2, %v1905_v60  ;;  %v559_v27 = vpop.f32.mrb[22].mxu1  ;;  %v1931_v47 = vadd.s32 %v1603_v32, %v621_v45  ;;  %vm2385_vm7 = vcmp.lt.s32.totalorder %v1901_v53, 578  ;;  %v622_v61 = vadd.s32 272, %v1601_v31 }
 0x12d   : > { %2420 = vst [vmem:[#allocation14_spill] sm:$0xff] %v1915_v42  ;;  %830 = vst.msk [vmem:[%s1627_s17 + $0x58] sm:$0xff] %vm818_vm2, %v1909_v9  ;;  %v1925_v22 = vsel %vm2370_vm5, %v559_v27, 0.0  ;;  %v1384_v24 = vpop.f32.mrb[23].mxu1  ;;  %vm2379_vm3 = vcmp.lt.s32.totalorder %v1915_v42, 578  ;;  %v882_v46 = vsel %vm818_vm2, %v1891_v30, 0.0  ;;  %v881_v14 = vadd.f32 %v880_v23, %v879_v43 }
 0x12e   : > { %850 = vst.msk [vmem:[%s1627_s17 + $0xf8] sm:$0xff] %vm818_vm2, %v1925_v22  ;;  %2421 = vst [vmem:[#allocation15_spill] sm:$0xff] %v1931_v47  ;;  %vm2380_vm5 = vcmp.lt.s32.totalorder %v1921_v21, 578  ;;  %v603_v45 = vadd.s32 120, %v1601_v31  ;;  %vm2381_vm9 = vcmp.lt.s32.totalorder %v1931_v47, 578  ;;  %v1967_v15 = vadd.s32 %v1603_v32, %v622_v61 }
 0x12f   : > { %v884_v29 = vsel %vm818_vm2, %v1909_v9, 0.0  ;;  %v1985_v61 = vadd.s32 %v1603_v32, %v623_v62  ;;  %v605_v62 = vadd.s32 136, %v1601_v31 }
 0x130   : > { %2423 = vst [vmem:[#allocation17_spill] sm:$0xff] %v1967_v15 }
 0x131   : > { %v484_v2 = vpop.f32.mrb[24].mxu0  ;;  %2426 = vst [vmem:[#allocation20_spill] sm:$0xff] %v1985_v61 }
 0x132   : > { %v1945_v27 = vsel %vm2385_vm7, %v484_v2, 0.0  ;;  %v1347_v24 = vpop.f32.mrb[25].mxu0  ;;  %v564_v18 = vpop.f32.mrb[24].mxu1  ;;  %v883_v2 = vadd.f32 %v882_v46, %v881_v14  ;;  %vm2394_vm7 = vcmp.lt.s32.totalorder %v1985_v61, 578 }
 0x133   : > { %831 = vst.msk [vmem:[%s1627_s17 + $0x60] sm:$0xff] %vm818_vm2, %v1945_v27  ;;  %v487_v19 = vpop.f32.mrb[26].mxu0  ;;  %v1957_v43 = vsel %vm2379_vm3, %v564_v18, 0.0  ;;  %v1387_v23 = vpop.f32.mrb[25].mxu1  ;;  %v1975_v18 = vadd.s32 %v1603_v32, %v603_v45  ;;  %v886_v46 = vsel %vm818_vm2, %v1945_v27, 0.0  ;;  %vm2395_vm3 = vcmp.lt.s32.totalorder %v1953_v10, 578 }
 0x134   : > { %v1961_v24 = vsel %vm2380_vm5, %v487_v19, 0.0  ;;  %v1348_v41 = vpop.f32.mrb[27].mxu0  ;;  %851 = vst.msk [vmem:[%s1627_s17 + $0x100] sm:$0xff] %vm818_vm2, %v1957_v43  ;;  %v567_v33 = vpop.f32.mrb[26].mxu1  ;;  %v604_v45 = vadd.s32 128, %v1601_v31  ;;  %v885_v14 = vadd.f32 %v884_v29, %v883_v2  ;;  %vm2390_vm5 = vcmp.lt.s32.totalorder %v1967_v15, 578 }
 0x135   : > { %832 = vst.msk [vmem:[%s1627_s17 + $0x68] sm:$0xff] %vm818_vm2, %v1961_v24  ;;  %2424 = vst [vmem:[#allocation18_spill] sm:$0xff] %v1975_v18  ;;  %v1979_v19 = vsel %vm2381_vm9, %v567_v33, 0.0  ;;  %v1388_v41 = vpop.f32.mrb[27].mxu1  ;;  %v624_v33 = vadd.s32 288, %v1601_v31  ;;  %vm2393_vm9 = vcmp.lt.s32.totalorder %v1975_v18, 578 }
 0x136   : > { %2425 = vst [vmem:[#allocation19_spill] sm:$0xff] %v1979_v19  ;;  %852 = vst.msk [vmem:[%s1627_s17 + $0x108] sm:$0xff] %vm818_vm2, %v1979_v19  ;;  %v887_v41 = vadd.f32 %v886_v46, %v885_v14  ;;  %v625_v2 = vadd.s32 296, %v1601_v31  ;;  %v888_v29 = vsel %vm818_vm2, %v1961_v24, 0.0  ;;  %v2007_v46 = vadd.s32 %v1603_v32, %v604_v45 }
 0x137   : > { %v2021_v37 = vadd.s32 %v1603_v32, %v624_v33  ;;  %v606_v15 = vadd.s32 144, %v1601_v31 }
 0x138   : > { %2427 = vst [vmem:[#allocation21_spill] sm:$0xff] %v2007_v46  ;;  %v2039_v33 = vadd.s32 %v1603_v32, %v625_v2 }
 0x139   : > { %v492_v23 = vpop.f32.mrb[28].mxu0  ;;  %2428 = vst [vmem:[#allocation22_spill] sm:$0xff] %v2021_v37  ;;  %v2059_v61 = vadd.s32 %v1603_v32, %v606_v15 }
 0x13a   : > { %v1997_v47 = vsel %vm2395_vm3, %v492_v23, 0.0  ;;  %v1351_v42 = vpop.f32.mrb[29].mxu0  ;;  %v572_v11 = vpop.f32.mrb[28].mxu1  ;;  %2429 = vst [vmem:[#allocation23_spill] sm:$0xff] %v2039_v33  ;;  %vm2407_vm3 = vcmp.lt.s32.totalorder %v2039_v33, 578 }
 0x13b   : > { %833 = vst.msk [vmem:[%s1627_s17 + $0x70] sm:$0xff] %vm818_vm2, %v1997_v47  ;;  %v495_v59 = vpop.f32.mrb[30].mxu0  ;;  %v2011_v42 = vsel %vm2390_vm5, %v572_v11, 0.0  ;;  %v1391_v14 = vpop.f32.mrb[29].mxu1  ;;  %v890_v45 = vsel %vm818_vm2, %v1997_v47, 0.0  ;;  %v2029_v11 = vadd.s32 %v1603_v32, %v605_v62  ;;  %vm682_vm5 = vcmp.lt.s32.totalorder %v2007_v46, 578 }
 0x13c   : > { %v2015_v23 = vsel %vm2393_vm9, %v495_v59, 0.0  ;;  %v1352_v55 = vpop.f32.mrb[31].mxu0  ;;  %853 = vst.msk [vmem:[%s1627_s17 + $0x110] sm:$0xff] %vm818_vm2, %v2011_v42  ;;  %v575_v39 = vpop.f32.mrb[30].mxu1  ;;  %v889_v14 = vadd.f32 %v888_v29, %v887_v41  ;;  %vm2400_vm9 = vcmp.lt.s32.totalorder %v2021_v37, 578  ;;  %v607_v41 = vadd.s32 152, %v1601_v31 }
 0x13d   : > { %834 = vst.msk [vmem:[%s1627_s17 + $0x78] sm:$0xff] %vm818_vm2, %v2015_v23  ;;  %v2033_v59 = vsel %vm2394_vm7, %v575_v39, 0.0  ;;  %v1392_v55 = vpop.f32.mrb[31].mxu1  ;;  %v892_v39 = vsel %vm818_vm2, %v2015_v23, 0.0  ;;  %vm2401_vm7 = vcmp.lt.s32.totalorder %v2029_v11, 578  ;;  %2431 = vst [vmem:[#allocation25_spill] sm:$0xff] %v2059_v61 }
 0x13e   : > { %854 = vst.msk [vmem:[%s1627_s17 + $0x118] sm:$0xff] %vm818_vm2, %v2033_v59  ;;  %v891_v18 = vadd.f32 %v890_v45, %v889_v14  ;;  %v2076_v15 = vadd.s32 %v1603_v32, %v607_v41  ;;  %v904_v37 = vsel %vm818_vm2, %v1667_v57, 0.0 }
 0x140   : > { %2432 = vst [vmem:[#allocation26_spill] sm:$0xff] %v2076_v15 }
 0x141   : > { %v500_v62 = vpop.f32.mrb[32].mxu0 }
 0x142   : > { %v2050_v2 = vsel %vm682_vm5, %v500_v62, 0.0  ;;  %v1355_v29 = vpop.f32.mrb[33].mxu0  ;;  %v580_v55 = vpop.f32.mrb[32].mxu1 }
 0x143   : > { %2430 = vst [vmem:[#allocation24_spill] sm:$0xff] %v2050_v2  ;;  %835 = vst.msk [vmem:[%s1627_s17 + $0x80] sm:$0xff] %vm818_vm2, %v2050_v2  ;;  %v894_v45 = vsel %vm818_vm2, %v2050_v2, 0.0  ;;  %v503_v14 = vpop.f32.mrb[34].mxu0  ;;  %v2063_v31 = vsel %vm2400_vm9, %v580_v55, 0.0  ;;  %v1395_v62 = vpop.f32.mrb[33].mxu1  ;;  %v893_v29 = vadd.f32 %v892_v39, %v891_v18 }
 0x144   : > { %v2067_v46 = vsel %vm2401_vm7, %v503_v14, 0.0  ;;  %v1356_v10 = vpop.f32.mrb[35].mxu0  ;;  %855 = vst.msk [vmem:[%s1627_s17 + $0x120] sm:$0xff] %vm818_vm2, %v2063_v31  ;;  %v583_v2 = vpop.f32.mrb[34].mxu1  ;;  %vm684_vm9 = vcmp.lt.s32.totalorder %v2059_v61, 578  ;;  %vm685_vm7 = vcmp.lt.s32.totalorder %v2076_v15, 578 }
 0x145   : > { %836 = vst.msk [vmem:[%s1627_s17 + $0x88] sm:$0xff] %vm818_vm2, %v2067_v46  ;;  %v2080_v55 = vsel %vm2407_vm3, %v583_v2, 0.0  ;;  %v1396_v18 = vpop.f32.mrb[35].mxu1  ;;  %v895_v39 = vadd.f32 %v894_v45, %v893_v29  ;;  %v896_v10 = vsel %vm818_vm2, %v2067_v46, 0.0  ;;  %v910_v61 = vsel %vm818_vm2, %v1743_v26, 0.0 }
 0x146   : > { %856 = vst.msk [vmem:[%s1627_s17 + $0x128] sm:$0xff] %vm818_vm2, %v2080_v55  ;;  %vm1144_vm3 = vcmask 122880  }
 0x147   : > { %v897_v32 = vadd.f32 %v896_v10, %v895_v39 }
 0x149   : > { %v508_v14 = vpop.f32.mrb[36].mxu0 }
 0x14a   : > { %v2091_v41 = vsel %vm684_vm9, %v508_v14, 0.0  ;;  %v1359_v2 = vpop.f32.mrb[37].mxu0  ;;  %v902_v14 = vsel %vm818_vm2, %v1647_v50, 0.0 }
 0x14b   : > { %837 = vst.msk [vmem:[%s1627_s17 + $0x90] sm:$0xff] %vm818_vm2, %v2091_v41  ;;  %v898_v45 = vsel %vm818_vm2, %v2091_v41, 0.0  ;;  %v511_v62 = vpop.f32.mrb[38].mxu0 }
 0x14c   : > { %v899_v29 = vadd.f32 %v898_v45, %v897_v32  ;;  %v2100_v18 = vsel %vm685_vm7, %v511_v62, 0.0  ;;  %v1360_v33 = vpop.f32.mrb[39].mxu0  ;;  %v906_v45 = vsel %vm818_vm2, %v1695_v6, 0.0 }
 0x14d   : > { %838 = vst.msk [vmem:[%s1627_s17 + $0x98] sm:$0xff] %vm818_vm2, %v2100_v18  ;;  %v900_v39 = vsel %vm818_vm2, %v2100_v18, 0.0  ;;  %v908_v33 = vsel %vm818_vm2, %v1715_v13, 0.0 }
 0x14e   : > { %v901_v10 = vadd.f32 %v900_v39, %v899_v29  ;;  %v912_v39 = vsel %vm818_vm2, %v1763_v35, 0.0 }
 0x150   : > { %v903_v2 = vadd.f32 %v902_v14, %v901_v10  ;;  %v914_v14 = vsel %vm818_vm2, %v1797_v1, 0.0 }
 0x152   : > { %v905_v32 = vadd.f32 %v904_v37, %v903_v2  ;;  %v916_v2 = vsel %vm818_vm2, %v1819_v17, 0.0 }
 0x154   : > { %v907_v62 = vadd.f32 %v906_v45, %v905_v32  ;;  %v918_v45 = vsel %vm818_vm2, %v1851_v51, 0.0 }
 0x156   : > { %v909_v15 = vadd.f32 %v908_v33, %v907_v62  ;;  %v920_v33 = vsel %vm818_vm2, %v1873_v7, 0.0 }
 0x158   : > { %v911_v29 = vadd.f32 %v910_v61, %v909_v15  ;;  %v922_v15 = vsel %vm818_vm2, %v1905_v60, 0.0 }
 0x15a   : > { %v913_v10 = vadd.f32 %v912_v39, %v911_v29  ;;  %v924_v39 = vsel %vm818_vm2, %v1925_v22, 0.0 }
 0x15c   : > { %v915_v37 = vadd.f32 %v914_v14, %v913_v10  ;;  %v926_v14 = vsel %vm818_vm2, %v1957_v43, 0.0 }
 0x15e   : > { %v917_v32 = vadd.f32 %v916_v2, %v915_v37  ;;  %v928_v2 = vsel %vm818_vm2, %v1979_v19, 0.0 }
 0x160   : > { %v919_v62 = vadd.f32 %v918_v45, %v917_v32  ;;  %v930_v45 = vsel %vm818_vm2, %v2011_v42, 0.0 }
 0x162   : > { %v921_v61 = vadd.f32 %v920_v33, %v919_v62  ;;  %v932_v33 = vsel %vm818_vm2, %v2033_v59, 0.0 }
 0x164   : > { %v923_v29 = vadd.f32 %v922_v15, %v921_v61  ;;  %v934_v61 = vsel %vm818_vm2, %v2063_v31, 0.0 }
 0x166   : > { %v925_v10 = vadd.f32 %v924_v39, %v923_v29  ;;  %v936_v39 = vsel %vm818_vm2, %v2080_v55, 0.0 }
 0x168   : > { %v927_v37 = vadd.f32 %v926_v14, %v925_v10 }
 0x16a   : > { %v929_v32 = vadd.f32 %v928_v2, %v927_v37 }
 0x16c   : > { %v931_v62 = vadd.f32 %v930_v45, %v929_v32 }
 0x16e   : > { %v933_v15 = vadd.f32 %v932_v33, %v931_v62  ;;  %v947_v62 = vstv %s1414_s19 }
 0x170   : > { %v935_v29 = vadd.f32 %v934_v61, %v933_v15 }
 0x172   : > { %v937_v10 = vadd.f32 %v936_v39, %v935_v29 }
 0x174   : > { %v938_v14 = vrot.slane %v937_v10, 4 }
 0x176   : > { %v939_v19 = vadd.f32 %v938_v14, %v937_v10 }
 0x178   : > { %v940_v37 = vrot.slane %v939_v19, 2 }
 0x17a   : > { %v941_v2 = vadd.f32 %v940_v37, %v939_v19 }
 0x17c   : > { %v942_v32 = vrot.slane %v941_v2, 1 }
 0x17e   : > { %v943_v45 = vadd.f32 %v942_v32, %v941_v2 }
 0x180   : > { %1145 = vst.msk [vmem:[%s2148_s22] sm:$0x1] %vm1144_vm3, %v943_v45  ;;  %v2152_v33 = vmul.f32 %v947_v62, %v943_v45 }
 0x182   : > { %v967_v61 = vsub.f32 %v2091_v41, %v2152_v33  ;;  %v968_v19 = vsub.f32 %v2100_v18, %v2152_v33  ;;  %v949_v15 = vsub.f32 %v1635_v44, %v2152_v33  ;;  %v950_v29 = vsub.f32 %v1651_v52, %v2152_v33 }
 0x183   : > { %v951_v39 = vsub.f32 %v1683_v0, %v2152_v33  ;;  %v952_v10 = vsub.f32 %v1699_v8, %v2152_v33  ;;  %v953_v2 = vsub.f32 %v1731_v20, %v2152_v33  ;;  %v954_v0 = vsub.f32 %v1747_v28, %v2152_v33 }
 0x184   : > { %v987_v14 = vsel %vm666_vm1, %v949_v15, 0.0  ;;  %v988_v37 = vsel %vm667_vm4, %v950_v29, 0.0  ;;  %v955_v36 = vsub.f32 %v1785_v54, %v2152_v33  ;;  %v956_v15 = vsub.f32 %v1801_v4, %v2152_v33 }
 0x185   : > { %v989_v44 = vsel %vm668_vm6, %v951_v39, 0.0  ;;  %v1025_v32 = vmul.f32 %v987_v14, %v987_v14  ;;  %v1026_v52 = vmul.f32 %v988_v37, %v988_v37  ;;  %v990_v8 = vsel %vm669_vm8, %v952_v10, 0.0 }
 0x186   : > { %v1027_v45 = vmul.f32 %v989_v44, %v989_v44  ;;  %v991_v38 = vsel %vm670_vm10, %v953_v2, 0.0  ;;  %v1028_v62 = vmul.f32 %v990_v8, %v990_v8  ;;  %v992_v28 = vsel %vm671_vm12, %v954_v0, 0.0 }
 0x187   : > { %v1063_v20 = vsel %vm818_vm2, %v1025_v32, 0.0  ;;  %v1064_v49 = vsel %vm818_vm2, %v1026_v52, 0.0  ;;  %v1029_v29 = vmul.f32 %v991_v38, %v991_v38  ;;  %v957_v54 = vsub.f32 %v1837_v40, %v2152_v33 }
 0x188   : > { %v1065_v56 = vadd.f32 %v1064_v49, %v1063_v20  ;;  %v1066_v39 = vsel %vm818_vm2, %v1027_v45, 0.0  ;;  %v993_v5 = vsel %vm672_vm14, %v955_v36, 0.0  ;;  %v1030_v14 = vmul.f32 %v992_v28, %v992_v28 }
 0x189   : > { %v1068_v37 = vsel %vm818_vm2, %v1028_v62, 0.0  ;;  %v958_v4 = vsub.f32 %v1855_v58, %v2152_v33  ;;  %v994_v12 = vsel %vm673_vm0, %v956_v15, 0.0  ;;  %v1031_v44 = vmul.f32 %v993_v5, %v993_v5 }
 0x18a   : > { %v1067_v10 = vadd.f32 %v1066_v39, %v1065_v56  ;;  %v1070_v32 = vsel %vm818_vm2, %v1029_v29, 0.0  ;;  %v959_v40 = vsub.f32 %v1891_v30, %v2152_v33  ;;  %v995_v25 = vsel %vm674_vm15, %v957_v54, 0.0 }
 0x18b   : > { %v1032_v0 = vmul.f32 %v994_v12, %v994_v12  ;;  %v1072_v8 = vsel %vm818_vm2, %v1030_v14, 0.0  ;;  %v960_v58 = vsub.f32 %v1909_v9, %v2152_v33  ;;  %v996_v34 = vsel %vm675_vm13, %v958_v4, 0.0  ;;  %v2437_v4 = vld [vmem:[#allocation16_spill] sm:$0xff] }
 0x18c   : > { %v1069_v2 = vadd.f32 %v1068_v37, %v1067_v10  ;;  %v1033_v36 = vmul.f32 %v995_v25, %v995_v25  ;;  %v1074_v38 = vsel %vm818_vm2, %v1031_v44, 0.0  ;;  %v961_v30 = vsub.f32 %v1945_v27, %v2152_v33  ;;  %v2436_v37 = vld [vmem:[#allocation24_spill] sm:$0xff] }
 0x18d   : > { %v997_v63 = vsel %vm676_vm11, %v959_v40, 0.0  ;;  %v1034_v20 = vmul.f32 %v996_v34, %v996_v34  ;;  %v1076_v49 = vsel %vm818_vm2, %v1032_v0, 0.0  ;;  %v962_v9 = vsub.f32 %v1961_v24, %v2152_v33  ;;  %v2455_v0 = vld [vmem:[#allocation7_spill] sm:$0xff] }
 0x18e   : > { %v1071_v52 = vadd.f32 %v1070_v32, %v1069_v2  ;;  %vm2433_vm1 = vcmp.lt.s32.totalorder %v1869_v3, 578  ;;  %v1035_v28 = vmul.f32 %v997_v63, %v997_v63  ;;  %v1078_v56 = vsel %vm818_vm2, %v1033_v36, 0.0  ;;  %v2439_v32 = vld [vmem:[#allocation18_spill] sm:$0xff] }
 0x18f   : > { %v998_v16 = vsel %vm2433_vm1, %v960_v58, 0.0  ;;  %v963_v27 = vsub.f32 %v1997_v47, %v2152_v33  ;;  %vm2434_vm4 = vcmp.lt.s32.totalorder %v1901_v53, 578  ;;  %v1080_v54 = vsel %vm818_vm2, %v1034_v20, 0.0 }
 0x190   : > { %v1073_v45 = vadd.f32 %v1072_v8, %v1071_v52  ;;  %v999_v48 = vsel %vm2434_vm4, %v961_v30, 0.0  ;;  %v1036_v39 = vmul.f32 %v998_v16, %v998_v16  ;;  %v964_v24 = vsub.f32 %v2015_v23, %v2152_v33 }
 0x191   : > { %vm2435_vm6 = vcmp.lt.s32.totalorder %v1921_v21, 578  ;;  %v1037_v10 = vmul.f32 %v999_v48, %v999_v48  ;;  %v1082_v14 = vsel %vm818_vm2, %v1035_v28, 0.0  ;;  %v965_v47 = vsub.f32 %v2436_v37, %v2152_v33 }
 0x192   : > { %v1075_v62 = vadd.f32 %v1074_v38, %v1073_v45  ;;  %v1000_v3 = vsel %vm2435_vm6, %v962_v9, 0.0  ;;  %vm2438_vm8 = vcmp.lt.s32.totalorder %v2437_v4, 578  ;;  %v1084_v44 = vsel %vm818_vm2, %v1036_v39, 0.0 }
 0x193   : > { %v1001_v53 = vsel %vm2438_vm8, %v963_v27, 0.0  ;;  %v1038_v2 = vmul.f32 %v1000_v3, %v1000_v3  ;;  %v966_v23 = vsub.f32 %v2067_v46, %v2152_v33  ;;  %vm2440_vm10 = vcmp.lt.s32.totalorder %v2439_v32, 578  ;;  %v2445_v27 = vld [vmem:[#allocation2_spill] sm:$0xff] }
 0x194   : > { %v1077_v15 = vadd.f32 %v1076_v49, %v1075_v62  ;;  %v1002_v21 = vsel %vm2440_vm10, %v964_v24, 0.0  ;;  %v1039_v25 = vmul.f32 %v1001_v53, %v1001_v53  ;;  %v1086_v52 = vsel %vm818_vm2, %v1037_v10, 0.0  ;;  %v2449_v10 = vld [vmem:[#allocation4_spill] sm:$0xff]  ;;  %v2451_v53 = vld [vmem:[#allocation5_spill] sm:$0xff]  ;;  %v2453_v32 = vld [vmem:[#allocation6_spill] sm:$0xff] }
 0x195   : > { %v1003_v8 = vsel %vm682_vm5, %v965_v47, 0.0  ;;  %v1040_v34 = vmul.f32 %v1002_v21, %v1002_v21  ;;  %v1088_v45 = vsel %vm818_vm2, %v1038_v2, 0.0  ;;  %vm2442_vm11 = vcmp.lt.s32.totalorder %v2029_v11, 578  ;;  %v2459_v62 = vld [vmem:[#allocation9_spill] sm:$0xff] }
 0x196   : > { %v1079_v29 = vadd.f32 %v1078_v56, %v1077_v15  ;;  %v1004_v36 = vsel %vm2442_vm11, %v966_v23, 0.0  ;;  %v1041_v30 = vmul.f32 %v1003_v8, %v1003_v8  ;;  %v1090_v46 = vsel %vm818_vm2, %v1039_v25, 0.0 }
 0x197   : > { %v969_v63 = vsub.f32 %v1647_v50, %v2152_v33  ;;  %v1005_v20 = vsel %vm684_vm9, %v967_v61, 0.0  ;;  %v1042_v9 = vmul.f32 %v1004_v36, %v1004_v36  ;;  %v1092_v16 = vsel %vm818_vm2, %v1040_v34, 0.0  ;;  %v2457_v36 = vld [vmem:[#allocation8_spill] sm:$0xff] }
 0x198   : > { %v1081_v5 = vadd.f32 %v1080_v54, %v1079_v29  ;;  %v970_v11 = vsub.f32 %v1667_v57, %v2152_v33  ;;  %v1006_v28 = vsel %vm685_vm7, %v968_v19, 0.0  ;;  %v1043_v56 = vmul.f32 %v1005_v20, %v1005_v20  ;;  %v2447_v54 = vld [vmem:[#allocation3_spill] sm:$0xff] }
 0x199   : > { %v1094_v41 = vsel %vm818_vm2, %v1041_v30, 0.0  ;;  %v971_v61 = vsub.f32 %v1695_v6, %v2152_v33  ;;  %vm2446_vm5 = vcmp.lt.s32.totalorder %v2445_v27, 578  ;;  %v1044_v39 = vmul.f32 %v1006_v28, %v1006_v28 }
 0x19a   : > { %v1083_v12 = vadd.f32 %v1082_v14, %v1081_v5  ;;  %v1007_v48 = vsel %vm2446_vm5, %v969_v63, 0.0  ;;  %v1096_v57 = vsel %vm818_vm2, %v1042_v9, 0.0  ;;  %v972_v18 = vsub.f32 %v1715_v13, %v2152_v33 }
 0x19b   : > { %vm2448_vm9 = vcmp.lt.s32.totalorder %v2447_v54, 578  ;;  %v1045_v3 = vmul.f32 %v1007_v48, %v1007_v48  ;;  %v1098_v5 = vsel %vm818_vm2, %v1043_v56, 0.0  ;;  %v973_v6 = vsub.f32 %v1743_v26, %v2152_v33 }
 0x19c   : > { %v1085_v40 = vadd.f32 %v1084_v44, %v1083_v12  ;;  %v1008_v19 = vsel %vm2448_vm9, %v970_v11, 0.0  ;;  %vm2450_vm7 = vcmp.lt.s32.totalorder %v2449_v10, 578  ;;  %v1100_v4 = vsel %vm818_vm2, %v1044_v39, 0.0  ;;  %v2461_v11 = vld [vmem:[#allocation10_spill] sm:$0xff]  ;;  %v2465_v39 = vld [vmem:[#allocation12_spill] sm:$0xff] }
 0x19d   : > { %v1009_v14 = vsel %vm2450_vm7, %v971_v61, 0.0  ;;  %v1046_v47 = vmul.f32 %v1008_v19, %v1008_v19  ;;  %v974_v13 = vsub.f32 %v1763_v35, %v2152_v33  ;;  %vm2452_vm12 = vcmp.lt.s32.totalorder %v2451_v53, 578 }
 0x19e   : > { %v1087_v58 = vadd.f32 %v1086_v52, %v1085_v40  ;;  %v1010_v12 = vsel %vm2452_vm12, %v972_v18, 0.0  ;;  %v1047_v44 = vmul.f32 %v1009_v14, %v1009_v14  ;;  %v1102_v23 = vsel %vm818_vm2, %v1045_v3, 0.0  ;;  %v2468_v3 = vld [vmem:[#allocation13_spill] sm:$0xff] }
 0x19f   : > { %v975_v26 = vsub.f32 %v1797_v1, %v2152_v33  ;;  %vm2454_vm13 = vcmp.lt.s32.totalorder %v2453_v32, 578  ;;  %v1048_v25 = vmul.f32 %v1010_v12, %v1010_v12  ;;  %v1104_v52 = vsel %vm818_vm2, %v1046_v47, 0.0 }
 0x1a0   : > { %v1089_v38 = vadd.f32 %v1088_v45, %v1087_v58  ;;  %v1011_v21 = vsel %vm2454_vm13, %v973_v6, 0.0  ;;  %v976_v35 = vsub.f32 %v1819_v17, %v2152_v33  ;;  %vm2456_vm14 = vcmp.lt.s32.totalorder %v2455_v0, 578  ;;  %v2476_v0 = vld [vmem:[#allocation20_spill] sm:$0xff] }
 0x1a1   : > { %v1012_v8 = vsel %vm2456_vm14, %v974_v13, 0.0  ;;  %v1049_v34 = vmul.f32 %v1011_v21, %v1011_v21  ;;  %v1106_v45 = vsel %vm818_vm2, %v1047_v44, 0.0  ;;  %v977_v1 = vsub.f32 %v1851_v51, %v2152_v33  ;;  %v2474_v21 = vld [vmem:[#allocation17_spill] sm:$0xff] }
 0x1a2   : > { %v1091_v49 = vadd.f32 %v1090_v46, %v1089_v38  ;;  %vm2458_vm15 = vcmp.lt.s32.totalorder %v2457_v36, 578  ;;  %v1050_v46 = vmul.f32 %v1012_v8, %v1012_v8  ;;  %v1108_v63 = vsel %vm818_vm2, %v1048_v25, 0.0 }
 0x1a3   : > { %v1013_v38 = vsel %vm2458_vm15, %v975_v26, 0.0  ;;  %v978_v17 = vsub.f32 %v1873_v7, %v2152_v33  ;;  %vm2460_vm0 = vcmp.lt.s32.totalorder %v2459_v62, 578  ;;  %v979_v51 = vsub.f32 %v1905_v60, %v2152_v33 }
 0x1a4   : > { %v1093_v50 = vadd.f32 %v1092_v16, %v1091_v49  ;;  %v1014_v20 = vsel %vm2460_vm0, %v976_v35, 0.0  ;;  %v1051_v9 = vmul.f32 %v1013_v38, %v1013_v38  ;;  %v1110_v16 = vsel %vm818_vm2, %v1049_v34, 0.0 }
 0x1a5   : > { %vm2462_vm1 = vcmp.lt.s32.totalorder %v2461_v11, 578  ;;  %v1112_v56 = vsel %vm818_vm2, %v1050_v46, 0.0  ;;  %v980_v7 = vsub.f32 %v1925_v22, %v2152_v33  ;;  %v981_v60 = vsub.f32 %v1957_v43, %v2152_v33  ;;  %v2480_v46 = vld [vmem:[#allocation23_spill] sm:$0xff] }
 0x1a6   : > { %v1095_v29 = vadd.f32 %v1094_v41, %v1093_v50  ;;  %v1015_v15 = vsel %vm2462_vm1, %v977_v1, 0.0  ;;  %v1052_v50 = vmul.f32 %v1014_v20, %v1014_v20  ;;  %v2463_v41 = vld [vmem:[#allocation11_spill] sm:$0xff]  ;;  %vm2466_vm6 = vcmp.lt.s32.totalorder %v2465_v39, 578  ;;  %v2478_v1 = vld [vmem:[#allocation22_spill] sm:$0xff] }
 0x1a7   : > { %vm2464_vm4 = vcmp.lt.s32.totalorder %v2463_v41, 578  ;;  %v1053_v48 = vmul.f32 %v1015_v15, %v1015_v15  ;;  %vm2469_vm8 = vcmp.lt.s32.totalorder %v2468_v3, 578  ;;  %v983_v43 = vsub.f32 %v2011_v42, %v2152_v33 }
 0x1a8   : > { %v1097_v24 = vadd.f32 %v1096_v57, %v1095_v29  ;;  %v1016_v61 = vsel %vm2464_vm4, %v978_v17, 0.0  ;;  %v1114_v29 = vsel %vm818_vm2, %v1051_v9, 0.0  ;;  %v1017_v57 = vsel %vm2466_vm6, %v979_v51, 0.0 }
 0x1a9   : > { %v1054_v54 = vmul.f32 %v1016_v61, %v1016_v61  ;;  %v1116_v19 = vsel %vm818_vm2, %v1052_v50, 0.0  ;;  %v1055_v10 = vmul.f32 %v1017_v57, %v1017_v57  ;;  %v1118_v14 = vsel %vm818_vm2, %v1053_v48, 0.0 }
 0x1aa   : > { %v1099_v37 = vadd.f32 %v1098_v5, %v1097_v24  ;;  %v2467_v24 = vld [vmem:[#allocation19_spill] sm:$0xff]  ;;  %v1018_v5 = vsel %vm2469_vm8, %v980_v7, 0.0  ;;  %v984_v12 = vsub.f32 %v2033_v59, %v2152_v33  ;;  %v985_v42 = vsub.f32 %v2063_v31, %v2152_v33 }
 0x1ab   : > { %v982_v22 = vsub.f32 %v2467_v24, %v2152_v33  ;;  %v1056_v13 = vmul.f32 %v1018_v5, %v1018_v5  ;;  %v1120_v53 = vsel %vm818_vm2, %v1054_v54, 0.0  ;;  %v1122_v32 = vsel %vm818_vm2, %v1055_v10, 0.0 }
 0x1ac   : > { %v1101_v2 = vadd.f32 %v1100_v4, %v1099_v37  ;;  %v2470_v37 = vld [vmem:[#allocation14_spill] sm:$0xff]  ;;  %vm2475_vm5 = vcmp.lt.s32.totalorder %v2474_v21, 578  ;;  %v986_v59 = vsub.f32 %v2080_v55, %v2152_v33  ;;  %vm2477_vm9 = vcmp.lt.s32.totalorder %v2476_v0, 578 }
 0x1ad   : > { %vm2471_vm10 = vcmp.lt.s32.totalorder %v2470_v37, 578  ;;  %v1124_v35 = vsel %vm818_vm2, %v1056_v13, 0.0  ;;  %v1022_v8 = vsel %vm2477_vm9, %v984_v12, 0.0  ;;  %vm2479_vm7 = vcmp.lt.s32.totalorder %v2478_v1, 578 }
 0x1ae   : > { %v1103_v40 = vadd.f32 %v1102_v23, %v1101_v2  ;;  %v1019_v47 = vsel %vm2471_vm10, %v981_v60, 0.0  ;;  %v2472_v2 = vld [vmem:[#allocation15_spill] sm:$0xff]  ;;  %v1023_v31 = vsel %vm2479_vm7, %v985_v42, 0.0  ;;  %v1060_v38 = vmul.f32 %v1022_v8, %v1022_v8 }
 0x1af   : > { %vm2473_vm11 = vcmp.lt.s32.totalorder %v2472_v2, 578  ;;  %v1057_v26 = vmul.f32 %v1019_v47, %v1019_v47  ;;  %vm2481_vm12 = vcmp.lt.s32.totalorder %v2480_v46, 578  ;;  %v1061_v62 = vmul.f32 %v1023_v31, %v1023_v31 }
 0x1b0   : > { %v1105_v58 = vadd.f32 %v1104_v52, %v1103_v40  ;;  %v1020_v44 = vsel %vm2473_vm11, %v982_v22, 0.0  ;;  %v1021_v40 = vsel %vm2475_vm5, %v983_v43, 0.0 }
 0x1b1   : > { %v1058_v52 = vmul.f32 %v1020_v44, %v1020_v44  ;;  %v1059_v34 = vmul.f32 %v1021_v40, %v1021_v40 }
 0x1b2   : > { %v1107_v30 = vadd.f32 %v1106_v45, %v1105_v58  ;;  %v1126_v45 = vsel %vm818_vm2, %v1057_v26, 0.0 }
 0x1b3   : > { %v1130_v55 = vsel %vm818_vm2, %v1059_v34, 0.0 }
 0x1b4   : > { %v1109_v49 = vadd.f32 %v1108_v63, %v1107_v30  ;;  %v1128_v30 = vsel %vm818_vm2, %v1058_v52, 0.0  ;;  %v1024_v63 = vsel %vm2481_vm12, %v986_v59, 0.0 }
 0x1b5   : > { %v1062_v20 = vmul.f32 %v1024_v63, %v1024_v63 }
 0x1b6   : > { %v1111_v28 = vadd.f32 %v1110_v16, %v1109_v49  ;;  %v1132_v49 = vsel %vm818_vm2, %v1060_v38, 0.0  ;;  %v1134_v16 = vsel %vm818_vm2, %v1061_v62, 0.0 }
 0x1b7   : > { %v1136_v11 = vsel %vm818_vm2, %v1062_v20, 0.0 }
 0x1b8   : > { %v1113_v27 = vadd.f32 %v1112_v56, %v1111_v28 }
 0x1ba   : > { %v1115_v18 = vadd.f32 %v1114_v29, %v1113_v27 }
 0x1bc   : > { %v1117_v6 = vadd.f32 %v1116_v19, %v1115_v18 }
 0x1be   : > { %v1119_v4 = vadd.f32 %v1118_v14, %v1117_v6 }
 0x1c0   : > { %v1121_v23 = vadd.f32 %v1120_v53, %v1119_v4 }
 0x1c2   : > { %v1123_v25 = vadd.f32 %v1122_v32, %v1121_v23 }
 0x1c4   : > { %v1125_v58 = vadd.f32 %v1124_v35, %v1123_v25 }
 0x1c6   : > { %v1127_v36 = vadd.f32 %v1126_v45, %v1125_v58 }
 0x1c8   : > { %v1129_v17 = vadd.f32 %v1128_v30, %v1127_v36 }
 0x1ca   : > { %v1131_v33 = vadd.f32 %v1130_v55, %v1129_v17 }
 0x1cc   : > { %v1133_v9 = vadd.f32 %v1132_v49, %v1131_v33 }
 0x1ce   : > { %v1135_v51 = vadd.f32 %v1134_v16, %v1133_v9 }
 0x1d0   : > { %v1137_v15 = vadd.f32 %v1136_v11, %v1135_v51 }
 0x1d2   : > { %v1138_v28 = vrot.slane %v1137_v15, 4 }
 0x1d4   : > { %v1139_v50 = vadd.f32 %v1138_v28, %v1137_v15 }
 0x1d6   : > { %v1140_v56 = vrot.slane %v1139_v50, 2 }
 0x1d8   : > { %v1141_v7 = vadd.f32 %v1140_v56, %v1139_v50 }
 0x1da   : > { %v1142_v41 = vrot.slane %v1141_v7, 1 }
 0x1dc   : > { %v1143_v61 = vadd.f32 %v1142_v41, %v1141_v7 }
 0x1de   : > { %1146 = vst.msk [vmem:[%s2148_s22 + $0x1] sm:$0x1] %vm1144_vm3, %v1143_v61 }
 0x1df PF: > { %s14_s12 = sadd.s32 1, %s1460_s12  }
 0x1e0   : > { %p11_p7 = scmp.ge.s32.totalorder %s14_s12, 4  }
 0x1e2   :  { %13 = sbr.rel (!%p11_p7) target bundleno = 1 (0x1), region = 70 }

// kernel: tile.13
= control target key start
LH: loop header
LB: loop body
LE: loop exit
PB: predicated region body
PF: predicated region fallthrough
CT: control target
= control target key end

     0   :  { %s58_s0 = inlined_call_operand.vmem [shape: f32[16], index: 0, kind: input, shape index: {}]   ;;  %s59_s1 = inlined_call_operand.vmem [shape: f32[49,16], index: 1, kind: output, shape index: {}]  }
   0x1   :  { %v4_v0 = vld [vmem:[%s58_s0] ss:$0 sm:$0xff] }
   0x2   :  { %5 = vst [vmem:[%s59_s1] sm:$0xff] %v4_v0  ;;  %18 = vst [vmem:[%s59_s1 + $0x8] sm:$0xff] %v4_v0 }
   0x3   :  { %19 = vst [vmem:[%s59_s1 + $0x10] sm:$0xff] %v4_v0  ;;  %20 = vst [vmem:[%s59_s1 + $0x18] sm:$0xff] %v4_v0 }
   0x4   :  { %21 = vst [vmem:[%s59_s1 + $0x20] sm:$0xff] %v4_v0  ;;  %22 = vst [vmem:[%s59_s1 + $0x28] sm:$0xff] %v4_v0 }
   0x5   :  { %23 = vst [vmem:[%s59_s1 + $0x30] sm:$0xff] %v4_v0 }

// kernel: tile.14
= control target key start
LH: loop header
LB: loop body
LE: loop exit
PB: predicated region body
PF: predicated region fallthrough
CT: control target
= control target key end

     0   :  { %s11_s6 = smov 48  ;;  %vm13_vm0 = vcmask 1045508   ;;  %s33_s11 = smov 48  ;;  %vm4_vm1 = vcmask 1046532   ;;  %vm6_vm2 = vcmask 130048   ;;  %vm17_vm3 = vcmask 1048448   ;;  %s203_s0 = inlined_call_operand.vmem [shape: f32[49,16], index: 0, kind: input, shape index: {}]   ;;  %s204_s1 = inlined_call_operand.vmem [shape: f32[784], index: 1, kind: output, shape index: {}]  }
   0x1   :  { %v85_v0 = vld [vmem:[%s203_s0 + $0x7] ss:$8 sm:$0xf]   ;;  %v89_v3 = vld [vmem:[%s203_s0 + $0x5] ss:$8 sm:$0xf]  }
   0x2   :  { %v86_v1 = vld [vmem:[%s203_s0 + $0x7] ss:$8 sm:%s11_s6]   ;;  %v90_v4 = vld [vmem:[%s203_s0 + $0x5] ss:$8 sm:%s33_s11]   ;;  %s106_s16 = smov 112   ;;  %s22_s19 = smov 48 }
   0x3   :  { %v14_v2 = vsel %vm13_vm0, %v86_v1, %v85_v0  ;;  %v36_v5 = vsel %vm13_vm0, %v90_v4, %v89_v3  ;;  %v87_v6 = vld [vmem:[%s203_s0 + $0x6] ss:$8 sm:$0xf]   ;;  %s107_s20 = smov 80   ;;  %s44_s25 = smov 48  ;;  %vm28_vm4 = vcmask 917248  }
   0x4   :  { %15 = vrot.lane.b32.xlu0 %v14_v2, %s106_s16  ;;  %37 = vrot.lane.b32.xlu1 %v36_v5, %s107_s20  ;;  %v88_v7 = vld [vmem:[%s203_s0 + $0x6] ss:$8 sm:%s22_s19]   ;;  %s55_s30 = smov 48  ;;  %s108_s4 = smov 96   ;;  %vm39_vm5 = vcmask 786048   ;;  %vm50_vm6 = vcmask 654848  }
   0x5   :  { %v91_v8 = vld [vmem:[%s203_s0 + $0x4] ss:$8 sm:$0xf]   ;;  %v25_v9 = vsel %vm13_vm0, %v88_v7, %v87_v6  ;;  %v93_v11 = vld [vmem:[%s203_s0 + $0x3] ss:$8 sm:$0xf]  }
   0x6   :  { %v92_v10 = vld [vmem:[%s203_s0 + $0x4] ss:$8 sm:%s44_s25]   ;;  %v95_v13 = vld [vmem:[%s203_s0 + $0x2] ss:$8 sm:$0xf]   ;;  %s66_s7 = smov 48 }
   0x7   :  { %v47_v12 = vsel %vm13_vm0, %v92_v10, %v91_v8  ;;  %v94_v14 = vld [vmem:[%s203_s0 + $0x3] ss:$8 sm:%s55_s30]   ;;  %s109_s8 = smov 64   ;;  %v96_v16 = vld [vmem:[%s203_s0 + $0x2] ss:$8 sm:%s66_s7]   ;;  %s77_s13 = smov 48 }
   0x8   :  { %26 = vrot.lane.b32.xlu0 %v25_v9, %s108_s4  ;;  %48 = vrot.lane.b32.xlu1 %v47_v12, %s109_s8  ;;  %v58_v15 = vsel %vm13_vm0, %v94_v14, %v93_v11  ;;  %v97_v17 = vld [vmem:[%s203_s0 + $0x1] ss:$8 sm:$0xf]   ;;  %v69_v18 = vsel %vm13_vm0, %v96_v16, %v95_v13  ;;  %v2_v20 = vld [vmem:[%s203_s0] ss:$8 sm:$0xf]  }
   0x9   :  { %v98_v19 = vld [vmem:[%s203_s0 + $0x1] ss:$8 sm:%s77_s13]   ;;  %v3_v21 = vld [vmem:[%s203_s0] ss:$8 sm:$0x70]   ;;  %s110_s0 = smov 48  }
   0xa   :  { %v5_v22 = vsel %vm4_vm1, %v3_v21, %v2_v20  ;;  %s111_s20 = smov 32   ;;  %v80_v23 = vsel %vm13_vm0, %v98_v19, %v97_v17  ;;  %s112_s23 = smov 16   ;;  %vm61_vm7 = vcmask 523648   ;;  %vm72_vm8 = vcmask 392448  }
   0xb   :  { %7 = vst.msk [vmem:[%s204_s1] sm:$0x7f] %vm6_vm2, %v5_v22   ;;  %vm83_vm9 = vcmask 261248  }
   0xc   :  { %59 = vrot.lane.b32.xlu0 %v58_v15, %s110_s0  ;;  %70 = vrot.lane.b32.xlu1 %v69_v18, %s111_s20 }
  0x10   :  { %81 = vrot.lane.b32.xlu0 %v80_v23, %s112_s23 }
  0x76   :  { %v16_v24 = vpop.permute.xlu0 %15   ;;  %v38_v25 = vpop.permute.xlu1 %37  }
  0x77   :  { %18 = vst.msk [vmem:[%s204_s1] sm:$0x3f] %vm17_vm3, %v16_v24  }
  0x7a   :  { %v27_v26 = vpop.permute.xlu0 %26   ;;  %v49_v27 = vpop.permute.xlu1 %48  }
  0x7b   :  { %29 = vst.msk [vmem:[%s204_s1] sm:$0x3f] %vm28_vm4, %v27_v26  }
  0x7c   :  { %40 = vst.msk [vmem:[%s204_s1] sm:$0x3f] %vm39_vm5, %v38_v25  }
  0x7d   :  { %51 = vst.msk [vmem:[%s204_s1] sm:$0x3f] %vm50_vm6, %v49_v27  }
  0x7e   :  { %v60_v28 = vpop.permute.xlu0 %59   ;;  %v71_v29 = vpop.permute.xlu1 %70  }
  0x7f   :  { %62 = vst.msk [vmem:[%s204_s1] sm:$0x3f] %vm61_vm7, %v60_v28  }
  0x80   :  { %73 = vst.msk [vmem:[%s204_s1] sm:$0x3f] %vm72_vm8, %v71_v29  }
  0x82   :  { %v82_v30 = vpop.permute.xlu0 %81  }
  0x83   :  { %84 = vst.msk [vmem:[%s204_s1] sm:$0x3f] %vm83_vm9, %v82_v30  }

// kernel: dis_con_layers_forward.7
= control target key start
LH: loop header
LB: loop body
LE: loop exit
PB: predicated region body
PF: predicated region fallthrough
CT: control target
= control target key end

     0   :  { %s389_s12 = smov 0   ;;  %s491_s0 = inlined_call_operand.vmem [shape: f32[256,128], index: 0, kind: input, shape index: {}]   ;;  %s492_s1 = inlined_call_operand.vmem [shape: f32[1,128], index: 1, kind: input, shape index: {}]   ;;  %s493_s2 = inlined_call_operand.vmem [shape: f32[1,128], index: 2, kind: input, shape index: {}]   ;;  %s494_s3 = inlined_call_operand.vmem [shape: f32[256,128], index: 3, kind: output, shape index: {}]  }
   0x1 LB: > { %s340_s13 = sadd.s32 4294967295, %s367_s12   ;;  %p344_p0 = scmp.ge.s32.totalorder %s367_s12, 1  ;;  %s367_s12 = sphi %s389_s12, %s13_s12  }
   0x2   : > { %p138_p1 = scmp.lt.s32.totalorder %s367_s12, 3 }
   0x4   : > { %p139_p2 = pnand %p344_p0, %p138_p1 }
   0x5   : > { %s345_s14 = sshll.u32 (!%p139_p2), %s340_s13, 4  ;;  %v403_v0 = vld [vmem:[%s492_s1] ss:$0 sm:$0xff] (!%p139_p2) }
   0x6   : > { %142 = sbr.rel (%p139_p2) target bundleno = 38 (0x26), region = 32  ;;  %p163_p3 = scmp.lt.s32.totalorder (!%p139_p2), %s345_s14, 31  ;;  %v415_v1 = vld [vmem:[%s493_s2] ss:$0 sm:$0xff] (!%p139_p2) }
   0xd   : > { %s496_s14 = smov (!%p163_p3, %s345_s14), 31 }
   0xe   : > { %s346_s15 = sshll.u32 %s496_s14, 3 }
   0xf   : > { %s410_s20 = scalar_lea.vmem %s491_s0, %s346_s15  ;;  %s448_s25 = scalar_lea.vmem %s494_s3, %s346_s15 }
  0x10   : > { %v174_v2 = vld [vmem:[%s410_s20] sm:$0xff]  ;;  %v175_v3 = vld [vmem:[%s410_s20 + $0x8] sm:$0xff]  ;;  %v176_v4 = vld [vmem:[%s410_s20 + $0x10] sm:$0xff] }
  0x11   : > { %v197_v5 = vmul.f32 %v403_v0, %v174_v2  ;;  %v198_v6 = vmul.f32 %v403_v0, %v175_v3  ;;  %v199_v7 = vmul.f32 %v403_v0, %v176_v4  ;;  %v177_v8 = vld [vmem:[%s410_s20 + $0x18] sm:$0xff]  ;;  %v178_v9 = vld [vmem:[%s410_s20 + $0x20] sm:$0xff]  ;;  %v179_v10 = vld [vmem:[%s410_s20 + $0x28] sm:$0xff] }
  0x12   : > { %v200_v11 = vmul.f32 %v403_v0, %v177_v8  ;;  %v201_v12 = vmul.f32 %v403_v0, %v178_v9  ;;  %v202_v13 = vmul.f32 %v403_v0, %v179_v10  ;;  %v180_v14 = vld [vmem:[%s410_s20 + $0x30] sm:$0xff]  ;;  %v181_v15 = vld [vmem:[%s410_s20 + $0x38] sm:$0xff]  ;;  %v182_v24 = vld [vmem:[%s410_s20 + $0x40] sm:$0xff] }
  0x13   : > { %v220_v16 = vadd.f32 %v415_v1, %v197_v5  ;;  %v221_v17 = vadd.f32 %v415_v1, %v198_v6  ;;  %v222_v18 = vadd.f32 %v415_v1, %v199_v7  ;;  %v203_v19 = vmul.f32 %v403_v0, %v180_v14  ;;  %v183_v25 = vld [vmem:[%s410_s20 + $0x48] sm:$0xff]  ;;  %v184_v26 = vld [vmem:[%s410_s20 + $0x50] sm:$0xff]  ;;  %v185_v39 = vld [vmem:[%s410_s20 + $0x58] sm:$0xff] }
  0x14   : > { %v223_v20 = vadd.f32 %v415_v1, %v200_v11  ;;  %v224_v21 = vadd.f32 %v415_v1, %v201_v12  ;;  %v225_v22 = vadd.f32 %v415_v1, %v202_v13  ;;  %v204_v23 = vmul.f32 %v403_v0, %v181_v15  ;;  %v186_v40 = vld [vmem:[%s410_s20 + $0x60] sm:$0xff]  ;;  %v187_v41 = vld [vmem:[%s410_s20 + $0x68] sm:$0xff]  ;;  %v188_v46 = vld [vmem:[%s410_s20 + $0x70] sm:$0xff] }
  0x15   : > { %v236_v27 = vmul.f32 0.2, %v220_v16  ;;  %v237_v28 = vmul.f32 0.2, %v221_v17  ;;  %v238_v29 = vmul.f32 0.2, %v222_v18  ;;  %v226_v30 = vadd.f32 %v415_v1, %v203_v19 }
  0x16   : > { %v239_v31 = vmul.f32 0.2, %v223_v20  ;;  %v240_v32 = vmul.f32 0.2, %v224_v21  ;;  %v241_v33 = vmul.f32 0.2, %v225_v22  ;;  %v227_v34 = vadd.f32 %v415_v1, %v204_v23 }
  0x17   : > { %v252_v35 = vmax.f32 %v220_v16, %v236_v27  ;;  %v253_v36 = vmax.f32 %v221_v17, %v237_v28  ;;  %v254_v37 = vmax.f32 %v222_v18, %v238_v29  ;;  %v242_v38 = vmul.f32 0.2, %v226_v30  ;;  %v189_v51 = vld [vmem:[%s410_s20 + $0x78] sm:$0xff] }
  0x18   : > { %v255_v42 = vmax.f32 %v223_v20, %v239_v31  ;;  %v256_v43 = vmax.f32 %v224_v21, %v240_v32  ;;  %v257_v44 = vmax.f32 %v225_v22, %v241_v33  ;;  %v243_v45 = vmul.f32 0.2, %v227_v34 }
  0x19   : > { %268 = vst [vmem:[%s448_s25] sm:$0xff] %v252_v35  ;;  %269 = vst [vmem:[%s448_s25 + $0x8] sm:$0xff] %v253_v36  ;;  %v258_v47 = vmax.f32 %v226_v30, %v242_v38  ;;  %v205_v48 = vmul.f32 %v403_v0, %v182_v24  ;;  %v206_v49 = vmul.f32 %v403_v0, %v183_v25 }
  0x1a   : > { %270 = vst [vmem:[%s448_s25 + $0x10] sm:$0xff] %v254_v37  ;;  %v207_v50 = vmul.f32 %v403_v0, %v184_v26  ;;  %271 = vst [vmem:[%s448_s25 + $0x18] sm:$0xff] %v255_v42  ;;  %v259_v52 = vmax.f32 %v227_v34, %v243_v45  ;;  %v208_v53 = vmul.f32 %v403_v0, %v185_v39 }
  0x1b   : > { %272 = vst [vmem:[%s448_s25 + $0x20] sm:$0xff] %v256_v43  ;;  %273 = vst [vmem:[%s448_s25 + $0x28] sm:$0xff] %v257_v44  ;;  %v209_v54 = vmul.f32 %v403_v0, %v186_v40  ;;  %v210_v55 = vmul.f32 %v403_v0, %v187_v41  ;;  %v228_v56 = vadd.f32 %v415_v1, %v205_v48 }
  0x1c   : > { %274 = vst [vmem:[%s448_s25 + $0x30] sm:$0xff] %v258_v47  ;;  %v229_v57 = vadd.f32 %v415_v1, %v206_v49  ;;  %v230_v58 = vadd.f32 %v415_v1, %v207_v50  ;;  %v211_v59 = vmul.f32 %v403_v0, %v188_v46  ;;  %275 = vst [vmem:[%s448_s25 + $0x38] sm:$0xff] %v259_v52 }
  0x1d   : > { %v231_v60 = vadd.f32 %v415_v1, %v208_v53  ;;  %v232_v61 = vadd.f32 %v415_v1, %v209_v54  ;;  %v233_v62 = vadd.f32 %v415_v1, %v210_v55  ;;  %v212_v63 = vmul.f32 %v403_v0, %v189_v51 }
  0x1e   : > { %v244_v2 = vmul.f32 0.2, %v228_v56  ;;  %v245_v3 = vmul.f32 0.2, %v229_v57  ;;  %v246_v4 = vmul.f32 0.2, %v230_v58  ;;  %v234_v5 = vadd.f32 %v415_v1, %v211_v59 }
  0x1f   : > { %v247_v6 = vmul.f32 0.2, %v231_v60  ;;  %v248_v7 = vmul.f32 0.2, %v232_v61  ;;  %v249_v8 = vmul.f32 0.2, %v233_v62  ;;  %v235_v9 = vadd.f32 %v415_v1, %v212_v63 }
  0x20   : > { %v260_v10 = vmax.f32 %v228_v56, %v244_v2  ;;  %v261_v11 = vmax.f32 %v229_v57, %v245_v3  ;;  %v262_v0 = vmax.f32 %v230_v58, %v246_v4  ;;  %v250_v12 = vmul.f32 0.2, %v234_v5 }
  0x21   : > { %v263_v13 = vmax.f32 %v231_v60, %v247_v6  ;;  %v264_v14 = vmax.f32 %v232_v61, %v248_v7  ;;  %v265_v15 = vmax.f32 %v233_v62, %v249_v8  ;;  %v251_v16 = vmul.f32 0.2, %v235_v9 }
  0x22   : > { %276 = vst [vmem:[%s448_s25 + $0x40] sm:$0xff] %v260_v10  ;;  %277 = vst [vmem:[%s448_s25 + $0x48] sm:$0xff] %v261_v11  ;;  %v266_v17 = vmax.f32 %v234_v5, %v250_v12 }
  0x23   : > { %278 = vst [vmem:[%s448_s25 + $0x50] sm:$0xff] %v262_v0  ;;  %279 = vst [vmem:[%s448_s25 + $0x58] sm:$0xff] %v263_v13  ;;  %v267_v18 = vmax.f32 %v235_v9, %v251_v16 }
  0x24   : > { %280 = vst [vmem:[%s448_s25 + $0x60] sm:$0xff] %v264_v14  ;;  %281 = vst [vmem:[%s448_s25 + $0x68] sm:$0xff] %v265_v15 }
  0x25   : > { %282 = vst [vmem:[%s448_s25 + $0x70] sm:$0xff] %v266_v17  ;;  %283 = vst [vmem:[%s448_s25 + $0x78] sm:$0xff] %v267_v18 }
  0x26 PF: > { %s13_s12 = sadd.s32 1, %s367_s12  }
  0x27   : > { %p10_p4 = scmp.ge.s32.totalorder %s13_s12, 4  }
  0x29   :  { %12 = sbr.rel (!%p10_p4) target bundleno = 1 (0x1), region = 62 }

// kernel: dis_con_layers_forward.6
= control target key start
LH: loop header
LB: loop body
LE: loop exit
PB: predicated region body
PF: predicated region fallthrough
CT: control target
= control target key end

     0   :  { %s2499_s18 = smov 0   ;;  %s3392_s0 = inlined_call_operand.vmem [shape: f32[256,896], index: 0, kind: input, shape index: {}]   ;;  %s3393_s1 = inlined_call_operand.vmem [shape: bf16[896,128], index: 1, kind: input, shape index: {}]   ;;  %s3394_s2 = inlined_call_operand.vmem [shape: f32[1,896], index: 2, kind: input, shape index: {}]   ;;  %s3395_s3 = inlined_call_operand.vmem [shape: f32[1,896], index: 3, kind: input, shape index: {}]   ;;  %s3396_s4 = inlined_call_operand.vmem [shape: f32[256,128], index: 4, kind: output, shape index: {0}]   ;;  %s3397_s5 = inlined_call_operand.vmem [shape: f32[16,128], index: 5, kind: output, shape index: {1}]  }
   0x1 LB: > { %s2505_s19 = sadd.s32 4294967295, %s2467_s18   ;;  %p2078_p0 = scmp.ge.s32.totalorder %s2467_s18, 1  ;;  %s2467_s18 = sphi %s2499_s18, %s16_s18  }
   0x2   : > { %p192_p1 = scmp.lt.s32.totalorder %s2467_s18, 3 }
   0x4   : > { %p193_p2 = pnand %p2078_p0, %p192_p1 }
   0x5   : > { %v2401_v0 = vld [vmem:[%s3393_s1 + $0x40] sm:$0xff] (!%p193_p2)   ;;  %v2405_v4 = vld [vmem:[%s3393_s1 + $0x48] sm:$0xff] (!%p193_p2)   ;;  %v2409_v8 = vld [vmem:[%s3393_s1 + $0x50] sm:$0xff] (!%p193_p2)   ;;  %s2079_s27 = sshll.u32 (!%p193_p2), %s2505_s19, 4  ;;  %v357_v19 = vlaneseq (!%p193_p2)  ;;  %p238_p6 = scmp.lt.s32.totalorder (!%p193_p2), %s2505_s19, 1 }
   0x6   : > { %196 = sbr.rel (%p193_p2) target bundleno = 455 (0x1c7), region = 36  ;;  %v2402_v1 = vld [vmem:[%s3393_s1 + $0xc0] sm:$0xff] (!%p193_p2)   ;;  %2150 = vmatprep.subr.bf16.mxu0 (!%p193_p2), %v2401_v0  ;;  %v2406_v5 = vld [vmem:[%s3393_s1 + $0xc8] sm:$0xff] (!%p193_p2)   ;;  %v2410_v9 = vld [vmem:[%s3393_s1 + $0xd0] sm:$0xff] (!%p193_p2)   ;;  %p226_p3 = scmp.lt.s32.totalorder (!%p193_p2), %s2079_s27, 31 }
   0x7   : > { %v2403_v2 = vld [vmem:[%s3393_s1] sm:$0xff] (!%p193_p2)   ;;  %2214 = vmatprep.subr.bf16.mxu1 (!%p193_p2), %v2402_v1  ;;  %v2407_v6 = vld [vmem:[%s3393_s1 + $0x8] sm:$0xff] (!%p193_p2)   ;;  %v2411_v10 = vld [vmem:[%s3393_s1 + $0x10] sm:$0xff] (!%p193_p2)   ;;  %v2581_v24 = vshrl.u32 (!%p193_p2), %v357_v19, 7 }
   0x8   : > { %v2404_v3 = vld [vmem:[%s3393_s1 + $0x80] sm:$0xff] (!%p193_p2)   ;;  %2151 = vmatpush3.bf16.msra.mxu0 (!%p193_p2), %v2403_v2  ;;  %v2408_v7 = vld [vmem:[%s3393_s1 + $0x88] sm:$0xff] (!%p193_p2)   ;;  %v2412_v11 = vld [vmem:[%s3393_s1 + $0x90] sm:$0xff] (!%p193_p2)  }
   0x9   : > { %2215 = vmatpush3.bf16.msra.mxu1 (!%p193_p2), %v2404_v3  ;;  %2152 = vmatprep.subr.bf16.mxu0 (!%p193_p2), %v2405_v4  ;;  %v2413_v12 = vld [vmem:[%s3393_s1 + $0x58] sm:$0xff] (!%p193_p2)   ;;  %v2417_v16 = vld [vmem:[%s3393_s1 + $0x60] sm:$0xff] (!%p193_p2)   ;;  %v2421_v21 = vld [vmem:[%s3393_s1 + $0x68] sm:$0xff] (!%p193_p2)   ;;  %v363_v29 = vsub.s32 (!%p193_p2), 1, %v2581_v24  ;;  %v371_v31 = vsub.s32 (!%p193_p2), 3, %v2581_v24  ;;  %v359_v33 = vsub.s32 (!%p193_p2), 0, %v2581_v24 }
   0xa   : > { %2216 = vmatprep.subr.bf16.mxu1 (!%p193_p2), %v2406_v5  ;;  %v2414_v13 = vld [vmem:[%s3393_s1 + $0xd8] sm:$0xff] (!%p193_p2)   ;;  %v2418_v17 = vld [vmem:[%s3393_s1 + $0xe0] sm:$0xff] (!%p193_p2)   ;;  %v2422_v22 = vld [vmem:[%s3393_s1 + $0xe8] sm:$0xff] (!%p193_p2)   ;;  %v367_v35 = vsub.s32 (!%p193_p2), 2, %v2581_v24  ;;  %v379_v41 = vsub.s32 (!%p193_p2), 5, %v2581_v24 }
   0xb   : > { %v2415_v14 = vld [vmem:[%s3393_s1 + $0x18] sm:$0xff] (!%p193_p2)   ;;  %v2419_v18 = vld [vmem:[%s3393_s1 + $0x20] sm:$0xff] (!%p193_p2)   ;;  %v2423_v23 = vld [vmem:[%s3393_s1 + $0x28] sm:$0xff] (!%p193_p2)  }
   0xc   : > { %2153 = vmatpush3.bf16.msra.mxu0 (!%p193_p2), %v2407_v6  ;;  %v2416_v15 = vld [vmem:[%s3393_s1 + $0x98] sm:$0xff] (!%p193_p2)   ;;  %v2420_v20 = vld [vmem:[%s3393_s1 + $0xa0] sm:$0xff] (!%p193_p2)   ;;  %v2424_v25 = vld [vmem:[%s3393_s1 + $0xa8] sm:$0xff] (!%p193_p2)  }
   0xd   : > { %2217 = vmatpush3.bf16.msra.mxu1 %v2408_v7  ;;  %2154 = vmatprep.subr.bf16.mxu0 %v2409_v8  ;;  %s3399_s27 = smov (!%p226_p3, %s2079_s27), 31  ;;  %v2425_v26 = vld [vmem:[%s3393_s1 + $0x70] sm:$0xff]   ;;  %v2429_v32 = vld [vmem:[%s3393_s1 + $0x78] sm:$0xff]   ;;  %v2625_v40 = vld [vmem:[%s3394_s2] sm:$0xff] }
   0xe   : > { %2218 = vmatprep.subr.bf16.mxu1 %v2410_v9  ;;  %v2426_v27 = vld [vmem:[%s3393_s1 + $0xf0] sm:$0xff]   ;;  %s2390_s28 = smul.u32 56, %s3399_s27  ;;  %v2430_v34 = vld [vmem:[%s3393_s1 + $0xf8] sm:$0xff]   ;;  %v2629_v42 = vrot.slane %v2625_v40, %v363_v29  ;;  %v2634_v43 = vld [vmem:[%s3395_s3] sm:$0xff]  ;;  %v2639_v46 = vrot.slane %v2625_v40, %v371_v31  ;;  %v2642_v47 = vrot.slane %v2625_v40, %v359_v33  ;;  %v2645_v48 = vrot.slane %v2625_v40, %v367_v35  ;;  %s2082_s15 = sshll.u32 %s3399_s27, 3 }
   0xf   : > { %v2427_v28 = vld [vmem:[%s3393_s1 + $0x30] sm:$0xff]   ;;  %v2431_v36 = vld [vmem:[%s3393_s1 + $0x38] sm:$0xff]   ;;  %v2648_v49 = vrot.slane %v2634_v43, %v363_v29  ;;  %v2651_v50 = vrot.slane %v2634_v43, %v371_v31  ;;  %v2656_v53 = vrot.slane %v2634_v43, %v359_v33  ;;  %v2660_v55 = vrot.slane %v2634_v43, %v367_v35  ;;  %v2433_v1 = vld [vmem:[%s3393_s1 + $0x140] sm:$0xff]   ;;  %s3152_s20 = scalar_lea.vmem %s3396_s4, %s2082_s15 }
  0x10   : > { %2155 = vmatpush3.bf16.msra.mxu0 %v2411_v10  ;;  %v2428_v30 = vld [vmem:[%s3393_s1 + $0xb0] sm:$0xff]   ;;  %s2611_s14 = scalar_lea.vmem %s3392_s0, %s2390_s28  ;;  %v2432_v37 = vld [vmem:[%s3393_s1 + $0xb8] sm:$0xff]  }
  0x11   : > { %2219 = vmatpush3.bf16.msra.mxu1 %v2412_v11  ;;  %2156 = vmatprep.subr.bf16.mxu0 %v2413_v12  ;;  %v244_v38 = vld [vmem:[%s2611_s14 + $0x8] sm:$0xff]  ;;  %v251_v39 = vld [vmem:[%s2611_s14 + $0x40] sm:$0xff]  ;;  %v246_v44 = vld [vmem:[%s2611_s14 + $0x18] sm:$0xff] }
  0x12   : > { %2220 = vmatprep.subr.bf16.mxu1 %v2414_v13  ;;  %v253_v45 = vld [vmem:[%s2611_s14 + $0x50] sm:$0xff]  ;;  %v243_v51 = vld [vmem:[%s2611_s14] sm:$0xff]  ;;  %v250_v52 = vld [vmem:[%s2611_s14 + $0x38] sm:$0xff]  ;;  %v393_v56 = vmul.f32 %v2629_v42, %v244_v38  ;;  %v400_v57 = vmul.f32 %v2629_v42, %v251_v39  ;;  %v395_v58 = vmul.f32 %v2639_v46, %v246_v44 }
  0x13   : > { %v245_v54 = vld [vmem:[%s2611_s14 + $0x10] sm:$0xff]  ;;  %v402_v59 = vmul.f32 %v2639_v46, %v253_v45  ;;  %v252_v60 = vld [vmem:[%s2611_s14 + $0x48] sm:$0xff]  ;;  %v392_v61 = vmul.f32 %v2642_v47, %v243_v51  ;;  %v399_v62 = vmul.f32 %v2642_v47, %v250_v52  ;;  %v258_v6 = vld [vmem:[%s2611_s14 + $0x78] sm:$0xff] }
  0x14   : > { %2157 = vmatpush3.bf16.msra.mxu0 %v2415_v14  ;;  %v394_v63 = vmul.f32 %v2645_v48, %v245_v54  ;;  %v401_v0 = vmul.f32 %v2645_v48, %v252_v60  ;;  %v542_v2 = vadd.f32 %v2648_v49, %v393_v56  ;;  %v549_v3 = vadd.f32 %v2648_v49, %v400_v57  ;;  %v265_v7 = vld [vmem:[%s2611_s14 + $0xb0] sm:$0xff]  ;;  %v2435_v51 = vld [vmem:[%s3393_s1 + $0x148] sm:$0xff]  }
  0x15   : > { %2221 = vmatpush3.bf16.msra.mxu1 %v2416_v15  ;;  %2158 = vmatprep.subr.bf16.mxu0 %v2417_v16  ;;  %v544_v4 = vadd.f32 %v2651_v50, %v395_v58  ;;  %v551_v5 = vadd.f32 %v2651_v50, %v402_v59  ;;  %v541_v8 = vadd.f32 %v2656_v53, %v392_v61  ;;  %v259_v58 = vld [vmem:[%s2611_s14 + $0x80] sm:$0xff]  ;;  %v266_v59 = vld [vmem:[%s2611_s14 + $0xb8] sm:$0xff] }
  0x16   : > { %2222 = vmatprep.subr.bf16.mxu1 %v2418_v17  ;;  %v548_v9 = vadd.f32 %v2656_v53, %v399_v62  ;;  %v543_v10 = vadd.f32 %v2660_v55, %v394_v63  ;;  %v550_v11 = vadd.f32 %v2660_v55, %v401_v0  ;;  %v654_v12 = vmul.f32 0.2, %v542_v2  ;;  %v272_v63 = vld [vmem:[%s2611_s14 + $0xe8] sm:$0xff] }
  0x17   : > { %v661_v13 = vmul.f32 0.2, %v549_v3  ;;  %v656_v14 = vmul.f32 0.2, %v544_v4  ;;  %v407_v15 = vmul.f32 %v2629_v42, %v258_v6  ;;  %v663_v16 = vmul.f32 0.2, %v551_v5 }
  0x18   : > { %2159 = vmatpush3.bf16.msra.mxu0 %v2419_v18  ;;  %v653_v17 = vmul.f32 0.2, %v541_v8  ;;  %v660_v18 = vmul.f32 0.2, %v548_v9  ;;  %v414_v19 = vmul.f32 %v2629_v42, %v265_v7  ;;  %v375_v0 = vsub.s32 4, %v2581_v24 }
  0x19   : > { %2223 = vmatpush3.bf16.msra.mxu1 %v2420_v20  ;;  %2160 = vmatprep.subr.bf16.mxu0 %v2421_v21  ;;  %v766_v20 = vmax.f32 %v542_v2, %v654_v12  ;;  %v773_v21 = vmax.f32 %v549_v3, %v661_v13  ;;  %v775_v29 = vmax.f32 %v551_v5, %v663_v16  ;;  %v2436_v5 = vld [vmem:[%s3393_s1 + $0x108] sm:$0xff]  }
  0x1a   : > { %2224 = vmatprep.subr.bf16.mxu1 %v2422_v22  ;;  %v768_v22 = vmax.f32 %v544_v4, %v656_v14  ;;  %v772_v31 = vmax.f32 %v548_v9, %v660_v18  ;;  %v556_v35 = vadd.f32 %v2648_v49, %v407_v15  ;;  %v415_v9 = vmul.f32 %v2645_v48, %v266_v59  ;;  %v280_v59 = vld [vmem:[%s2611_s14 + $0x128] sm:$0xff] }
  0x1b   : > { %v878_v33 = vpack.c.bf16 %v773_v21, %v766_v20  ;;  %v421_v15 = vmul.f32 %v2629_v42, %v272_v63  ;;  %v274_v20 = vld [vmem:[%s2611_s14 + $0xf8] sm:$0xff]  ;;  %v281_v21 = vld [vmem:[%s2611_s14 + $0x130] sm:$0xff] }
  0x1c   : > { %2161 = vmatpush3.bf16.msra.mxu0 %v2423_v23  ;;  %v655_v23 = vmul.f32 0.2, %v543_v10  ;;  %v880_v38 = vpack.c.bf16 %v775_v29, %v768_v22  ;;  %v668_v52 = vmul.f32 0.2, %v556_v35 }
  0x1d   : > { %2225 = vmatpush3.bf16.msra.mxu1 %v2424_v25  ;;  %2162 = vmatprep.subr.bf16.mxu0 %v2425_v26  ;;  %v2434_v25 = vld [vmem:[%s3393_s1 + $0x100] sm:$0xff]   ;;  %v260_v26 = vld [vmem:[%s2611_s14 + $0x88] sm:$0xff] }
  0x1e   : > { %2226 = vmatprep.subr.bf16.mxu1 %v2426_v27  ;;  %v267_v27 = vld [vmem:[%s2611_s14 + $0xc0] sm:$0xff]  ;;  %v409_v45 = vmul.f32 %v2639_v46, %v260_v26  ;;  %1413 = vmatprep.mubr.bf16.mxu0 %v878_v33  ;;  %v278_v33 = vld [vmem:[%s2611_s14 + $0x118] sm:$0xff] }
  0x1f   : > { %v416_v56 = vmul.f32 %v2639_v46, %v267_v27  ;;  %1510 = vmatprep.mubr.bf16.mxu1 %v880_v38  ;;  %v271_v26 = vld [vmem:[%s2611_s14 + $0xe0] sm:$0xff]  ;;  %v2438_v27 = vld [vmem:[%s3393_s1 + $0x110] sm:$0xff]   ;;  %v430_v38 = vmul.f32 %v2639_v46, %v281_v21 }
  0x20   : > { %2163 = vmatpush3.bf16.msra.mxu0 %v2427_v28  ;;  %v257_v28 = vld [vmem:[%s2611_s14 + $0x70] sm:$0xff]  ;;  %v558_v61 = vadd.f32 %v2651_v50, %v409_v45  ;;  %v2442_v21 = vld [vmem:[%s3393_s1 + $0x180] sm:$0xff]  }
  0x21   : > { %2227 = vmatpush3.bf16.msra.mxu1 %v2428_v30  ;;  %2164 = vmatprep.subr.bf16.mxu0 %v2429_v32  ;;  %v765_v30 = vmax.f32 %v541_v8, %v653_v17  ;;  %v662_v32 = vmul.f32 0.2, %v550_v11  ;;  %v406_v57 = vmul.f32 %v2642_v47, %v257_v28  ;;  %v565_v3 = vadd.f32 %v2651_v50, %v416_v56 }
  0x22   : > { %2228 = vmatprep.subr.bf16.mxu1 %v2430_v34  ;;  %v767_v34 = vmax.f32 %v543_v10, %v655_v23  ;;  %v670_v6 = vmul.f32 0.2, %v558_v61  ;;  %v408_v8 = vmul.f32 %v2645_v48, %v259_v58  ;;  %v279_v10 = vld [vmem:[%s2611_s14 + $0x120] sm:$0xff]  ;;  %v383_v28 = vsub.s32 6, %v2581_v24 }
  0x23   : > { %v877_v39 = vpack.c.bf16 %v772_v31, %v765_v30  ;;  %v774_v44 = vmax.f32 %v550_v11, %v662_v32  ;;  %v555_v4 = vadd.f32 %v2656_v53, %v406_v57  ;;  %v2437_v11 = vld [vmem:[%s3393_s1 + $0x150] sm:$0xff]   ;;  %v677_v13 = vmul.f32 0.2, %v565_v3 }
  0x24   : > { %2165 = vmatpush3.bf16.msra.mxu0 %v2431_v36  ;;  %v563_v36 = vadd.f32 %v2648_v49, %v414_v19  ;;  %v782_v16 = vmax.f32 %v558_v61, %v670_v6  ;;  %v557_v18 = vadd.f32 %v2660_v55, %v408_v8  ;;  %v564_v19 = vadd.f32 %v2660_v55, %v415_v9  ;;  %v2440_v61 = vld [vmem:[%s3393_s1 + $0x118] sm:$0xff]   ;;  %v288_v8 = vld [vmem:[%s2611_s14 + $0x168] sm:$0xff] }
  0x25   : > { %2229 = vmatpush3.bf16.msra.mxu1 %v2432_v37  ;;  %2278 = vmatprep.subr.bf16.mxu0 %v2433_v1  ;;  %v264_v37 = vld [vmem:[%s2611_s14 + $0xa8] sm:$0xff]  ;;  %v879_v60 = vpack.c.bf16 %v774_v44, %v767_v34  ;;  %v780_v1 = vmax.f32 %v556_v35, %v668_v52  ;;  %v667_v14 = vmul.f32 0.2, %v555_v4  ;;  %v789_v22 = vmax.f32 %v565_v3, %v677_v13  ;;  %v273_v34 = vld [vmem:[%s2611_s14 + $0xf0] sm:$0xff]  ;;  %v295_v13 = vld [vmem:[%s2611_s14 + $0x1a0] sm:$0xff] }
  0x26   : > { %v675_v54 = vmul.f32 0.2, %v563_v36  ;;  %v413_v62 = vmul.f32 %v2642_v47, %v264_v37  ;;  %v669_v30 = vmul.f32 0.2, %v557_v18  ;;  %v676_v31 = vmul.f32 0.2, %v564_v19  ;;  %2358 = vmatprep.subr.bf16.mxu1 %v2442_v21 }
  0x27   : > { %1414 = vmatmul.mubr.bf16.vlgmr.msra.gmra.mrb[0].mxu0 %v877_v39  ;;  %v779_v23 = vmax.f32 %v555_v4, %v667_v14  ;;  %v570_v32 = vadd.f32 %v2648_v49, %v421_v15  ;;  %v887_v35 = vpack.c.bf16 %v789_v22, %v782_v16  ;;  %v423_v37 = vmul.f32 %v2639_v46, %v274_v20  ;;  %v2439_v39 = vld [vmem:[%s3393_s1 + $0x158] sm:$0xff]   ;;  %v285_v14 = vld [vmem:[%s2611_s14 + $0x150] sm:$0xff]  ;;  %v2441_v20 = vld [vmem:[%s3393_s1 + $0x160] sm:$0xff]  }
  0x28   : > { %2279 = vmatpush3.bf16.msra.mxu0 %v2434_v25  ;;  %v787_v2 = vmax.f32 %v563_v36, %v675_v54  ;;  %1511 = vmatmul.mubr.bf16.vlgmr.msra.gmra.mrb[0].mxu1 %v879_v60  ;;  %v562_v7 = vadd.f32 %v2656_v53, %v413_v62  ;;  %v428_v25 = vmul.f32 %v2629_v42, %v279_v10  ;;  %v286_v60 = vld [vmem:[%s2611_s14 + $0x158] sm:$0xff] }
  0x29   : > { %2280 = vmatprep.subr.bf16.mxu0 %v2435_v51  ;;  %v781_v45 = vmax.f32 %v557_v18, %v669_v30  ;;  %v788_v51 = vmax.f32 %v564_v19, %v676_v31  ;;  %v682_v52 = vmul.f32 0.2, %v570_v32  ;;  %1518 = vmatprep.mubr.bf16.mxu1 %v887_v35  ;;  %v572_v56 = vadd.f32 %v2651_v50, %v423_v37  ;;  %v292_v19 = vld [vmem:[%s2611_s14 + $0x188] sm:$0xff] }
  0x2a   : > { %v885_v12 = vpack.c.bf16 %v787_v2, %v780_v1  ;;  %v674_v17 = vmul.f32 0.2, %v562_v7  ;;  %v577_v36 = vadd.f32 %v2648_v49, %v428_v25  ;;  %v579_v57 = vadd.f32 %v2651_v50, %v430_v38  ;;  %2359 = vmatpush3.bf16.msra.mxu1 %v2442_v21 }
  0x2b   : > { %v420_v58 = vmul.f32 %v2642_v47, %v271_v26  ;;  %v886_v62 = vpack.c.bf16 %v788_v51, %v781_v45  ;;  %v794_v63 = vmax.f32 %v570_v32, %v682_v52  ;;  %v427_v1 = vmul.f32 %v2642_v47, %v278_v33  ;;  %v2443_v32 = vld [vmem:[%s3393_s1 + $0x120] sm:$0xff]   ;;  %v294_v51 = vld [vmem:[%s2611_s14 + $0x198] sm:$0xff] }
  0x2c   : > { %1421 = vmatprep.mubr.bf16.mxu0 %v885_v12  ;;  %2281 = vmatpush3.bf16.msra.mxu0 %v2436_v5  ;;  %v786_v29 = vmax.f32 %v562_v7, %v674_v17  ;;  %v689_v54 = vmul.f32 0.2, %v577_v36  ;;  %v422_v2 = vmul.f32 %v2645_v48, %v273_v34  ;;  %v684_v4 = vmul.f32 0.2, %v572_v56  ;;  %v293_v7 = vld [vmem:[%s2611_s14 + $0x190] sm:$0xff]  ;;  %v287_v45 = vld [vmem:[%s2611_s14 + $0x160] sm:$0xff] }
  0x2d   : > { %2282 = vmatprep.subr.bf16.mxu0 %v2437_v11  ;;  %v691_v5 = vmul.f32 0.2, %v579_v57  ;;  %v569_v6 = vadd.f32 %v2656_v53, %v420_v58  ;;  %v576_v9 = vadd.f32 %v2656_v53, %v427_v1  ;;  %v429_v10 = vmul.f32 %v2645_v48, %v280_v59  ;;  %v300_v58 = vld [vmem:[%s2611_s14 + $0x1c8] sm:$0xff]  ;;  %v307_v59 = vld [vmem:[%s2611_s14 + $0x200] sm:$0xff]  ;;  %v302_v1 = vld [vmem:[%s2611_s14 + $0x1d8] sm:$0xff] }
  0x2e   : > { %v884_v44 = vpack.c.bf16 %v786_v29, %v779_v23  ;;  %v801_v3 = vmax.f32 %v577_v36, %v689_v54  ;;  %v571_v11 = vadd.f32 %v2660_v55, %v422_v2  ;;  %v435_v12 = vmul.f32 %v2629_v42, %v286_v60  ;;  %v2444_v2 = vld [vmem:[%s3393_s1 + $0x168] sm:$0xff]  }
  0x2f   : > { %v796_v16 = vmax.f32 %v572_v56, %v684_v4  ;;  %v803_v17 = vmax.f32 %v579_v57, %v691_v5  ;;  %v681_v18 = vmul.f32 0.2, %v569_v6  ;;  %v688_v22 = vmul.f32 0.2, %v576_v9 }
  0x30   : > { %2283 = vmatpush3.bf16.msra.mxu0 %v2438_v27  ;;  %1519 = vmatmul.mubr.bf16.gmra.mrb[4].mxu1 %v886_v62  ;;  %v892_v15 = vpack.c.bf16 %v801_v3, %v794_v63  ;;  %v578_v23 = vadd.f32 %v2660_v55, %v429_v10  ;;  %v683_v25 = vmul.f32 0.2, %v571_v11  ;;  %v442_v26 = vmul.f32 %v2629_v42, %v293_v7  ;;  %v2445_v3 = vld [vmem:[%s3393_s1 + $0x188] sm:$0xff]  }
  0x31   : > { %1422 = vmatmul.mubr.bf16.gmra.mrb[4].mxu0 %v884_v44  ;;  %2284 = vmatprep.subr.bf16.mxu0 %v2439_v39  ;;  %v894_v27 = vpack.c.bf16 %v803_v17, %v796_v16  ;;  %v793_v29 = vmax.f32 %v569_v6, %v681_v18  ;;  %v584_v30 = vadd.f32 %v2648_v49, %v435_v12  ;;  %v2446_v17 = vld [vmem:[%s3393_s1 + $0x128] sm:$0xff]   ;;  %v2447_v18 = vld [vmem:[%s3393_s1 + $0x190] sm:$0xff]  }
  0x32   : > { %1429 = vmatprep.mubr.bf16.mxu0 %v892_v15  ;;  %v437_v31 = vmul.f32 %v2639_v46, %v288_v8  ;;  %v800_v33 = vmax.f32 %v576_v9, %v688_v22  ;;  %v690_v34 = vmul.f32 0.2, %v578_v23  ;;  %v795_v35 = vmax.f32 %v571_v11, %v683_v25  ;;  %v309_v8 = vld [vmem:[%s2611_s14 + $0x210] sm:$0xff]  ;;  %2360 = vmatprep.subr.bf16.mxu1 %v2445_v3 }
  0x33   : > { %v591_v36 = vadd.f32 %v2648_v49, %v442_v26  ;;  %1526 = vmatprep.mubr.bf16.mxu1 %v894_v27  ;;  %v696_v37 = vmul.f32 0.2, %v584_v30  ;;  %v444_v38 = vmul.f32 %v2639_v46, %v295_v13  ;;  %v434_v44 = vmul.f32 %v2642_v47, %v285_v14  ;;  %2361 = vmatpush3.bf16.msra.mxu1 %v2445_v3 }
  0x34   : > { %2285 = vmatpush3.bf16.msra.mxu0 %v2440_v61  ;;  %v586_v39 = vadd.f32 %v2651_v50, %v437_v31  ;;  %v891_v52 = vpack.c.bf16 %v800_v33, %v793_v29  ;;  %v802_v54 = vmax.f32 %v578_v23, %v690_v34  ;;  %v441_v57 = vmul.f32 %v2642_v47, %v292_v19  ;;  %v299_v29 = vld [vmem:[%s2611_s14 + $0x1c0] sm:$0xff]  ;;  %v306_v34 = vld [vmem:[%s2611_s14 + $0x1f8] sm:$0xff] }
  0x35   : > { %2286 = vmatprep.subr.bf16.mxu0 %v2441_v20  ;;  %v703_v56 = vmul.f32 0.2, %v591_v36  ;;  %v808_v60 = vmax.f32 %v584_v30, %v696_v37  ;;  %v593_v61 = vadd.f32 %v2651_v50, %v444_v38  ;;  %v583_v63 = vadd.f32 %v2656_v53, %v434_v44  ;;  %2362 = vmatprep.subr.bf16.mxu1 %v2447_v18 }
  0x36   : > { %v698_v62 = vmul.f32 0.2, %v586_v39  ;;  %v893_v4 = vpack.c.bf16 %v802_v54, %v795_v35  ;;  %v590_v6 = vadd.f32 %v2656_v53, %v441_v57  ;;  %v436_v7 = vmul.f32 %v2645_v48, %v287_v45  ;;  %v301_v35 = vld [vmem:[%s2611_s14 + $0x1d0] sm:$0xff]  ;;  %v314_v45 = vld [vmem:[%s2611_s14 + $0x238] sm:$0xff] }
  0x37   : > { %v815_v5 = vmax.f32 %v591_v36, %v703_v56  ;;  %v705_v9 = vmul.f32 0.2, %v593_v61  ;;  %v695_v11 = vmul.f32 0.2, %v583_v63  ;;  %v443_v12 = vmul.f32 %v2645_v48, %v294_v51  ;;  %v308_v36 = vld [vmem:[%s2611_s14 + $0x208] sm:$0xff]  ;;  %v321_v57 = vld [vmem:[%s2611_s14 + $0x270] sm:$0xff]  ;;  %2363 = vmatpush3.bf16.msra.mxu1 %v2447_v18 }
  0x38   : > { %2287 = vmatpush3.bf16.msra.mxu0 %v2443_v32  ;;  %v810_v10 = vmax.f32 %v586_v39, %v698_v62  ;;  %1527 = vmatmul.mubr.bf16.gmra.mrb[8].mxu1 %v893_v4  ;;  %v702_v14 = vmul.f32 0.2, %v590_v6  ;;  %v585_v15 = vadd.f32 %v2660_v55, %v436_v7  ;;  %v449_v16 = vmul.f32 %v2629_v42, %v300_v58  ;;  %v2448_v58 = vld [vmem:[%s3393_s1 + $0x170] sm:$0xff]  }
  0x39   : > { %1430 = vmatmul.mubr.bf16.gmra.mrb[8].mxu0 %v891_v52  ;;  %2288 = vmatprep.subr.bf16.mxu0 %v2444_v2  ;;  %v899_v13 = vpack.c.bf16 %v815_v5, %v808_v60  ;;  %v817_v19 = vmax.f32 %v593_v61, %v705_v9  ;;  %v807_v20 = vmax.f32 %v583_v63, %v695_v11  ;;  %v316_v5 = vld [vmem:[%s2611_s14 + $0x248] sm:$0xff]  ;;  %v2451_v11 = vld [vmem:[%s3393_s1 + $0x1a0] sm:$0xff]  }
  0x3a   : > { %v592_v21 = vadd.f32 %v2660_v55, %v443_v12  ;;  %v456_v22 = vmul.f32 %v2629_v42, %v307_v59  ;;  %v814_v23 = vmax.f32 %v590_v6, %v702_v14  ;;  %v697_v25 = vmul.f32 0.2, %v585_v15  ;;  %v2449_v59 = vld [vmem:[%s3393_s1 + $0x198] sm:$0xff]   ;;  %v2450_v6 = vld [vmem:[%s3393_s1 + $0x130] sm:$0xff]  }
  0x3b   : > { %1437 = vmatprep.mubr.bf16.mxu0 %v899_v13  ;;  %v598_v26 = vadd.f32 %v2648_v49, %v449_v16  ;;  %v451_v27 = vmul.f32 %v2639_v46, %v302_v1  ;;  %v901_v30 = vpack.c.bf16 %v817_v19, %v810_v10  ;;  %v458_v33 = vmul.f32 %v2639_v46, %v309_v8 }
  0x3c   : > { %2289 = vmatpush3.bf16.msra.mxu0 %v2446_v17  ;;  %v704_v31 = vmul.f32 0.2, %v592_v21  ;;  %v605_v32 = vadd.f32 %v2648_v49, %v456_v22  ;;  %v898_v37 = vpack.c.bf16 %v814_v23, %v807_v20  ;;  %v809_v38 = vmax.f32 %v585_v15, %v697_v25  ;;  %2364 = vmatprep.subr.bf16.mxu1 %v2449_v59  ;;  %v323_v20 = vld [vmem:[%s2611_s14 + $0x280] sm:$0xff] }
  0x3d   : > { %v710_v39 = vmul.f32 0.2, %v598_v26  ;;  %v600_v44 = vadd.f32 %v2651_v50, %v451_v27  ;;  %1534 = vmatprep.mubr.bf16.mxu1 %v901_v30  ;;  %v607_v54 = vadd.f32 %v2651_v50, %v458_v33  ;;  %v448_v56 = vmul.f32 %v2642_v47, %v299_v29  ;;  %2290 = vmatprep.subr.bf16.mxu0 %v2448_v58  ;;  %v320_v27 = vld [vmem:[%s2611_s14 + $0x268] sm:$0xff]  ;;  %v315_v29 = vld [vmem:[%s2611_s14 + $0x240] sm:$0xff] }
  0x3e   : > { %v816_v51 = vmax.f32 %v592_v21, %v704_v31  ;;  %v717_v52 = vmul.f32 0.2, %v605_v32  ;;  %v455_v62 = vmul.f32 %v2642_v47, %v306_v34  ;;  %v450_v63 = vmul.f32 %v2645_v48, %v301_v35  ;;  %v313_v21 = vld [vmem:[%s2611_s14 + $0x230] sm:$0xff]  ;;  %2365 = vmatpush3.bf16.msra.mxu1 %v2449_v59  ;;  %v322_v34 = vld [vmem:[%s2611_s14 + $0x278] sm:$0xff] }
  0x3f   : > { %v822_v60 = vmax.f32 %v598_v26, %v710_v39  ;;  %v712_v61 = vmul.f32 0.2, %v600_v44  ;;  %v719_v3 = vmul.f32 0.2, %v607_v54  ;;  %v597_v4 = vadd.f32 %v2656_v53, %v448_v56  ;;  %2366 = vmatprep.subr.bf16.mxu1 %v2451_v11  ;;  %v2452_v35 = vld [vmem:[%s3393_s1 + $0x178] sm:$0xff]  }
  0x40   : > { %v900_v1 = vpack.c.bf16 %v816_v51, %v809_v38  ;;  %v829_v2 = vmax.f32 %v605_v32, %v717_v52  ;;  %v604_v8 = vadd.f32 %v2656_v53, %v455_v62  ;;  %v457_v9 = vmul.f32 %v2645_v48, %v308_v36  ;;  %2291 = vmatpush3.bf16.msra.mxu0 %v2450_v6  ;;  %v2453_v36 = vld [vmem:[%s3393_s1 + $0x1a8] sm:$0xff]  }
  0x41   : > { %1438 = vmatmul.mubr.bf16.gmra.mrb[12].mxu0 %v898_v37  ;;  %v824_v7 = vmax.f32 %v600_v44, %v712_v61  ;;  %v599_v10 = vadd.f32 %v2660_v55, %v450_v63  ;;  %v831_v13 = vmax.f32 %v607_v54, %v719_v3  ;;  %v709_v14 = vmul.f32 0.2, %v597_v4  ;;  %2292 = vmatprep.subr.bf16.mxu0 %v2452_v35  ;;  %v2454_v61 = vld [vmem:[%s3393_s1 + $0x138] sm:$0xff]   ;;  %v335_v3 = vld [vmem:[%s2611_s14 + $0x2e0] sm:$0xff] }
  0x42   : > { %1535 = vmatmul.mubr.bf16.gmra.mrb[12].mxu1 %v900_v1  ;;  %v906_v12 = vpack.c.bf16 %v829_v2, %v822_v60  ;;  %v463_v15 = vmul.f32 %v2629_v42, %v314_v45  ;;  %v716_v16 = vmul.f32 0.2, %v604_v8  ;;  %v606_v17 = vadd.f32 %v2660_v55, %v457_v9  ;;  %v328_v60 = vld [vmem:[%s2611_s14 + $0x2a8] sm:$0xff]  ;;  %v330_v9 = vld [vmem:[%s2611_s14 + $0x2b8] sm:$0xff] }
  0x43   : > { %v711_v18 = vmul.f32 0.2, %v599_v10  ;;  %v470_v19 = vmul.f32 %v2629_v42, %v321_v57  ;;  %v908_v22 = vpack.c.bf16 %v831_v13, %v824_v7  ;;  %v821_v23 = vmax.f32 %v597_v4, %v709_v14  ;;  %2367 = vmatpush3.bf16.msra.mxu1 %v2451_v11  ;;  %v2455_v4 = vld [vmem:[%s3393_s1 + $0x1b0] sm:$0xff]  }
  0x44   : > { %1445 = vmatprep.mubr.bf16.mxu0 %v906_v12  ;;  %v612_v25 = vadd.f32 %v2648_v49, %v463_v15  ;;  %v465_v26 = vmul.f32 %v2639_v46, %v316_v5  ;;  %v828_v30 = vmax.f32 %v604_v8, %v716_v16  ;;  %v718_v31 = vmul.f32 0.2, %v606_v17  ;;  %2368 = vmatprep.subr.bf16.mxu1 %v2453_v36 }
  0x45   : > { %v823_v32 = vmax.f32 %v599_v10, %v711_v18  ;;  %v619_v33 = vadd.f32 %v2648_v49, %v470_v19  ;;  %1542 = vmatprep.mubr.bf16.mxu1 %v908_v22  ;;  %v472_v38 = vmul.f32 %v2639_v46, %v323_v20  ;;  %v462_v44 = vmul.f32 %v2642_v47, %v313_v21  ;;  %v337_v10 = vld [vmem:[%s2611_s14 + $0x2f0] sm:$0xff] }
  0x46   : > { %v724_v37 = vmul.f32 0.2, %v612_v25  ;;  %v614_v39 = vadd.f32 %v2651_v50, %v465_v26  ;;  %v905_v45 = vpack.c.bf16 %v828_v30, %v821_v23  ;;  %v830_v51 = vmax.f32 %v606_v17, %v718_v31  ;;  %2293 = vmatpush3.bf16.msra.mxu0 %v2454_v61  ;;  %v327_v23 = vld [vmem:[%s2611_s14 + $0x2a0] sm:$0xff]  ;;  %v334_v31 = vld [vmem:[%s2611_s14 + $0x2d8] sm:$0xff] }
  0x47   : > { %v731_v52 = vmul.f32 0.2, %v619_v33  ;;  %v469_v54 = vmul.f32 %v2642_v47, %v320_v27  ;;  %v621_v57 = vadd.f32 %v2651_v50, %v472_v38  ;;  %v611_v59 = vadd.f32 %v2656_v53, %v462_v44  ;;  %2369 = vmatpush3.bf16.msra.mxu1 %v2453_v36 }
  0x48   : > { %v836_v56 = vmax.f32 %v612_v25, %v724_v37  ;;  %v726_v58 = vmul.f32 0.2, %v614_v39  ;;  %v907_v62 = vpack.c.bf16 %v830_v51, %v823_v32  ;;  %v464_v2 = vmul.f32 %v2645_v48, %v315_v29  ;;  %2370 = vmatprep.subr.bf16.mxu1 %v2455_v4  ;;  %v2456_v25 = vld [vmem:[%s3393_s1 + $0x1b8] sm:$0xff]   ;;  %v329_v32 = vld [vmem:[%s2611_s14 + $0x2b0] sm:$0xff] }
  0x49   : > { %1446 = vmatmul.mubr.bf16.gmra.mrb[16].mxu0 %v905_v45  ;;  %v843_v63 = vmax.f32 %v619_v33, %v731_v52  ;;  %v618_v1 = vadd.f32 %v2656_v53, %v469_v54  ;;  %v733_v5 = vmul.f32 0.2, %v621_v57  ;;  %v723_v7 = vmul.f32 0.2, %v611_v59  ;;  %v336_v45 = vld [vmem:[%s2611_s14 + $0x2e8] sm:$0xff] }
  0x4a   : > { %v838_v6 = vmax.f32 %v614_v39, %v726_v58  ;;  %v471_v8 = vmul.f32 %v2645_v48, %v322_v34  ;;  %1543 = vmatmul.mubr.bf16.gmra.mrb[16].mxu1 %v907_v62  ;;  %v613_v13 = vadd.f32 %v2660_v55, %v464_v2  ;;  %v477_v14 = vmul.f32 %v2629_v42, %v328_v60  ;;  %v349_v62 = vld [vmem:[%s2611_s14 + $0x350] sm:$0xff] }
  0x4b   : > { %v913_v11 = vpack.c.bf16 %v843_v63, %v836_v56  ;;  %v730_v12 = vmul.f32 0.2, %v618_v1  ;;  %v845_v15 = vmax.f32 %v621_v57, %v733_v5  ;;  %v835_v16 = vmax.f32 %v611_v59, %v723_v7  ;;  %2371 = vmatpush3.bf16.msra.mxu1 %v2455_v4  ;;  %v342_v57 = vld [vmem:[%s2611_s14 + $0x318] sm:$0xff]  ;;  %v344_v4 = vld [vmem:[%s2611_s14 + $0x328] sm:$0xff] }
  0x4c   : > { %v620_v17 = vadd.f32 %v2660_v55, %v471_v8  ;;  %v484_v18 = vmul.f32 %v2629_v42, %v335_v3  ;;  %v725_v20 = vmul.f32 0.2, %v613_v13  ;;  %v626_v21 = vadd.f32 %v2648_v49, %v477_v14  ;;  %2372 = vmatprep.subr.bf16.mxu1 %v2456_v25  ;;  %v341_v14 = vld [vmem:[%s2611_s14 + $0x310] sm:$0xff] }
  0x4d   : > { %1453 = vmatprep.mubr.bf16.mxu0 %v913_v11  ;;  %v842_v19 = vmax.f32 %v618_v1, %v730_v12  ;;  %v479_v22 = vmul.f32 %v2639_v46, %v330_v9  ;;  %v915_v26 = vpack.c.bf16 %v845_v15, %v838_v6  ;;  %v486_v30 = vmul.f32 %v2639_v46, %v337_v10 }
  0x4e   : > { %v732_v27 = vmul.f32 0.2, %v620_v17  ;;  %v633_v29 = vadd.f32 %v2648_v49, %v484_v18  ;;  %v837_v34 = vmax.f32 %v613_v13, %v725_v20  ;;  %v738_v35 = vmul.f32 0.2, %v626_v21  ;;  %v351_v13 = vld [vmem:[%s2611_s14 + $0x360] sm:$0xff] }
  0x4f   : > { %v912_v33 = vpack.c.bf16 %v842_v19, %v835_v16  ;;  %v628_v36 = vadd.f32 %v2651_v50, %v479_v22  ;;  %1550 = vmatprep.mubr.bf16.mxu1 %v915_v26  ;;  %v635_v39 = vadd.f32 %v2651_v50, %v486_v30  ;;  %v476_v44 = vmul.f32 %v2642_v47, %v327_v23  ;;  %v348_v19 = vld [vmem:[%s2611_s14 + $0x348] sm:$0xff] }
  0x50   : > { %v844_v37 = vmax.f32 %v620_v17, %v732_v27  ;;  %v745_v38 = vmul.f32 0.2, %v633_v29  ;;  %v850_v51 = vmax.f32 %v626_v21, %v738_v35  ;;  %v483_v54 = vmul.f32 %v2642_v47, %v334_v31  ;;  %2373 = vmatpush3.bf16.msra.mxu1 %v2456_v25 }
  0x51   : > { %1454 = vmatmul.mubr.bf16.gmra.mrb[20].mxu0 %v912_v33  ;;  %v740_v52 = vmul.f32 0.2, %v628_v36  ;;  %v478_v56 = vmul.f32 %v2645_v48, %v329_v32  ;;  %v747_v60 = vmul.f32 0.2, %v635_v39  ;;  %v625_v61 = vadd.f32 %v2656_v53, %v476_v44 }
  0x52   : > { %v914_v58 = vpack.c.bf16 %v844_v37, %v837_v34  ;;  %v857_v59 = vmax.f32 %v633_v29, %v745_v38  ;;  %v632_v1 = vadd.f32 %v2656_v53, %v483_v54  ;;  %v485_v2 = vmul.f32 %v2645_v48, %v336_v45  ;;  %v343_v29 = vld [vmem:[%s2611_s14 + $0x320] sm:$0xff]  ;;  %v350_v34 = vld [vmem:[%s2611_s14 + $0x358] sm:$0xff]  ;;  %v248_v54 = vld [vmem:[%s2611_s14 + $0x28] sm:$0xff] }
  0x53   : > { %v852_v63 = vmax.f32 %v628_v36, %v740_v52  ;;  %v627_v3 = vadd.f32 %v2660_v55, %v478_v56  ;;  %v859_v6 = vmax.f32 %v635_v39, %v747_v60  ;;  %v737_v7 = vmul.f32 0.2, %v625_v61  ;;  %v255_v56 = vld [vmem:[%s2611_s14 + $0x60] sm:$0xff] }
  0x54   : > { %1551 = vmatmul.mubr.bf16.gmra.mrb[20].mxu1 %v914_v58  ;;  %v920_v5 = vpack.c.bf16 %v857_v59, %v850_v51  ;;  %v491_v8 = vmul.f32 %v2629_v42, %v342_v57  ;;  %v744_v9 = vmul.f32 0.2, %v632_v1  ;;  %v634_v10 = vadd.f32 %v2660_v55, %v485_v2 }
  0x55   : > { %v739_v11 = vmul.f32 0.2, %v627_v3  ;;  %v498_v12 = vmul.f32 %v2629_v42, %v349_v62  ;;  %v922_v15 = vpack.c.bf16 %v859_v6, %v852_v63  ;;  %v849_v16 = vmax.f32 %v625_v61, %v737_v7  ;;  %v262_v7 = vld [vmem:[%s2611_s14 + $0x98] sm:$0xff] }
  0x56   : > { %1461 = vmatprep.mubr.bf16.mxu0 %v920_v5  ;;  %v640_v17 = vadd.f32 %v2648_v49, %v491_v8  ;;  %v493_v18 = vmul.f32 %v2639_v46, %v344_v4  ;;  %v856_v20 = vmax.f32 %v632_v1, %v744_v9  ;;  %v746_v21 = vmul.f32 0.2, %v634_v10  ;;  %v254_v4 = vld [vmem:[%s2611_s14 + $0x58] sm:$0xff] }
  0x57   : > { %v851_v22 = vmax.f32 %v627_v3, %v739_v11  ;;  %v647_v23 = vadd.f32 %v2648_v49, %v498_v12  ;;  %1558 = vmatprep.mubr.bf16.mxu1 %v922_v15  ;;  %v500_v26 = vmul.f32 %v2639_v46, %v351_v13  ;;  %v490_v27 = vmul.f32 %v2642_v47, %v341_v14  ;;  %v247_v3 = vld [vmem:[%s2611_s14 + $0x20] sm:$0xff]  ;;  %v249_v12 = vld [vmem:[%s2611_s14 + $0x30] sm:$0xff]  ;;  %v256_v15 = vld [vmem:[%s2611_s14 + $0x68] sm:$0xff] }
  0x58   : > { %v752_v42 = vmul.f32 0.2, %v640_v17  ;;  %v642_v25 = vadd.f32 %v2651_v50, %v493_v18  ;;  %v919_v30 = vpack.c.bf16 %v856_v20, %v849_v16  ;;  %v858_v31 = vmax.f32 %v634_v10, %v746_v21  ;;  %v263_v16 = vld [vmem:[%s2611_s14 + $0xa0] sm:$0xff]  ;;  %v270_v21 = vld [vmem:[%s2611_s14 + $0xd8] sm:$0xff] }
  0x59   : > { %v759_v32 = vmul.f32 0.2, %v647_v23  ;;  %v497_v33 = vmul.f32 %v2642_v47, %v348_v19  ;;  %v649_v49 = vadd.f32 %v2651_v50, %v500_v26  ;;  %v639_v37 = vadd.f32 %v2656_v53, %v490_v27  ;;  %v2460_v19 = vld [vmem:[%s3395_s3] sm:$0xff]  ;;  %v269_v27 = vld [vmem:[%s2611_s14 + $0xd0] sm:$0xff] }
  0x5a   : > { %v864_v35 = vmax.f32 %v640_v17, %v752_v42  ;;  %v754_v36 = vmul.f32 0.2, %v642_v25  ;;  %1462 = vmatmul.mubr.bf16.gmra.mrb[24].mxu0 %v919_v30  ;;  %v921_v46 = vpack.c.bf16 %v858_v31, %v851_v22  ;;  %v492_v44 = vmul.f32 %v2645_v48, %v343_v29 }
  0x5b   : > { %v871_v38 = vmax.f32 %v647_v23, %v759_v32  ;;  %v646_v39 = vadd.f32 %v2656_v53, %v497_v33  ;;  %v761_v45 = vmul.f32 0.2, %v649_v49  ;;  %v751_v52 = vmul.f32 0.2, %v639_v37 }
  0x5c   : > { %v866_v51 = vmax.f32 %v642_v25, %v754_v36  ;;  %v499_v47 = vmul.f32 %v2645_v48, %v350_v34  ;;  %1559 = vmatmul.mubr.bf16.gmra.mrb[24].mxu1 %v921_v46  ;;  %v641_v58 = vadd.f32 %v2660_v55, %v492_v44  ;;  %v2925_v53 = vrot.slane %v2625_v40, %v379_v41 }
  0x5d   : > { %v927_v50 = vpack.c.bf16 %v871_v38, %v864_v35  ;;  %v758_v57 = vmul.f32 0.2, %v646_v39  ;;  %v873_v59 = vmax.f32 %v649_v49, %v761_v45  ;;  %v863_v60 = vmax.f32 %v639_v37, %v751_v52  ;;  %v261_v38 = vld [vmem:[%s2611_s14 + $0x90] sm:$0xff] }
  0x5e   : > { %v648_v61 = vadd.f32 %v2660_v55, %v499_v47  ;;  %v2931_v48 = vrot.slane %v2634_v43, %v379_v41  ;;  %v753_v63 = vmul.f32 0.2, %v641_v58  ;;  %v397_v1 = vmul.f32 %v2925_v53, %v248_v54 }
  0x5f   : > { %1469 = vmatprep.mubr.bf16.mxu0 %v927_v50  ;;  %v870_v62 = vmax.f32 %v646_v39, %v758_v57  ;;  %v404_v2 = vmul.f32 %v2925_v53, %v255_v56  ;;  %v929_v5 = vpack.c.bf16 %v873_v59, %v866_v51  ;;  %v2940_v55 = vrot.slane %v2625_v40, %v375_v0  ;;  %v268_v50 = vld [vmem:[%s2611_s14 + $0xc8] sm:$0xff] }
  0x60   : > { %v760_v6 = vmul.f32 0.2, %v648_v61  ;;  %v2945_v41 = vrot.slane %v2634_v43, %v375_v0  ;;  %v865_v9 = vmax.f32 %v641_v58, %v753_v63  ;;  %v546_v10 = vadd.f32 %v2931_v48, %v397_v1  ;;  %v2459_v43 = vld [vmem:[%s3394_s2] sm:$0xff]  ;;  %v276_v57 = vld [vmem:[%s2611_s14 + $0x108] sm:$0xff] }
  0x61   : > { %v926_v8 = vpack.c.bf16 %v870_v62, %v863_v60  ;;  %v553_v11 = vadd.f32 %v2931_v48, %v404_v2  ;;  %1566 = vmatprep.mubr.bf16.mxu1 %v929_v5  ;;  %v396_v14 = vmul.f32 %v2940_v55, %v247_v3  ;;  %v403_v40 = vmul.f32 %v2940_v55, %v254_v4  ;;  %v283_v62 = vld [vmem:[%s2611_s14 + $0x140] sm:$0xff] }
  0x62   : > { %v872_v13 = vmax.f32 %v648_v61, %v760_v6  ;;  %v2959_v0 = vrot.slane %v2459_v43, %v383_v28  ;;  %v658_v17 = vmul.f32 0.2, %v546_v10  ;;  %v2967_v20 = vrot.slane %v2460_v19, %v383_v28 }
  0x63   : > { %1470 = vmatmul.mubr.bf16.gmra.mrb[28].mxu0 %v926_v8  ;;  %v665_v18 = vmul.f32 0.2, %v553_v11  ;;  %v411_v22 = vmul.f32 %v2925_v53, %v262_v7  ;;  %v545_v42 = vadd.f32 %v2945_v41, %v396_v14  ;;  %v552_v26 = vadd.f32 %v2945_v41, %v403_v40  ;;  %v275_v8 = vld [vmem:[%s2611_s14 + $0x100] sm:$0xff]  ;;  %v277_v14 = vld [vmem:[%s2611_s14 + $0x110] sm:$0xff] }
  0x64   : > { %v928_v23 = vpack.c.bf16 %v872_v13, %v865_v9  ;;  %v398_v25 = vmul.f32 %v2959_v0, %v249_v12  ;;  %v770_v29 = vmax.f32 %v546_v10, %v658_v17  ;;  %v405_v31 = vmul.f32 %v2959_v0, %v256_v15  ;;  %v282_v9 = vld [vmem:[%s2611_s14 + $0x138] sm:$0xff]  ;;  %v284_v17 = vld [vmem:[%s2611_s14 + $0x148] sm:$0xff] }
  0x65   : > { %v777_v30 = vmax.f32 %v553_v11, %v665_v18  ;;  %v412_v32 = vmul.f32 %v2959_v0, %v263_v16  ;;  %v657_v28 = vmul.f32 0.2, %v545_v42  ;;  %v664_v33 = vmul.f32 0.2, %v552_v26 }
  0x66   : > { %1567 = vmatmul.mubr.bf16.gmra.mrb[28].mxu1 %v928_v23  ;;  %v547_v34 = vadd.f32 %v2967_v20, %v398_v25  ;;  %v419_v35 = vmul.f32 %v2959_v0, %v270_v21  ;;  %v554_v36 = vadd.f32 %v2967_v20, %v405_v31  ;;  %v418_v46 = vmul.f32 %v2925_v53, %v269_v27  ;;  %v291_v23 = vld [vmem:[%s2611_s14 + $0x180] sm:$0xff] }
  0x67   : > { %v882_v49 = vpack.c.bf16 %v777_v30, %v770_v29  ;;  %v561_v37 = vadd.f32 %v2967_v20, %v412_v32  ;;  %v769_v39 = vmax.f32 %v545_v42, %v657_v28  ;;  %v776_v44 = vmax.f32 %v552_v26, %v664_v33  ;;  %v298_v28 = vld [vmem:[%s2611_s14 + $0x1b8] sm:$0xff] }
  0x68   : > { %v659_v45 = vmul.f32 0.2, %v547_v34  ;;  %v568_v51 = vadd.f32 %v2967_v20, %v419_v35  ;;  %v666_v52 = vmul.f32 0.2, %v554_v36  ;;  %v560_v54 = vadd.f32 %v2931_v48, %v411_v22 }
  0x69   : > { %1607 = vmatprep.mubr.bf16.mxu0 %v882_v49  ;;  %v673_v47 = vmul.f32 0.2, %v561_v37  ;;  %v567_v56 = vadd.f32 %v2931_v48, %v418_v46  ;;  %v881_v58 = vpack.c.bf16 %v776_v44, %v769_v39  ;;  %v410_v61 = vmul.f32 %v2940_v55, %v261_v38  ;;  %v290_v39 = vld [vmem:[%s2611_s14 + $0x178] sm:$0xff] }
  0x6a   : > { %v771_v59 = vmax.f32 %v547_v34, %v659_v45  ;;  %v680_v60 = vmul.f32 0.2, %v568_v51  ;;  %v778_v63 = vmax.f32 %v554_v36, %v666_v52  ;;  %v672_v2 = vmul.f32 0.2, %v560_v54 }
  0x6b   : > { %v785_v1 = vmax.f32 %v561_v37, %v673_v47  ;;  %v679_v3 = vmul.f32 0.2, %v567_v56  ;;  %1608 = vmatmul.mubr.bf16.vlgmr.msra.gmra.mrb[32].mxu0 %v881_v58  ;;  %v417_v5 = vmul.f32 %v2940_v55, %v268_v50  ;;  %v559_v6 = vadd.f32 %v2945_v41, %v410_v61  ;;  %v297_v47 = vld [vmem:[%s2611_s14 + $0x1b0] sm:$0xff] }
  0x6c   : > { %v792_v4 = vmax.f32 %v568_v51, %v680_v60  ;;  %v425_v7 = vmul.f32 %v2925_v53, %v276_v57  ;;  %v883_v10 = vpack.c.bf16 %v778_v63, %v771_v59  ;;  %v784_v11 = vmax.f32 %v560_v54, %v672_v2  ;;  %v289_v54 = vld [vmem:[%s2611_s14 + $0x170] sm:$0xff]  ;;  %v296_v59 = vld [vmem:[%s2611_s14 + $0x1a8] sm:$0xff] }
  0x6d   : > { %v791_v12 = vmax.f32 %v567_v56, %v679_v3  ;;  %v432_v13 = vmul.f32 %v2925_v53, %v283_v62  ;;  %v566_v15 = vadd.f32 %v2945_v41, %v417_v5  ;;  %v671_v43 = vmul.f32 0.2, %v559_v6 }
  0x6e   : > { %v890_v40 = vpack.c.bf16 %v792_v4, %v785_v1  ;;  %v574_v16 = vadd.f32 %v2931_v48, %v425_v7  ;;  %2374 = vmatprep.mubr.bf16.mxu1 %v883_v10  ;;  %v424_v21 = vmul.f32 %v2940_v55, %v275_v8  ;;  %v431_v22 = vmul.f32 %v2940_v55, %v282_v9  ;;  %v304_v1 = vld [vmem:[%s2611_s14 + $0x1e8] sm:$0xff] }
  0x6f   : > { %v889_v18 = vpack.c.bf16 %v791_v12, %v784_v11  ;;  %v581_v19 = vadd.f32 %v2931_v48, %v432_v13  ;;  %v678_v42 = vmul.f32 0.2, %v566_v15  ;;  %v783_v26 = vmax.f32 %v559_v6, %v671_v43  ;;  %v311_v6 = vld [vmem:[%s2611_s14 + $0x220] sm:$0xff] }
  0x70   : > { %2375 = vmatmul.mubr.bf16.vlgmr.msra.gmra.mrb[32].mxu1 %v890_v40  ;;  %v686_v25 = vmul.f32 0.2, %v574_v16  ;;  %v426_v27 = vmul.f32 %v2959_v0, %v277_v14  ;;  %v573_v30 = vadd.f32 %v2945_v41, %v424_v21  ;;  %v580_v31 = vadd.f32 %v2945_v41, %v431_v22  ;;  %v303_v11 = vld [vmem:[%s2611_s14 + $0x1e0] sm:$0xff] }
  0x71   : > { %1615 = vmatprep.mubr.bf16.mxu0 %v889_v18  ;;  %v693_v29 = vmul.f32 0.2, %v581_v19  ;;  %v433_v32 = vmul.f32 %v2959_v0, %v284_v17  ;;  %v790_v33 = vmax.f32 %v566_v15, %v678_v42  ;;  %v440_v49 = vmul.f32 %v2959_v0, %v291_v23  ;;  %v310_v18 = vld [vmem:[%s2611_s14 + $0x218] sm:$0xff]  ;;  %v305_v42 = vld [vmem:[%s2611_s14 + $0x1f0] sm:$0xff] }
  0x72   : > { %v798_v34 = vmax.f32 %v574_v16, %v686_v25  ;;  %v575_v35 = vadd.f32 %v2967_v20, %v426_v27  ;;  %v685_v37 = vmul.f32 0.2, %v573_v30  ;;  %v692_v46 = vmul.f32 0.2, %v580_v31 }
  0x73   : > { %v805_v36 = vmax.f32 %v581_v19, %v693_v29  ;;  %v582_v38 = vadd.f32 %v2967_v20, %v433_v32  ;;  %v888_v44 = vpack.c.bf16 %v790_v33, %v783_v26  ;;  %v447_v51 = vmul.f32 %v2959_v0, %v298_v28 }
  0x74   : > { %v687_v45 = vmul.f32 0.2, %v575_v35  ;;  %v589_v52 = vadd.f32 %v2967_v20, %v440_v49  ;;  %v797_v50 = vmax.f32 %v573_v30, %v685_v37  ;;  %v804_v57 = vmax.f32 %v580_v31, %v692_v46  ;;  %v312_v30 = vld [vmem:[%s2611_s14 + $0x228] sm:$0xff]  ;;  %v319_v37 = vld [vmem:[%s2611_s14 + $0x260] sm:$0xff]  ;;  %v326_v46 = vld [vmem:[%s2611_s14 + $0x298] sm:$0xff] }
  0x75   : > { %v896_v56 = vpack.c.bf16 %v805_v36, %v798_v34  ;;  %v694_v58 = vmul.f32 0.2, %v582_v38  ;;  %1616 = vmatmul.mubr.bf16.gmra.mrb[36].mxu0 %v888_v44  ;;  %v596_v61 = vadd.f32 %v2967_v20, %v447_v51  ;;  %v439_v63 = vmul.f32 %v2925_v53, %v290_v39  ;;  %v318_v51 = vld [vmem:[%s2611_s14 + $0x258] sm:$0xff] }
  0x76   : > { %v799_v60 = vmax.f32 %v575_v35, %v687_v45  ;;  %v701_v62 = vmul.f32 0.2, %v589_v52  ;;  %v895_v2 = vpack.c.bf16 %v804_v57, %v797_v50  ;;  %v446_v4 = vmul.f32 %v2925_v53, %v297_v47 }
  0x77   : > { %1623 = vmatprep.mubr.bf16.mxu0 %v896_v56  ;;  %v806_v3 = vmax.f32 %v582_v38, %v694_v58  ;;  %v438_v5 = vmul.f32 %v2940_v55, %v289_v54  ;;  %v708_v7 = vmul.f32 0.2, %v596_v61  ;;  %v588_v9 = vadd.f32 %v2931_v48, %v439_v63 }
  0x78   : > { %v813_v8 = vmax.f32 %v589_v52, %v701_v62  ;;  %v445_v10 = vmul.f32 %v2940_v55, %v296_v59  ;;  %v595_v13 = vadd.f32 %v2931_v48, %v446_v4  ;;  %v453_v40 = vmul.f32 %v2925_v53, %v304_v1  ;;  %v325_v59 = vld [vmem:[%s2611_s14 + $0x290] sm:$0xff] }
  0x79   : > { %v897_v12 = vpack.c.bf16 %v806_v3, %v799_v60  ;;  %v587_v14 = vadd.f32 %v2945_v41, %v438_v5  ;;  %v820_v15 = vmax.f32 %v596_v61, %v708_v7  ;;  %v700_v43 = vmul.f32 0.2, %v588_v9  ;;  %v317_v60 = vld [vmem:[%s2611_s14 + $0x250] sm:$0xff] }
  0x7a   : > { %v594_v16 = vadd.f32 %v2945_v41, %v445_v10  ;;  %v460_v17 = vmul.f32 %v2925_v53, %v311_v6  ;;  %v707_v19 = vmul.f32 0.2, %v595_v13  ;;  %v602_v22 = vadd.f32 %v2931_v48, %v453_v40  ;;  %v324_v6 = vld [vmem:[%s2611_s14 + $0x288] sm:$0xff] }
  0x7b   : > { %2378 = vmatprep.mubr.bf16.mxu1 %v897_v12  ;;  %v699_v21 = vmul.f32 0.2, %v587_v14  ;;  %v452_v23 = vmul.f32 %v2940_v55, %v303_v11  ;;  %v904_v26 = vpack.c.bf16 %v820_v15, %v813_v8  ;;  %v812_v25 = vmax.f32 %v588_v9, %v700_v43  ;;  %v332_v11 = vld [vmem:[%s2611_s14 + $0x2c8] sm:$0xff] }
  0x7c   : > { %v706_v27 = vmul.f32 0.2, %v594_v16  ;;  %v609_v29 = vadd.f32 %v2931_v48, %v460_v17  ;;  %v819_v31 = vmax.f32 %v595_v13, %v707_v19  ;;  %v714_v28 = vmul.f32 0.2, %v602_v22  ;;  %v331_v19 = vld [vmem:[%s2611_s14 + $0x2c0] sm:$0xff] }
  0x7d   : > { %v811_v32 = vmax.f32 %v587_v14, %v699_v21  ;;  %v459_v33 = vmul.f32 %v2940_v55, %v310_v18  ;;  %1624 = vmatmul.mubr.bf16.gmra.mrb[40].mxu0 %v895_v2  ;;  %2379 = vmatmul.mubr.bf16.gmra.mrb[36].mxu1 %v904_v26  ;;  %v601_v49 = vadd.f32 %v2945_v41, %v452_v23  ;;  %v339_v18 = vld [vmem:[%s2611_s14 + $0x300] sm:$0xff]  ;;  %v338_v26 = vld [vmem:[%s2611_s14 + $0x2f8] sm:$0xff] }
  0x7e   : > { %v818_v34 = vmax.f32 %v594_v16, %v706_v27  ;;  %v721_v35 = vmul.f32 0.2, %v609_v29  ;;  %v454_v36 = vmul.f32 %v2959_v0, %v305_v42  ;;  %v903_v38 = vpack.c.bf16 %v819_v31, %v812_v25  ;;  %v333_v31 = vld [vmem:[%s2611_s14 + $0x2d0] sm:$0xff] }
  0x7f   : > { %v826_v39 = vmax.f32 %v602_v22, %v714_v28  ;;  %v608_v44 = vadd.f32 %v2945_v41, %v459_v33  ;;  %v461_v45 = vmul.f32 %v2959_v0, %v312_v30  ;;  %v713_v47 = vmul.f32 0.2, %v601_v49 }
  0x80   : > { %v833_v52 = vmax.f32 %v609_v29, %v721_v35  ;;  %v603_v54 = vadd.f32 %v2967_v20, %v454_v36  ;;  %1631 = vmatprep.mubr.bf16.mxu0 %v903_v38  ;;  %v468_v57 = vmul.f32 %v2959_v0, %v319_v37  ;;  %v475_v58 = vmul.f32 %v2959_v0, %v326_v46  ;;  %v340_v35 = vld [vmem:[%s2611_s14 + $0x308] sm:$0xff] }
  0x81   : > { %v720_v56 = vmul.f32 0.2, %v608_v44  ;;  %v610_v50 = vadd.f32 %v2967_v20, %v461_v45  ;;  %v902_v61 = vpack.c.bf16 %v818_v34, %v811_v32  ;;  %v467_v1 = vmul.f32 %v2925_v53, %v318_v51  ;;  %v347_v51 = vld [vmem:[%s2611_s14 + $0x340] sm:$0xff] }
  0x82   : > { %v910_v62 = vpack.c.bf16 %v833_v52, %v826_v39  ;;  %v715_v63 = vmul.f32 0.2, %v603_v54  ;;  %v825_v2 = vmax.f32 %v601_v49, %v713_v47  ;;  %v617_v4 = vadd.f32 %v2967_v20, %v468_v57 }
  0x83   : > { %v722_v3 = vmul.f32 0.2, %v610_v50  ;;  %v624_v5 = vadd.f32 %v2967_v20, %v475_v58  ;;  %v474_v8 = vmul.f32 %v2925_v53, %v325_v59  ;;  %v616_v9 = vadd.f32 %v2931_v48, %v467_v1  ;;  %v353_v1 = vld [vmem:[%s2611_s14 + $0x370] sm:$0xff] }
  0x84   : > { %v827_v7 = vmax.f32 %v603_v54, %v715_v63  ;;  %v466_v10 = vmul.f32 %v2940_v55, %v317_v60  ;;  %v832_v12 = vmax.f32 %v608_v44, %v720_v56  ;;  %v729_v14 = vmul.f32 0.2, %v617_v4  ;;  %v346_v60 = vld [vmem:[%s2611_s14 + $0x338] sm:$0xff] }
  0x85   : > { %v834_v13 = vmax.f32 %v610_v50, %v722_v3  ;;  %v736_v40 = vmul.f32 0.2, %v624_v5  ;;  %1632 = vmatmul.mubr.bf16.gmra.mrb[44].mxu0 %v902_v61  ;;  %v623_v15 = vadd.f32 %v2931_v48, %v474_v8  ;;  %v728_v43 = vmul.f32 0.2, %v616_v9  ;;  %v354_v50 = vld [vmem:[%s2611_s14 + $0x378] sm:$0xff] }
  0x86   : > { %v473_v16 = vmul.f32 %v2940_v55, %v324_v6  ;;  %v615_v17 = vadd.f32 %v2945_v41, %v466_v10  ;;  %1639 = vmatprep.mubr.bf16.mxu0 %v910_v62  ;;  %v841_v22 = vmax.f32 %v617_v4, %v729_v14  ;;  %v481_v42 = vmul.f32 %v2925_v53, %v332_v11  ;;  %v345_v10 = vld [vmem:[%s2611_s14 + $0x330] sm:$0xff]  ;;  %v352_v11 = vld [vmem:[%s2611_s14 + $0x368] sm:$0xff]  ;;  %s2140_s14 = sshll.u32 %s2505_s19, 7  ;;  %s3403_s19 = smov (!%p238_p6, %s2505_s19), 1 }
  0x87   : > { %v911_v21 = vpack.c.bf16 %v834_v13, %v827_v7  ;;  %v848_v23 = vmax.f32 %v624_v5, %v736_v40  ;;  %v735_v25 = vmul.f32 0.2, %v623_v15  ;;  %v840_v27 = vmax.f32 %v616_v9, %v728_v43  ;;  %s1884_s11 = ssub.s32 242, %s2140_s14  ;;  %s2083_s27 = sshll.u32 %s3403_s19, 3 }
  0x88   : > { %v622_v29 = vadd.f32 %v2945_v41, %v473_v16  ;;  %v727_v30 = vmul.f32 0.2, %v615_v17  ;;  %v488_v28 = vmul.f32 %v2925_v53, %v339_v18  ;;  %v630_v33 = vadd.f32 %v2931_v48, %v481_v42  ;;  %p1885_p4 = scmp.lt.s32.totalorder %s1884_s11, 128  ;;  %p2141_p5 = scmp.gt.s32.totalorder %s1884_s11, 1 }
  0x89   : > { %2382 = vmatprep.mubr.bf16.mxu1 %v911_v21  ;;  %v918_v32 = vpack.c.bf16 %v848_v23, %v841_v22  ;;  %v480_v34 = vmul.f32 %v2940_v55, %v331_v19  ;;  %v909_v49 = vpack.c.bf16 %v832_v12, %v825_v2  ;;  %v847_v36 = vmax.f32 %v623_v15, %v735_v25  ;;  %s3341_s24 = scalar_lea.vmem %s3397_s5, %s2083_s27 }
  0x8a   : > { %v734_v37 = vmul.f32 0.2, %v622_v29  ;;  %v487_v46 = vmul.f32 %v2940_v55, %v338_v26  ;;  %v637_v38 = vadd.f32 %v2931_v48, %v488_v28  ;;  %v742_v39 = vmul.f32 0.2, %v630_v33  ;;  %s1886_s12 = scalar_select %p1885_p4, %s1884_s11, 128 }
  0x8b   : > { %2383 = vmatmul.mubr.bf16.gmra.mrb[40].mxu1 %v918_v32  ;;  %v629_v44 = vadd.f32 %v2945_v41, %v480_v34  ;;  %v482_v45 = vmul.f32 %v2959_v0, %v333_v31  ;;  %v917_v52 = vpack.c.bf16 %v847_v36, %v840_v27  ;;  %v839_v47 = vmax.f32 %v615_v17, %v727_v30 }
  0x8c   : > { %v846_v54 = vmax.f32 %v622_v29, %v734_v37  ;;  %v489_v56 = vmul.f32 %v2959_v0, %v340_v35  ;;  %v749_v57 = vmul.f32 0.2, %v637_v38  ;;  %v636_v58 = vadd.f32 %v2945_v41, %v487_v46  ;;  %s3401_s12 = smov (!%p2141_p5, %s1886_s12), 1 }
  0x8d   : > { %v631_v59 = vadd.f32 %v2967_v20, %v482_v45  ;;  %1640 = vmatmul.mubr.bf16.gmra.mrb[48].mxu0 %v909_v49  ;;  %v854_v61 = vmax.f32 %v630_v33, %v742_v39  ;;  %v496_v63 = vmul.f32 %v2959_v0, %v347_v51  ;;  %v741_v3 = vmul.f32 0.2, %v629_v44  ;;  %s1889_s13 = scvt.s32.f32 %s3401_s12 }
  0x8e   : > { %v638_v62 = vadd.f32 %v2967_v20, %v489_v56  ;;  %1647 = vmatprep.mubr.bf16.mxu0 %v917_v52  ;;  %v861_v2 = vmax.f32 %v637_v38, %v749_v57  ;;  %v503_v5 = vmul.f32 %v2959_v0, %v354_v50  ;;  %v916_v6 = vpack.c.bf16 %v846_v54, %v839_v47 }
  0x8f   : > { %v743_v4 = vmul.f32 0.2, %v631_v59  ;;  %v645_v8 = vadd.f32 %v2967_v20, %v496_v63  ;;  %v495_v9 = vmul.f32 %v2925_v53, %v346_v60  ;;  %v748_v12 = vmul.f32 0.2, %v636_v58 }
  0x90   : > { %v750_v7 = vmul.f32 0.2, %v638_v62  ;;  %v652_v14 = vadd.f32 %v2967_v20, %v503_v5  ;;  %v502_v40 = vmul.f32 %v2925_v53, %v353_v1  ;;  %v924_v15 = vpack.c.bf16 %v861_v2, %v854_v61 }
  0x91   : > { %v855_v13 = vmax.f32 %v631_v59, %v743_v4  ;;  %v757_v16 = vmul.f32 0.2, %v645_v8  ;;  %v644_v17 = vadd.f32 %v2931_v48, %v495_v9  ;;  %v494_v19 = vmul.f32 %v2940_v55, %v345_v10 }
  0x92   : > { %v862_v43 = vmax.f32 %v638_v62, %v750_v7  ;;  %v764_v0 = vmul.f32 0.2, %v652_v14  ;;  %v651_v18 = vadd.f32 %v2931_v48, %v502_v40  ;;  %v501_v21 = vmul.f32 %v2940_v55, %v352_v11 }
  0x93   : > { %v869_v23 = vmax.f32 %v645_v8, %v757_v16  ;;  %v756_v42 = vmul.f32 0.2, %v644_v17  ;;  %v853_v26 = vmax.f32 %v629_v44, %v741_v3  ;;  %v860_v53 = vmax.f32 %v636_v58, %v748_v12 }
  0x94   : > { %v925_v22 = vpack.c.bf16 %v862_v43, %v855_v13  ;;  %v876_v25 = vmax.f32 %v652_v14, %v764_v0  ;;  %v763_v20 = vmul.f32 0.2, %v651_v18  ;;  %v643_v27 = vadd.f32 %v2945_v41, %v494_v19 }
  0x95   : > { %1648 = vmatmul.mubr.bf16.gmra.mrb[52].mxu0 %v916_v6  ;;  %v650_v29 = vadd.f32 %v2945_v41, %v501_v21  ;;  %v868_v30 = vmax.f32 %v644_v17, %v756_v42  ;;  %v923_v55 = vpack.c.bf16 %v860_v53, %v853_v26  ;;  %v1911_v41 = vstv %s1889_s13 }
  0x96   : > { %2386 = vmatprep.mubr.bf16.mxu1 %v925_v22  ;;  %1655 = vmatprep.mubr.bf16.mxu0 %v924_v15  ;;  %v932_v48 = vpack.c.bf16 %v876_v25, %v869_v23  ;;  %v875_v31 = vmax.f32 %v651_v18, %v763_v20  ;;  %v755_v32 = vmul.f32 0.2, %v643_v27  ;;  %2457 = vrcp.f32 %v1911_v41 }
  0x97   : > { %v762_v28 = vmul.f32 0.2, %v650_v29 }
  0x98   : > { %2387 = vmatmul.mubr.bf16.gmra.mrb[44].mxu1 %v932_v48  ;;  %v931_v33 = vpack.c.bf16 %v875_v31, %v868_v30  ;;  %v867_v34 = vmax.f32 %v643_v27, %v755_v32 }
  0x99   : > { %v874_v35 = vmax.f32 %v650_v29, %v762_v28 }
  0x9b   : > { %v930_v49 = vpack.c.bf16 %v874_v35, %v867_v34 }
  0x9d   : > { %1656 = vmatmul.mubr.bf16.gmra.mrb[56].mxu0 %v923_v55 }
  0x9e   : > { %1663 = vmatprep.mubr.bf16.mxu0 %v931_v33 }
  0xa0   : > { %v2458_v36 = vpop.eup %2457 }
  0xa1   : > { %2391 = vpush %v2458_v36 }
  0xa5   : > { %1664 = vmatmul.mubr.bf16.gmra.mrb[60].mxu0 %v930_v49 }
  0xd2   : > { %s2392_s21 = spop %2391 }
  0xfa   : > { %v2166_v37 = vpop.f32.mrb[0].mxu0 }
  0xfb   : > { %v2167_v46 = vpop.f32.mrb[1].mxu0  ;;  %v2230_v38 = vpop.f32.mrb[0].mxu1 }
  0xfc   : > { %v2168_v39 = vadd.f32 %v2167_v46, %v2166_v37  ;;  %v2169_v44 = vpop.f32.mrb[2].mxu0  ;;  %v2231_v45 = vpop.f32.mrb[1].mxu1 }
  0xfd   : > { %v2170_v51 = vpop.f32.mrb[3].mxu0  ;;  %v2232_v52 = vadd.f32 %v2231_v45, %v2230_v38  ;;  %v2233_v47 = vpop.f32.mrb[2].mxu1 }
  0xfe   : > { %v2171_v54 = vadd.f32 %v2170_v51, %v2169_v44  ;;  %v2234_v56 = vpop.f32.mrb[3].mxu1 }
  0xff   : > { %v3102_v50 = vadd.f32 %v2232_v52, %v2168_v39  ;;  %v2235_v57 = vadd.f32 %v2234_v56, %v2233_v47 }
 0x101   : > { %v3104_v58 = vadd.f32 %v2235_v57, %v2171_v54 }
 0x103   : > { %v2236_v61 = vpop.f32.mrb[4].mxu1 }
 0x104   : > { %v2172_v59 = vpop.f32.mrb[4].mxu0  ;;  %v2237_v1 = vpop.f32.mrb[5].mxu1 }
 0x105   : > { %v2173_v60 = vpop.f32.mrb[5].mxu0  ;;  %v2238_v3 = vadd.f32 %v2237_v1, %v2236_v61  ;;  %v2239_v4 = vpop.f32.mrb[6].mxu1 }
 0x106   : > { %v2174_v62 = vadd.f32 %v2173_v60, %v2172_v59  ;;  %v2175_v63 = vpop.f32.mrb[6].mxu0  ;;  %v2240_v6 = vpop.f32.mrb[7].mxu1 }
 0x107   : > { %v2176_v2 = vpop.f32.mrb[7].mxu0  ;;  %v2241_v8 = vadd.f32 %v2240_v6, %v2239_v4 }
 0x108   : > { %v2177_v5 = vadd.f32 %v2176_v2, %v2175_v63  ;;  %v3106_v7 = vadd.f32 %v2238_v3, %v2174_v62 }
 0x10a   : > { %v3108_v9 = vadd.f32 %v2241_v8, %v2177_v5 }
 0x10b   : > { %v2242_v12 = vpop.f32.mrb[8].mxu1 }
 0x10c   : > { %v2178_v10 = vpop.f32.mrb[8].mxu0  ;;  %v2243_v40 = vpop.f32.mrb[9].mxu1 }
 0x10d   : > { %v2179_v11 = vpop.f32.mrb[9].mxu0  ;;  %v2244_v43 = vadd.f32 %v2243_v40, %v2242_v12  ;;  %v2245_v16 = vpop.f32.mrb[10].mxu1 }
 0x10e   : > { %v2180_v13 = vadd.f32 %v2179_v11, %v2178_v10  ;;  %v2181_v14 = vpop.f32.mrb[10].mxu0  ;;  %v2246_v0 = vpop.f32.mrb[11].mxu1 }
 0x10f   : > { %v2182_v15 = vpop.f32.mrb[11].mxu0  ;;  %v2247_v19 = vadd.f32 %v2246_v0, %v2245_v16 }
 0x110   : > { %v2183_v17 = vadd.f32 %v2182_v15, %v2181_v14  ;;  %v3110_v18 = vadd.f32 %v2244_v43, %v2180_v13 }
 0x112   : > { %v3112_v21 = vadd.f32 %v2247_v19, %v2183_v17 }
 0x114   : > { %v2184_v22 = vpop.f32.mrb[12].mxu0 }
 0x115   : > { %v2185_v23 = vpop.f32.mrb[13].mxu0  ;;  %v2248_v25 = vpop.f32.mrb[12].mxu1 }
 0x116   : > { %v2186_v42 = vadd.f32 %v2185_v23, %v2184_v22  ;;  %v2187_v26 = vpop.f32.mrb[14].mxu0  ;;  %v2249_v53 = vpop.f32.mrb[13].mxu1 }
 0x117   : > { %v2188_v20 = vpop.f32.mrb[15].mxu0  ;;  %v2250_v29 = vadd.f32 %v2249_v53, %v2248_v25  ;;  %v2251_v48 = vpop.f32.mrb[14].mxu1 }
 0x118   : > { %v2189_v27 = vadd.f32 %v2188_v20, %v2187_v26  ;;  %v2252_v30 = vpop.f32.mrb[15].mxu1 }
 0x119   : > { %v3114_v31 = vadd.f32 %v2250_v29, %v2186_v42  ;;  %v2253_v55 = vadd.f32 %v2252_v30, %v2251_v48 }
 0x11b   : > { %v3116_v32 = vadd.f32 %v2253_v55, %v2189_v27 }
 0x11c   : > { %v2190_v28 = vpop.f32.mrb[16].mxu0 }
 0x11d   : > { %v2191_v33 = vpop.f32.mrb[17].mxu0  ;;  %v2254_v34 = vpop.f32.mrb[16].mxu1 }
 0x11e   : > { %v2192_v35 = vadd.f32 %v2191_v33, %v2190_v28  ;;  %v2193_v49 = vpop.f32.mrb[18].mxu0  ;;  %v2255_v41 = vpop.f32.mrb[17].mxu1  ;;  %v3134_v28 = vstv %s2140_s14  ;;  %v1771_v33 = vadd.s32 8, %v2581_v24 }
 0x11f   : > { %v2194_v36 = vpop.f32.mrb[19].mxu0  ;;  %v2256_v37 = vadd.f32 %v2255_v41, %v2254_v34  ;;  %v2257_v46 = vpop.f32.mrb[18].mxu1  ;;  %v3141_v41 = vadd.s32 %v3134_v28, %v2581_v24 }
 0x120   : > { %v2195_v38 = vadd.f32 %v2194_v36, %v2193_v49  ;;  %v2258_v39 = vpop.f32.mrb[19].mxu1 }
 0x121   : > { %v3118_v44 = vadd.f32 %v2256_v37, %v2192_v35  ;;  %v2259_v45 = vadd.f32 %v2258_v39, %v2257_v46  ;;  %vm1804_vm0 = vcmp.lt.s32.totalorder %v3141_v41, 242 }
 0x123   : > { %v3120_v51 = vadd.f32 %v2259_v45, %v2195_v38  ;;  %v3145_v38 = vadd.s32 %v3134_v28, %v1771_v33 }
 0x124   : > { %v2196_v52 = vpop.f32.mrb[20].mxu0 }
 0x125   : > { %v2197_v47 = vpop.f32.mrb[21].mxu0  ;;  %vm1805_vm1 = vcmp.lt.s32.totalorder %v3145_v38, 242 }
 0x126   : > { %v2198_v54 = vadd.f32 %v2197_v47, %v2196_v52  ;;  %v2199_v56 = vpop.f32.mrb[22].mxu0 }
 0x127   : > { %v2260_v57 = vpop.f32.mrb[20].mxu1  ;;  %v2200_v59 = vpop.f32.mrb[23].mxu0 }
 0x128   : > { %v2261_v60 = vpop.f32.mrb[21].mxu1  ;;  %v2201_v61 = vadd.f32 %v2200_v59, %v2199_v56 }
 0x129   : > { %v2262_v62 = vadd.f32 %v2261_v60, %v2260_v57  ;;  %v2263_v63 = vpop.f32.mrb[22].mxu1  ;;  %v1772_v60 = vadd.s32 16, %v2581_v24 }
 0x12a   : > { %v2264_v1 = vpop.f32.mrb[23].mxu1 }
 0x12b   : > { %v3122_v2 = vadd.f32 %v2262_v62, %v2198_v54  ;;  %v2265_v3 = vadd.f32 %v2264_v1, %v2263_v63  ;;  %v1773_v62 = vadd.s32 24, %v2581_v24 }
 0x12d   : > { %v3124_v4 = vadd.f32 %v2265_v3, %v2201_v61  ;;  %v2202_v5 = vpop.f32.mrb[24].mxu0  ;;  %v3171_v3 = vadd.s32 %v3134_v28, %v1772_v60 }
 0x12e   : > { %v2203_v6 = vpop.f32.mrb[25].mxu0 }
 0x12f   : > { %v2266_v8 = vpop.f32.mrb[24].mxu1  ;;  %v2204_v10 = vadd.f32 %v2203_v6, %v2202_v5  ;;  %v2205_v11 = vpop.f32.mrb[26].mxu0  ;;  %vm1806_vm2 = vcmp.lt.s32.totalorder %v3171_v3, 242 }
 0x130   : > { %v2267_v12 = vpop.f32.mrb[25].mxu1  ;;  %v2206_v13 = vpop.f32.mrb[27].mxu0 }
 0x131   : > { %v2268_v14 = vadd.f32 %v2267_v12, %v2266_v8  ;;  %v2269_v40 = vpop.f32.mrb[26].mxu1  ;;  %v2207_v15 = vadd.f32 %v2206_v13, %v2205_v11  ;;  %v1774_v13 = vadd.s32 32, %v2581_v24 }
 0x132   : > { %v2270_v43 = vpop.f32.mrb[27].mxu1 }
 0x133   : > { %v3126_v16 = vadd.f32 %v2268_v14, %v2204_v10  ;;  %v2271_v17 = vadd.f32 %v2270_v43, %v2269_v40  ;;  %v3174_v10 = vadd.s32 %v3134_v28, %v1773_v62 }
 0x135   : > { %v3128_v0 = vadd.f32 %v2271_v17, %v2207_v15  ;;  %vm1807_vm3 = vcmp.lt.s32.totalorder %v3174_v10, 242  ;;  %v1775_v15 = vadd.s32 40, %v2581_v24 }
 0x136   : > { %v2208_v19 = vpop.f32.mrb[28].mxu0 }
 0x137   : > { %v2209_v22 = vpop.f32.mrb[29].mxu0 }
 0x138   : > { %v2210_v23 = vadd.f32 %v2209_v22, %v2208_v19  ;;  %v2211_v42 = vpop.f32.mrb[30].mxu0 }
 0x139   : > { %v2272_v26 = vpop.f32.mrb[28].mxu1  ;;  %v2212_v25 = vpop.f32.mrb[31].mxu0 }
 0x13a   : > { %v2273_v20 = vpop.f32.mrb[29].mxu1  ;;  %v2213_v53 = vadd.f32 %v2212_v25, %v2211_v42 }
 0x13b   : > { %v2274_v27 = vadd.f32 %v2273_v20, %v2272_v26  ;;  %v2275_v29 = vpop.f32.mrb[30].mxu1 }
 0x13c   : > { %v2276_v48 = vpop.f32.mrb[31].mxu1 }
 0x13d   : > { %v3130_v30 = vadd.f32 %v2274_v27, %v2210_v23  ;;  %v2277_v55 = vadd.f32 %v2276_v48, %v2275_v29 }
 0x13e   : > { %v2294_v35 = vpop.f32.mrb[32].mxu0 }
 0x13f   : > { %v3137_v34 = vadd.f32 %v2277_v55, %v2213_v53  ;;  %v2295_v49 = vpop.f32.mrb[33].mxu0  ;;  %v3201_v55 = vadd.s32 %v3134_v28, %v1775_v15 }
 0x140   : > { %v2296_v36 = vadd.f32 %v2295_v49, %v2294_v35  ;;  %v2297_v37 = vpop.f32.mrb[34].mxu0  ;;  %v1776_v49 = vadd.s32 48, %v2581_v24 }
 0x141   : > { %v2298_v46 = vpop.f32.mrb[35].mxu0  ;;  %vm1809_vm5 = vcmp.lt.s32.totalorder %v3201_v55, 242 }
 0x142   : > { %v2299_v39 = vadd.f32 %v2298_v46, %v2297_v37  ;;  %v1610_v52 = vadd.f32 %v2296_v36, %v3102_v50 }
 0x143   : > { %v2376_v45 = vpop.f32.mrb[32].mxu1 }
 0x144   : > { %v1706_v47 = vpop.f32.mrb[33].mxu1  ;;  %v1613_v57 = vadd.f32 %v2299_v39, %v3104_v58  ;;  %v1777_v39 = vadd.s32 56, %v2581_v24 }
 0x145   : > { %v1707_v54 = vadd.f32 %v1706_v47, %v1610_v52  ;;  %v2377_v56 = vpop.f32.mrb[34].mxu1 }
 0x146   : > { %v1709_v59 = vpop.f32.mrb[35].mxu1  ;;  %v3228_v62 = vadd.s32 %v3134_v28, %v1777_v39 }
 0x147   : > { %v3159_v50 = vsel %vm1804_vm0, %v1707_v54, 0.0  ;;  %v1710_v61 = vadd.f32 %v1709_v59, %v1613_v57 }
 0x148   : > { %1868 = vst [vmem:[%s3152_s20] sm:$0xff] %v3159_v50  ;;  %v2300_v1 = vpop.f32.mrb[36].mxu0  ;;  %vm1811_vm7 = vcmp.lt.s32.totalorder %v3228_v62, 242 }
 0x149   : > { %v3166_v63 = vsel %vm1805_vm1, %v1710_v61, 0.0  ;;  %v2301_v58 = vpop.f32.mrb[37].mxu0 }
 0x14a   : > { %1869 = vst [vmem:[%s3152_s20 + $0x8] sm:$0xff] %v3166_v63  ;;  %v2302_v5 = vadd.f32 %v2301_v58, %v2300_v1  ;;  %v2303_v6 = vpop.f32.mrb[38].mxu0  ;;  %v1890_v22 = vadd.f32 %v3166_v63, %v3159_v50 }
 0x14b   : > { %v2304_v8 = vpop.f32.mrb[39].mxu0 }
 0x14c   : > { %v1618_v11 = vadd.f32 %v2302_v5, %v3106_v7  ;;  %v2305_v12 = vadd.f32 %v2304_v8, %v2303_v6  ;;  %v1778_v6 = vadd.s32 64, %v2581_v24 }
 0x14e   : > { %v1715_v14 = vadd.f32 %v2376_v45, %v1618_v11  ;;  %v1621_v40 = vadd.f32 %v2305_v12, %v3108_v9  ;;  %v3191_v9 = vadd.s32 %v3134_v28, %v1774_v13 }
 0x150   : > { %v3184_v43 = vsel %vm1806_vm2, %v1715_v14, 0.0  ;;  %v1718_v17 = vadd.f32 %v2377_v56, %v1621_v40  ;;  %v2306_v19 = vpop.f32.mrb[40].mxu0  ;;  %v2380_v7 = vpop.f32.mrb[36].mxu1  ;;  %vm1808_vm4 = vcmp.lt.s32.totalorder %v3191_v9, 242  ;;  %v3218_v56 = vadd.s32 %v3134_v28, %v1776_v49 }
 0x151   : > { %1870 = vst [vmem:[%s3152_s20 + $0x10] sm:$0xff] %v3184_v43  ;;  %v2307_v23 = vpop.f32.mrb[41].mxu0  ;;  %v1722_v42 = vpop.f32.mrb[37].mxu1  ;;  %v1891_v29 = vadd.f32 %v1890_v22, %v3184_v43  ;;  %v1779_v14 = vadd.s32 72, %v2581_v24  ;;  %v1781_v49 = vadd.s32 88, %v2581_v24 }
 0x152   : > { %v3195_v26 = vsel %vm1807_vm3, %v1718_v17, 0.0  ;;  %v2308_v25 = vadd.f32 %v2307_v23, %v2306_v19  ;;  %v2309_v20 = vpop.f32.mrb[42].mxu0  ;;  %v2381_v53 = vpop.f32.mrb[38].mxu1  ;;  %vm1810_vm6 = vcmp.lt.s32.totalorder %v3218_v56, 242 }
 0x153   : > { %1871 = vst [vmem:[%s3152_s20 + $0x18] sm:$0xff] %v3195_v26  ;;  %v2310_v27 = vpop.f32.mrb[43].mxu0  ;;  %v1725_v48 = vpop.f32.mrb[39].mxu1  ;;  %v1892_v46 = vadd.f32 %v1891_v29, %v3195_v26 }
 0x154   : > { %v2311_v33 = vadd.f32 %v2310_v27, %v2309_v20  ;;  %v1626_v35 = vadd.f32 %v2308_v25, %v3110_v18 }
 0x156   : > { %v1723_v36 = vadd.f32 %v1722_v42, %v1626_v35  ;;  %v1629_v37 = vadd.f32 %v2311_v33, %v3112_v21 }
 0x158   : > { %v3212_v45 = vsel %vm1808_vm4, %v1723_v36, 0.0  ;;  %v1726_v52 = vadd.f32 %v1725_v48, %v1629_v37  ;;  %v2312_v18 = vpop.f32.mrb[44].mxu0  ;;  %v1780_v48 = vadd.s32 80, %v2581_v24 }
 0x159   : > { %1872 = vst [vmem:[%s3152_s20 + $0x20] sm:$0xff] %v3212_v45  ;;  %v1893_v47 = vadd.f32 %v1892_v46, %v3212_v45  ;;  %v2313_v54 = vpop.f32.mrb[45].mxu0 }
 0x15a   : > { %v3222_v21 = vsel %vm1809_vm5, %v1726_v52, 0.0  ;;  %v2314_v57 = vadd.f32 %v2313_v54, %v2312_v18  ;;  %v2315_v59 = vpop.f32.mrb[46].mxu0  ;;  %v3270_v52 = vadd.s32 %v3134_v28, %v1780_v48  ;;  %v1784_v48 = vadd.s32 112, %v2581_v24 }
 0x15b   : > { %1873 = vst [vmem:[%s3152_s20 + $0x28] sm:$0xff] %v3222_v21  ;;  %v1894_v60 = vadd.f32 %v1893_v47, %v3222_v21  ;;  %v2316_v61 = vpop.f32.mrb[47].mxu0 }
 0x15c   : > { %v1634_v1 = vadd.f32 %v2314_v57, %v3114_v31  ;;  %v2317_v58 = vadd.f32 %v2316_v61, %v2315_v59  ;;  %v3280_v59 = vadd.s32 %v3134_v28, %v1781_v49  ;;  %vm1814_vm10 = vcmp.lt.s32.totalorder %v3270_v52, 242 }
 0x15d   : > { %v1785_v49 = vadd.s32 120, %v2581_v24 }
 0x15e   : > { %v2384_v5 = vpop.f32.mrb[40].mxu1  ;;  %v1731_v8 = vadd.f32 %v2380_v7, %v1634_v1  ;;  %v1637_v11 = vadd.f32 %v2317_v58, %v3116_v32  ;;  %v3243_v7 = vadd.s32 %v3134_v28, %v1778_v6  ;;  %v1782_v6 = vadd.s32 96, %v2581_v24 }
 0x15f   : > { %v1738_v12 = vpop.f32.mrb[41].mxu1  ;;  %vm1815_vm11 = vcmp.lt.s32.totalorder %v3280_v59, 242 }
 0x160   : > { %v2385_v13 = vpop.f32.mrb[42].mxu1  ;;  %v3238_v40 = vsel %vm1810_vm6, %v1731_v8, 0.0  ;;  %v1734_v31 = vadd.f32 %v2381_v53, %v1637_v11  ;;  %v2318_v15 = vpop.f32.mrb[48].mxu0  ;;  %v3254_v53 = vadd.s32 %v3134_v28, %v1779_v14  ;;  %vm1812_vm8 = vcmp.lt.s32.totalorder %v3243_v7, 242 }
 0x161   : > { %v1741_v17 = vpop.f32.mrb[43].mxu1  ;;  %1874 = vst [vmem:[%s3152_s20 + $0x30] sm:$0xff] %v3238_v40  ;;  %v2319_v19 = vpop.f32.mrb[49].mxu0  ;;  %v1895_v32 = vadd.f32 %v1894_v60, %v3238_v40 }
 0x162   : > { %v3248_v22 = vsel %vm1811_vm7, %v1734_v31, 0.0  ;;  %v2320_v23 = vadd.f32 %v2319_v19, %v2318_v15  ;;  %v2321_v42 = vpop.f32.mrb[50].mxu0  ;;  %vm1813_vm9 = vcmp.lt.s32.totalorder %v3254_v53, 242  ;;  %v1783_v31 = vadd.s32 104, %v2581_v24 }
 0x163   : > { %1875 = vst [vmem:[%s3152_s20 + $0x38] sm:$0xff] %v3248_v22  ;;  %v2322_v25 = vpop.f32.mrb[51].mxu0  ;;  %v1896_v20 = vadd.f32 %v1895_v32, %v3248_v22  ;;  %v3295_v32 = vadd.s32 %v3134_v28, %v1782_v6 }
 0x164   : > { %v2323_v27 = vadd.f32 %v2322_v25, %v2321_v42  ;;  %v1642_v29 = vadd.f32 %v2320_v23, %v3118_v44 }
 0x165   : > { %vm1816_vm12 = vcmp.lt.s32.totalorder %v3295_v32, 242 }
 0x166   : > { %v1739_v33 = vadd.f32 %v1738_v12, %v1642_v29  ;;  %v1645_v35 = vadd.f32 %v2323_v27, %v3120_v51 }
 0x168   : > { %v3264_v36 = vsel %vm1812_vm8, %v1739_v33, 0.0  ;;  %v1742_v37 = vadd.f32 %v1741_v17, %v1645_v35  ;;  %v2324_v46 = vpop.f32.mrb[52].mxu0 }
 0x169   : > { %1876 = vst [vmem:[%s3152_s20 + $0x40] sm:$0xff] %v3264_v36  ;;  %v1897_v44 = vadd.f32 %v1896_v20, %v3264_v36  ;;  %v2325_v39 = vpop.f32.mrb[53].mxu0  ;;  %v3306_v20 = vadd.s32 %v3134_v28, %v1783_v31 }
 0x16a   : > { %v3274_v51 = vsel %vm1813_vm9, %v1742_v37, 0.0  ;;  %v2326_v18 = vadd.f32 %v2325_v39, %v2324_v46  ;;  %v2327_v47 = vpop.f32.mrb[54].mxu0 }
 0x16b   : > { %1877 = vst [vmem:[%s3152_s20 + $0x48] sm:$0xff] %v3274_v51  ;;  %v1898_v54 = vadd.f32 %v1897_v44, %v3274_v51  ;;  %v2328_v57 = vpop.f32.mrb[55].mxu0  ;;  %v2388_v60 = vpop.f32.mrb[44].mxu1  ;;  %vm1817_vm13 = vcmp.lt.s32.totalorder %v3306_v20, 242 }
 0x16c   : > { %v1650_v61 = vadd.f32 %v2326_v18, %v3122_v2  ;;  %v2329_v1 = vadd.f32 %v2328_v57, %v2327_v47  ;;  %v1754_v58 = vpop.f32.mrb[45].mxu1  ;;  %v3322_v18 = vadd.s32 %v3134_v28, %v1784_v48 }
 0x16d   : > { %v2389_v8 = vpop.f32.mrb[46].mxu1 }
 0x16e   : > { %v1747_v11 = vadd.f32 %v2384_v5, %v1650_v61  ;;  %v1653_v12 = vadd.f32 %v2329_v1, %v3124_v4  ;;  %v1757_v14 = vpop.f32.mrb[47].mxu1  ;;  %v1803_v61 = vadd.s32 %v3134_v28, %v1785_v49  ;;  %vm1818_vm14 = vcmp.lt.s32.totalorder %v3322_v18, 242 }
 0x170   : > { %v3290_v15 = vsel %vm1814_vm10, %v1747_v11, 0.0  ;;  %v1750_v2 = vadd.f32 %v2385_v13, %v1653_v12  ;;  %v2330_v17 = vpop.f32.mrb[56].mxu0  ;;  %vm1819_vm15 = vcmp.lt.s32.totalorder %v1803_v61, 242 }
 0x171   : > { %1878 = vst [vmem:[%s3152_s20 + $0x50] sm:$0xff] %v3290_v15  ;;  %v2331_v19 = vpop.f32.mrb[57].mxu0  ;;  %v1899_v5 = vadd.f32 %v1898_v54, %v3290_v15 }
 0x172   : > { %v3300_v4 = vsel %vm1815_vm11, %v1750_v2, 0.0  ;;  %v2332_v23 = vadd.f32 %v2331_v19, %v2330_v17  ;;  %v2333_v42 = vpop.f32.mrb[58].mxu0 }
 0x173   : > { %1879 = vst [vmem:[%s3152_s20 + $0x58] sm:$0xff] %v3300_v4  ;;  %v2334_v25 = vpop.f32.mrb[59].mxu0  ;;  %v1900_v13 = vadd.f32 %v1899_v5, %v3300_v4 }
 0x174   : > { %v2335_v27 = vadd.f32 %v2334_v25, %v2333_v42  ;;  %v1658_v29 = vadd.f32 %v2332_v23, %v3126_v16 }
 0x176   : > { %v1755_v33 = vadd.f32 %v1754_v58, %v1658_v29  ;;  %v1661_v35 = vadd.f32 %v2335_v27, %v3128_v0 }
 0x178   : > { %v3316_v37 = vsel %vm1816_vm12, %v1755_v33, 0.0  ;;  %v1758_v46 = vadd.f32 %v1757_v14, %v1661_v35  ;;  %v2336_v44 = vpop.f32.mrb[60].mxu0 }
 0x179   : > { %1880 = vst [vmem:[%s3152_s20 + $0x60] sm:$0xff] %v3316_v37  ;;  %v1901_v16 = vadd.f32 %v1900_v13, %v3316_v37  ;;  %v2337_v39 = vpop.f32.mrb[61].mxu0 }
 0x17a   : > { %v1865_v0 = vsel %vm1817_vm13, %v1758_v46, 0.0  ;;  %v2338_v47 = vadd.f32 %v2337_v39, %v2336_v44  ;;  %v2339_v24 = vpop.f32.mrb[62].mxu0 }
 0x17b   : > { %1881 = vst [vmem:[%s3152_s20 + $0x68] sm:$0xff] %v1865_v0  ;;  %v1902_v54 = vadd.f32 %v1901_v16, %v1865_v0  ;;  %v2340_v57 = vpop.f32.mrb[63].mxu0 }
 0x17c   : > { %v1666_v1 = vadd.f32 %v2338_v47, %v3130_v30  ;;  %v2341_v58 = vadd.f32 %v2340_v57, %v2339_v24 }
 0x17e   : > { %v1763_v6 = vadd.f32 %v2388_v60, %v1666_v1  ;;  %v1669_v11 = vadd.f32 %v2341_v58, %v3137_v34 }
 0x180   : > { %v1866_v12 = vsel %vm1818_vm14, %v1763_v6, 0.0  ;;  %v1766_v14 = vadd.f32 %v2389_v8, %v1669_v11  ;;  %v1914_v8 = vstv %s2392_s21 }
 0x181   : > { %1882 = vst [vmem:[%s3152_s20 + $0x70] sm:$0xff] %v1866_v12  ;;  %v1903_v31 = vadd.f32 %v1902_v54, %v1866_v12 }
 0x182   : > { %v1867_v2 = vsel %vm1819_vm15, %v1766_v14, 0.0 }
 0x183   : > { %1883 = vst [vmem:[%s3152_s20 + $0x78] sm:$0xff] %v1867_v2  ;;  %v1904_v28 = vadd.f32 %v1903_v31, %v1867_v2 }
 0x185   : > { %v1905_v17 = vrot.slane %v1904_v28, 4 }
 0x187   : > { %v1906_v30 = vadd.f32 %v1905_v17, %v1904_v28 }
 0x189   : > { %v1907_v19 = vrot.slane %v1906_v30, 2 }
 0x18b   : > { %v1908_v60 = vadd.f32 %v1907_v19, %v1906_v30 }
 0x18d   : > { %v1909_v34 = vrot.slane %v1908_v60, 1 }
 0x18f   : > { %v1910_v5 = vadd.f32 %v1909_v34, %v1908_v60 }
 0x191   : > { %v1915_v23 = vmul.f32 %v1914_v8, %v1910_v5  ;;  %1985 = vst [vmem:[%s3341_s24] sm:$0x1] %v1910_v5 }
 0x193   : > { %v1916_v42 = vsub.f32 %v3159_v50, %v1915_v23  ;;  %v1917_v25 = vsub.f32 %v3166_v63, %v1915_v23  ;;  %v1919_v13 = vsub.f32 %v3195_v26, %v1915_v23  ;;  %v1920_v27 = vsub.f32 %v3212_v45, %v1915_v23 }
 0x194   : > { %v1921_v29 = vsub.f32 %v3222_v21, %v1915_v23  ;;  %v1922_v48 = vsub.f32 %v3238_v40, %v1915_v23  ;;  %v1923_v33 = vsub.f32 %v3248_v22, %v1915_v23  ;;  %v1924_v35 = vsub.f32 %v3264_v36, %v1915_v23 }
 0x195   : > { %v1925_v49 = vsub.f32 %v3274_v51, %v1915_v23  ;;  %v1926_v46 = vsub.f32 %v3290_v15, %v1915_v23  ;;  %v1927_v50 = vsub.f32 %v3300_v4, %v1915_v23  ;;  %v1928_v63 = vsub.f32 %v3316_v37, %v1915_v23 }
 0x196   : > { %v1929_v44 = vsub.f32 %v1865_v0, %v1915_v23  ;;  %v1930_v26 = vsub.f32 %v1866_v12, %v1915_v23  ;;  %v1931_v16 = vsub.f32 %v1867_v2, %v1915_v23  ;;  %v1918_v45 = vsub.f32 %v3184_v43, %v1915_v23 }
 0x197   : > { %v1932_v21 = vsel %vm1804_vm0, %v1916_v42, 0.0  ;;  %v1933_v40 = vsel %vm1805_vm1, %v1917_v25, 0.0  ;;  %v1936_v22 = vsel %vm1808_vm4, %v1920_v27, 0.0  ;;  %v1937_v36 = vsel %vm1809_vm5, %v1921_v29, 0.0 }
 0x198   : > { %v1938_v51 = vsel %vm1810_vm6, %v1922_v48, 0.0  ;;  %v1939_v15 = vsel %vm1811_vm7, %v1923_v33, 0.0  ;;  %v1940_v43 = vsel %vm1812_vm8, %v1924_v35, 0.0  ;;  %v1941_v41 = vsel %vm1813_vm9, %v1925_v49, 0.0 }
 0x199   : > { %v1942_v38 = vsel %vm1814_vm10, %v1926_v46, 0.0  ;;  %v1943_v9 = vsel %vm1815_vm11, %v1927_v50, 0.0  ;;  %v1944_v55 = vsel %vm1816_vm12, %v1928_v63, 0.0  ;;  %v1945_v56 = vsel %vm1817_vm13, %v1929_v44, 0.0 }
 0x19a   : > { %v1946_v62 = vsel %vm1818_vm14, %v1930_v26, 0.0  ;;  %v1947_v7 = vsel %vm1819_vm15, %v1931_v16, 0.0  ;;  %v1948_v4 = vmul.f32 %v1932_v21, %v1932_v21  ;;  %v1949_v53 = vmul.f32 %v1933_v40, %v1933_v40 }
 0x19b   : > { %v1934_v52 = vsel %vm1806_vm2, %v1918_v45, 0.0  ;;  %v1935_v59 = vsel %vm1807_vm3, %v1919_v13, 0.0  ;;  %v1952_v47 = vmul.f32 %v1936_v22, %v1936_v22  ;;  %v1953_v24 = vmul.f32 %v1937_v36, %v1937_v36 }
 0x19c   : > { %v1950_v37 = vmul.f32 %v1934_v52, %v1934_v52  ;;  %v1964_v39 = vadd.f32 %v1949_v53, %v1948_v4  ;;  %v1951_v32 = vmul.f32 %v1935_v59, %v1935_v59  ;;  %v1954_v18 = vmul.f32 %v1938_v51, %v1938_v51 }
 0x19d   : > { %v1955_v61 = vmul.f32 %v1939_v15, %v1939_v15  ;;  %v1956_v58 = vmul.f32 %v1940_v43, %v1940_v43  ;;  %v1957_v11 = vmul.f32 %v1941_v41, %v1941_v41  ;;  %v1958_v12 = vmul.f32 %v1942_v38, %v1942_v38 }
 0x19e   : > { %v1965_v0 = vadd.f32 %v1964_v39, %v1950_v37  ;;  %v1959_v10 = vmul.f32 %v1943_v9, %v1943_v9  ;;  %v1960_v2 = vmul.f32 %v1944_v55, %v1944_v55  ;;  %v1961_v17 = vmul.f32 %v1945_v56, %v1945_v56 }
 0x19f   : > { %v1962_v19 = vmul.f32 %v1946_v62, %v1946_v62  ;;  %v1963_v34 = vmul.f32 %v1947_v7, %v1947_v7 }
 0x1a0   : > { %v1966_v20 = vadd.f32 %v1965_v0, %v1951_v32 }
 0x1a2   : > { %v1967_v54 = vadd.f32 %v1966_v20, %v1952_v47 }
 0x1a4   : > { %v1968_v57 = vadd.f32 %v1967_v54, %v1953_v24 }
 0x1a6   : > { %v1969_v1 = vadd.f32 %v1968_v57, %v1954_v18 }
 0x1a8   : > { %v1970_v6 = vadd.f32 %v1969_v1, %v1955_v61 }
 0x1aa   : > { %v1971_v3 = vadd.f32 %v1970_v6, %v1956_v58 }
 0x1ac   : > { %v1972_v14 = vadd.f32 %v1971_v3, %v1957_v11 }
 0x1ae   : > { %v1973_v31 = vadd.f32 %v1972_v14, %v1958_v12 }
 0x1b0   : > { %v1974_v28 = vadd.f32 %v1973_v31, %v1959_v10 }
 0x1b2   : > { %v1975_v30 = vadd.f32 %v1974_v28, %v1960_v2 }
 0x1b4   : > { %v1976_v60 = vadd.f32 %v1975_v30, %v1961_v17 }
 0x1b6   : > { %v1977_v8 = vadd.f32 %v1976_v60, %v1962_v19 }
 0x1b8   : > { %v1978_v5 = vadd.f32 %v1977_v8, %v1963_v34 }
 0x1ba   : > { %v1979_v23 = vrot.slane %v1978_v5, 4 }
 0x1bc   : > { %v1980_v42 = vadd.f32 %v1979_v23, %v1978_v5 }
 0x1be   : > { %v1981_v25 = vrot.slane %v1980_v42, 2 }
 0x1c0   : > { %v1982_v13 = vadd.f32 %v1981_v25, %v1980_v42 }
 0x1c2   : > { %v1983_v27 = vrot.slane %v1982_v13, 1 }
 0x1c4   : > { %v1984_v29 = vadd.f32 %v1983_v27, %v1982_v13 }
 0x1c6   : > { %1986 = vst [vmem:[%s3341_s24 + $0x1] sm:$0x1] %v1984_v29 }
 0x1c7 PF: > { %s16_s18 = sadd.s32 1, %s2467_s18  }
 0x1c8   : > { %p13_p7 = scmp.ge.s32.totalorder %s16_s18, 4  }
 0x1ca   :  { %15 = sbr.rel (!%p13_p7) target bundleno = 1 (0x1), region = 78 }

</bundles_post_ra>
